<compile_context>
chip_gen: v6e
topology: v6e:2x2x1
jax: 0.10.0
libtpu: 0.0.40
codegen_flags: <defaults>
</compile_context>

<pallas_src>
import jax
import jax.numpy as jnp
import numpy as np
from jax.experimental import pallas as pl
from jax.experimental.pallas import tpu as pltpu


_PAD = 17          # >= max |16*dy + dx| for dy,dx in {-1,0,1}
_HW = 256          # 16 x 16 flattened spatial extent


# ----------------------------- Pallas kernels ------------------------------

def _fc_kernel(z_ref, w_ref, b_ref, o_ref):
    # z: (B, 128), w: (128, TN) tile of W_fc^T, b: (1, TN) -> o: (B, TN)
    acc = jnp.dot(z_ref[...], w_ref[...], preferred_element_type=jnp.float32)
    o_ref[...] = (acc + b_ref[...]).astype(o_ref.dtype)


def _shifted(xp, dy, dx, m_ref):
    """xp: (C, 2*_PAD + 256) lane-padded flattened 16x16 maps.
    Returns the (dy,dx)-shifted map (C, 256), zero outside the 16x16 grid."""
    s = 16 * dy + dx
    x = xp[:, _PAD + s:_PAD + s + _HW]
    if dx != 0:
        # row (dy) out-of-range is already zero via the padding; column wrap
        # across rows needs the precomputed validity mask.
        gi = (dy + 1) * 3 + (dx + 1)
        x = x * m_ref[gi:gi + 1, :]
    return x


def _decoder_kernel(h_ref, m_ref, w1_ref, b1_ref, w2_ref, b2_ref, o_ref):
    # h_ref : (1, 32, 256)  one sample, channel-major, spatial on lanes
    # m_ref : (9, 256)      validity masks for shifts (dy,dx) in {-1,0,1}^2
    # w1_ref: (9, 64, 32)   deconv1 per-shift weights, row = (2*r1+s1)*16 + co
    # b1_ref: (64, 1)
    # w2_ref: (16, 48, 16)  deconv2 per-shift weights, row = co*16 + rho*4+kappa
    # b2_ref: (48, 1)
    # o_ref : (1, 48, 256)  row = co*16 + rho*4+kappa, col = 16*t + w
    zpad_h = jnp.zeros((32, _PAD), jnp.float32)
    hp = jnp.concatenate([zpad_h, h_ref[0], zpad_h], axis=-1)      # (32, 290)

    # ---- deconv1: ConvTranspose2d(32,16,4,2,1), all 4 output phases at once
    acc1 = None
    g = 0
    for dy in (-1, 0, 1):
        for dx in (-1, 0, 1):
            x = _shifted(hp, dy, dx, m_ref)                        # (32, 256)
            t = jax.lax.dot_general(w1_ref[g], x, (((1,), (0,)), ((), ())),
                                    preferred_element_type=jnp.float32)
            acc1 = t if acc1 is None else acc1 + t
            g += 1
    y1 = jnp.maximum(acc1 + b1_ref[...], 0.0)                      # (64, 256)

    zpad_y = jnp.zeros((64, _PAD), jnp.float32)
    y1p = jnp.concatenate([zpad_y, y1, zpad_y], axis=-1)           # (64, 290)

    # ---- deconv2: ConvTranspose2d(16,3,4,2,1), all 16 output phases at once
    acc2 = None
    g = 0
    for e in (-1, 0, 1, 2):
        r1, dy = e % 2, e // 2
        for f in (-1, 0, 1, 2):
            s1, dx = f % 2, f // 2
            ph = 2 * r1 + s1
            blk = y1p[ph * 16:ph * 16 + 16, :]                     # (16, 290)
            x = _shifted(blk, dy, dx, m_ref)                       # (16, 256)
            t = jax.lax.dot_general(w2_ref[g], x, (((1,), (0,)), ((), ())),
                                    preferred_element_type=jnp.float32)
            acc2 = t if acc2 is None else acc2 + t
            g += 1
    out = jax.nn.sigmoid(acc2 + b2_ref[...])                       # (48, 256)
    o_ref[0] = out.astype(o_ref.dtype)


# --------------------------- host-side weight prep ---------------------------

def prepare_params(params):
    """One-time preprocessing: torch layouts -> per-shift kernel layouts."""
    w_fc, b_fc, w1, b1, w2, b2 = [np.asarray(p, np.float32) for p in params]

    wfc_t = w_fc.T.copy()                          # (128, 8192), natural order
    bfc_r = b_fc.reshape(1, -1).copy()             # (1, 8192)

    # validity masks for shifts of a flattened 16x16 grid
    pp, qq = np.meshgrid(np.arange(16), np.arange(16), indexing="ij")
    shifts9 = [(dy, dx) for dy in (-1, 0, 1) for dx in (-1, 0, 1)]
    masks = np.zeros((9, 256), np.float32)
    for gi, (dy, dx) in enumerate(shifts9):
        m = ((pp + dy >= 0) & (pp + dy < 16) & (qq + dx >= 0) & (qq + dx < 16))
        masks[gi] = m.astype(np.float32).reshape(-1)

    # deconv1: fold taps into per-shift weights, output row = (2*r1+s1)*16 + co
    w1acc = np.zeros((9, 64, 32), np.float32)
    for gi, (dy, dx) in enumerate(shifts9):
        for r1 in range(2):
            a = dy + 1 - r1
            if a not in (0, 1):
                continue
            for s1 in range(2):
                b = dx + 1 - s1
                if b not in (0, 1):
                    continue
                ky, kx = 3 - r1 - 2 * a, 3 - s1 - 2 * b
                ph = 2 * r1 + s1
                w1acc[gi, ph * 16:ph * 16 + 16, :] = w1[:, :, ky, kx].T
    b1_rows = np.tile(b1.reshape(1, 16), (4, 1)).reshape(64, 1)

    # deconv2: fold taps into per-shift weights, output row = co*16 + rho*4+kappa
    w2acc = np.zeros((16, 48, 16), np.float32)
    evals = (-1, 0, 1, 2)
    for ei, e in enumerate(evals):
        for fi, f in enumerate(evals):
            g = ei * 4 + fi
            for u in range(2):
                for r2 in range(2):
                    a = e + 1 - u - r2
                    if a not in (0, 1):
                        continue
                    for v in range(2):
                        for s2 in range(2):
                            b = f + 1 - v - s2
                            if b not in (0, 1):
                                continue
                            ky, kx = 3 - r2 - 2 * a, 3 - s2 - 2 * b
                            PH = (2 * u + r2) * 4 + (2 * v + s2)
                            for co in range(3):
                                w2acc[g, co * 16 + PH, :] = w2[:, co, ky, kx]
    b2_rows = np.repeat(b2.reshape(3, 1), 16, axis=0)              # (48, 1)

    return tuple(jnp.asarray(a) for a in
                 (wfc_t, bfc_r, masks, w1acc, b1_rows, w2acc, b2_rows))


# ------------------------------ pallas wrappers ------------------------------

def fc_decode_pallas(z, wfc_t, bfc_r, tn=4096):
    B, K = z.shape
    N = wfc_t.shape[1]
    return pl.pallas_call(
        _fc_kernel,
        out_shape=jax.ShapeDtypeStruct((B, N), jnp.float32),
        grid=(N // tn,),
        in_specs=[
            pl.BlockSpec((B, K), lambda j: (0, 0)),
            pl.BlockSpec((K, tn), lambda j: (0, j)),
            pl.BlockSpec((1, tn), lambda j: (0, j)),
        ],
        out_specs=pl.BlockSpec((B, tn), lambda j: (0, j)),
        compiler_params=pltpu.CompilerParams(dimension_semantics=("parallel",)),
    )(z, wfc_t, bfc_r)


def decoder_pallas(h, masks, w1acc, b1r, w2acc, b2r):
    B = h.shape[0]
    out = pl.pallas_call(
        _decoder_kernel,
        out_shape=jax.ShapeDtypeStruct((B, 48, 256), jnp.float32),
        grid=(B,),
        in_specs=[
            pl.BlockSpec((1, 32, 256), lambda b: (b, 0, 0)),
            pl.BlockSpec((9, 256), lambda b: (0, 0)),
            pl.BlockSpec((9, 64, 32), lambda b: (0, 0, 0)),
            pl.BlockSpec((64, 1), lambda b: (0, 0)),
            pl.BlockSpec((16, 48, 16), lambda b: (0, 0, 0)),
            pl.BlockSpec((48, 1), lambda b: (0, 0)),
        ],
        out_specs=pl.BlockSpec((1, 48, 256), lambda b: (b, 0, 0)),
        compiler_params=pltpu.CompilerParams(dimension_semantics=("parallel",)),
    )(h, masks, w1acc, b1r, w2acc, b2r)
    # (b, co*16 + rho*4+kappa, 16t+w) -> NCHW (b, co, 4t+rho, 4w+kappa)
    out = out.reshape(B, 3, 4, 4, 16, 16)           # (b, co, rho, kappa, t, w)
    out = jnp.transpose(out, (0, 1, 4, 2, 5, 3))    # (b, co, t, rho, w, kappa)
    return out.reshape(B, 3, 64, 64)


def small_vae_forward(z, prepared):
    wfc_t, bfc_r, masks, w1acc, b1r, w2acc, b2r = prepared
    B = z.shape[0]
    h = fc_decode_pallas(z, wfc_t, bfc_r)      # (B, 8192), torch (c,y,x) order
    h = h.reshape(B, 32, 256)                  # metadata-only reshape in HBM
    return decoder_pallas(h, masks, w1acc, b1r, w2acc, b2r)


# ------------------------------ pure-JAX reference --------------------------

def _ref_deconv(x_nchw, w_torch, b, stride=2, padding=1):
    k = w_torch.shape[2]
    wf = jnp.transpose(w_torch[:, :, ::-1, ::-1], (1, 0, 2, 3))
    pad = k - 1 - padding
    y = jax.lax.conv_general_dilated(
        x_nchw, wf, window_strides=(1, 1),
        padding=((pad, pad), (pad, pad)),
        lhs_dilation=(stride, stride),
        dimension_numbers=("NCHW", "OIHW", "NCHW"))
    return y + b[None, :, None, None]


def ref_forward(z, params):
    w_fc, b_fc, w1, b1, w2, b2 = params
    h = z @ w_fc.T + b_fc
    h = h.reshape(-1, 32, 16, 16)
    y1 = jnp.maximum(_ref_deconv(h, w1, b1), 0.0)
    y2 = jax.nn.sigmoid(_ref_deconv(y1, w2, b2))
    return y2


# ----------------------------------- main ------------------------------------

if __name__ == "__main__":
    key = jax.random.PRNGKey(0)
    ks = jax.random.split(key, 7)

    def uinit(k, shape, fan_in):
        bound = 1.0 / np.sqrt(fan_in)
        return jax.random.uniform(k, shape, jnp.float32, -bound, bound)

    # deterministic parameter init (same shapes as the torch module)
    w_fc = uinit(ks[0], (32 * 16 * 16, 128), 128)     # Linear(128, 8192)
    b_fc = uinit(ks[1], (32 * 16 * 16,), 128)
    w1 = uinit(ks[2], (32, 16, 4, 4), 32 * 4 * 4)     # ConvTranspose2d(32,16,4,2,1)
    b1 = uinit(ks[3], (16,), 32 * 4 * 4)
    w2 = uinit(ks[4], (16, 3, 4, 4), 16 * 4 * 4)      # ConvTranspose2d(16,3,4,2,1)
    b2 = uinit(ks[5], (3,), 16 * 4 * 4)
    params = (w_fc, b_fc, w1, b1, w2, b2)

    # forward == decode, so the input is the 128-dim latent
    z = jax.random.normal(ks[6], (2, 128), jnp.float32)

    prepared = prepare_params(params)                 # one-time weight prep
    fwd = jax.jit(small_vae_forward)

    out = jax.block_until_ready(fwd(z, prepared))
    ref = jax.block_until_ready(ref_forward(z, params))

    assert out.shape == (2, 3, 64, 64), out.shape
    assert np.allclose(np.asarray(out), np.asarray(ref), atol=1e-4, rtol=1e-4)
    print("KERNEL_OK")
</pallas_src>

<mosaic_0001>
module attributes {stable_mosaic.version = 11 : i64} {
  func.func @_fc_kernel(%arg0: i32, %arg1: memref<2x128xf32, #tpu.memory_space<vmem>>, %arg2: memref<128x4096xf32, #tpu.memory_space<vmem>>, %arg3: memref<1x4096xf32, #tpu.memory_space<vmem>>, %arg4: memref<2x4096xf32, #tpu.memory_space<vmem>>) attributes {dimension_semantics = [#tpu.dimension_semantics<parallel>], iteration_bounds = array<i64: 2>, scalar_prefetch = 0 : i64, scratch_operands = 0 : i64, tpu.core_type = #tpu.core_type<tc>, window_params = [{pipeline_mode = #tpu.pipeline_mode<synchronous>, transform_indices = @transform_0, window_bounds = array<i64: 2, 128>}, {transform_indices = @transform_1, window_bounds = array<i64: 128, 4096>}, {transform_indices = @transform_2, window_bounds = array<i64: 1, 4096>}, {transform_indices = @transform_3, window_bounds = array<i64: 2, 4096>}]} {
    %c0 = arith.constant 0 : index
    %c0_0 = arith.constant 0 : index
    %0 = vector.load %arg1[%c0, %c0_0] : memref<2x128xf32, #tpu.memory_space<vmem>>, vector<2x128xf32>
    %c0_1 = arith.constant 0 : index
    %c0_2 = arith.constant 0 : index
    %1 = vector.load %arg2[%c0_1, %c0_2] : memref<128x4096xf32, #tpu.memory_space<vmem>>, vector<128x4096xf32>
    %cst = arith.constant dense<0.000000e+00> : vector<2x4096xf32>
    %2 = tpu.matmul %0, %1, %cst {dimension_numbers = #tpu.dot_dimension_numbers<[1], [0], [0], [1], [0, 0, 1, 1], [], []>} : vector<2x128xf32>, vector<128x4096xf32>, vector<2x4096xf32> -> vector<2x4096xf32>
    %c0_3 = arith.constant 0 : index
    %c0_4 = arith.constant 0 : index
    %3 = vector.load %arg3[%c0_3, %c0_4] : memref<1x4096xf32, #tpu.memory_space<vmem>>, vector<1x4096xf32>
    %4 = vector.broadcast %3 : vector<1x4096xf32> to vector<2x4096xf32>
    %5 = arith.addf %2, %4 : vector<2x4096xf32>
    %c0_5 = arith.constant 0 : index
    %c0_6 = arith.constant 0 : index
    %6 = vector.load %arg4[%c0_5, %c0_6] : memref<2x4096xf32, #tpu.memory_space<vmem>>, vector<2x4096xf32>
    tpu.vector_store %arg4[%c0_5, %c0_6], %5 {strides = array<i32>} : memref<2x4096xf32, #tpu.memory_space<vmem>>, vector<2x4096xf32>,
    return
  }
  func.func @transform_0(%arg0: i32) -> (i32, i32) {
    %c0_i32 = arith.constant 0 : i32
    %c0_i32_0 = arith.constant 0 : i32
    %c0_i32_1 = arith.constant 0 : i32
    return %c0_i32, %c0_i32_0 : i32, i32
  }
  func.func @transform_1(%arg0: i32) -> (i32, i32) {
    %c0_i32 = arith.constant 0 : i32
    %c0_i32_0 = arith.constant 0 : i32
    return %c0_i32, %arg0 : i32, i32
  }
  func.func @transform_2(%arg0: i32) -> (i32, i32) {
    %c0_i32 = arith.constant 0 : i32
    %c0_i32_0 = arith.constant 0 : i32
    return %c0_i32, %arg0 : i32, i32
  }
  func.func @transform_3(%arg0: i32) -> (i32, i32) {
    %c0_i32 = arith.constant 0 : i32
    %c0_i32_0 = arith.constant 0 : i32
    return %c0_i32, %arg0 : i32, i32
  }
}

module attributes {stable_mosaic.version = 11 : i64} {
  func.func @_decoder_kernel(%arg0: i32, %arg1: memref<1x32x256xf32, #tpu.memory_space<vmem>>, %arg2: memref<9x256xf32, #tpu.memory_space<vmem>>, %arg3: memref<9x64x32xf32, #tpu.memory_space<vmem>>, %arg4: memref<64x1xf32, #tpu.memory_space<vmem>>, %arg5: memref<16x48x16xf32, #tpu.memory_space<vmem>>, %arg6: memref<48x1xf32, #tpu.memory_space<vmem>>, %arg7: memref<1x48x256xf32, #tpu.memory_space<vmem>>) attributes {dimension_semantics = [#tpu.dimension_semantics<parallel>], iteration_bounds = array<i64: 2>, scalar_prefetch = 0 : i64, scratch_operands = 0 : i64, tpu.core_type = #tpu.core_type<tc>, window_params = [{transform_indices = @transform_0, window_bounds = array<i64: 1, 32, 256>}, {pipeline_mode = #tpu.pipeline_mode<synchronous>, transform_indices = @transform_1, window_bounds = array<i64: 9, 256>}, {pipeline_mode = #tpu.pipeline_mode<synchronous>, transform_indices = @transform_2, window_bounds = array<i64: 9, 64, 32>}, {pipeline_mode = #tpu.pipeline_mode<synchronous>, transform_indices = @transform_3, window_bounds = array<i64: 64, 1>}, {pipeline_mode = #tpu.pipeline_mode<synchronous>, transform_indices = @transform_4, window_bounds = array<i64: 16, 48, 16>}, {pipeline_mode = #tpu.pipeline_mode<synchronous>, transform_indices = @transform_5, window_bounds = array<i64: 48, 1>}, {transform_indices = @transform_6, window_bounds = array<i64: 1, 48, 256>}]} {
    %cst = arith.constant 0.000000e+00 : f32
    %0 = vector.broadcast %cst : f32 to vector<32x17xf32>
    %c0 = arith.constant 0 : index
    %c0_0 = arith.constant 0 : index
    %c0_1 = arith.constant 0 : index
    %1 = vector.load %arg1[%c0, %c0_0, %c0_1] : memref<1x32x256xf32, #tpu.memory_space<vmem>>, vector<1x32x256xf32>
    %2 = vector.shape_cast %1 : vector<1x32x256xf32> to vector<32x256xf32>
    %3 = tpu.concatenate %0, %2, %0 in 1 : vector<32x17xf32>, vector<32x256xf32>, vector<32x17xf32> -> vector<32x290xf32>
    %4 = vector.extract_strided_slice %3 {offsets = [0, 0], sizes = [32, 256], strides = [1, 1]} : vector<32x290xf32> to vector<32x256xf32>
    %c0_2 = arith.constant 0 : index
    %c0_3 = arith.constant 0 : index
    %5 = vector.load %arg2[%c0_2, %c0_3] : memref<9x256xf32, #tpu.memory_space<vmem>>, vector<1x256xf32>
    %6 = vector.broadcast %5 : vector<1x256xf32> to vector<32x256xf32>
    %7 = arith.mulf %4, %6 : vector<32x256xf32>
    %c0_4 = arith.constant 0 : index
    %c0_5 = arith.constant 0 : index
    %c0_6 = arith.constant 0 : index
    %8 = vector.load %arg3[%c0_4, %c0_5, %c0_6] : memref<9x64x32xf32, #tpu.memory_space<vmem>>, vector<1x64x32xf32>
    %9 = vector.shape_cast %8 : vector<1x64x32xf32> to vector<64x32xf32>
    %cst_7 = arith.constant dense<0.000000e+00> : vector<64x256xf32>
    %10 = tpu.matmul %9, %7, %cst_7 {dimension_numbers = #tpu.dot_dimension_numbers<[1], [0], [0], [1], [0, 0, 1, 1], [], []>} : vector<64x32xf32>, vector<32x256xf32>, vector<64x256xf32> -> vector<64x256xf32>
    %11 = vector.extract_strided_slice %3 {offsets = [0, 1], sizes = [32, 256], strides = [1, 1]} : vector<32x290xf32> to vector<32x256xf32>
    %c1 = arith.constant 1 : index
    %c0_8 = arith.constant 0 : index
    %c0_9 = arith.constant 0 : index
    %12 = vector.load %arg3[%c1, %c0_8, %c0_9] : memref<9x64x32xf32, #tpu.memory_space<vmem>>, vector<1x64x32xf32>
    %13 = vector.shape_cast %12 : vector<1x64x32xf32> to vector<64x32xf32>
    %cst_10 = arith.constant dense<0.000000e+00> : vector<64x256xf32>
    %14 = tpu.matmul %13, %11, %cst_10 {dimension_numbers = #tpu.dot_dimension_numbers<[1], [0], [0], [1], [0, 0, 1, 1], [], []>} : vector<64x32xf32>, vector<32x256xf32>, vector<64x256xf32> -> vector<64x256xf32>
    %15 = arith.addf %10, %14 : vector<64x256xf32>
    %16 = vector.extract_strided_slice %3 {offsets = [0, 2], sizes = [32, 256], strides = [1, 1]} : vector<32x290xf32> to vector<32x256xf32>
    %c2 = arith.constant 2 : index
    %c0_11 = arith.constant 0 : index
    %17 = vector.load %arg2[%c2, %c0_11] : memref<9x256xf32, #tpu.memory_space<vmem>>, vector<1x256xf32>
    %18 = vector.broadcast %17 : vector<1x256xf32> to vector<32x256xf32>
    %19 = arith.mulf %16, %18 : vector<32x256xf32>
    %c2_12 = arith.constant 2 : index
    %c0_13 = arith.constant 0 : index
    %c0_14 = arith.constant 0 : index
    %20 = vector.load %arg3[%c2_12, %c0_13, %c0_14] : memref<9x64x32xf32, #tpu.memory_space<vmem>>, vector<1x64x32xf32>
    %21 = vector.shape_cast %20 : vector<1x64x32xf32> to vector<64x32xf32>
    %cst_15 = arith.constant dense<0.000000e+00> : vector<64x256xf32>
    %22 = tpu.matmul %21, %19, %cst_15 {dimension_numbers = #tpu.dot_dimension_numbers<[1], [0], [0], [1], [0, 0, 1, 1], [], []>} : vector<64x32xf32>, vector<32x256xf32>, vector<64x256xf32> -> vector<64x256xf32>
    %23 = arith.addf %15, %22 : vector<64x256xf32>
    %24 = vector.extract_strided_slice %3 {offsets = [0, 16], sizes = [32, 256], strides = [1, 1]} : vector<32x290xf32> to vector<32x256xf32>
    %c3 = arith.constant 3 : index
    %c0_16 = arith.constant 0 : index
    %25 = vector.load %arg2[%c3, %c0_16] : memref<9x256xf32, #tpu.memory_space<vmem>>, vector<1x256xf32>
    %26 = vector.broadcast %25 : vector<1x256xf32> to vector<32x256xf32>
    %27 = arith.mulf %24, %26 : vector<32x256xf32>
    %c3_17 = arith.constant 3 : index
    %c0_18 = arith.constant 0 : index
    %c0_19 = arith.constant 0 : index
    %28 = vector.load %arg3[%c3_17, %c0_18, %c0_19] : memref<9x64x32xf32, #tpu.memory_space<vmem>>, vector<1x64x32xf32>
    %29 = vector.shape_cast %28 : vector<1x64x32xf32> to vector<64x32xf32>
    %cst_20 = arith.constant dense<0.000000e+00> : vector<64x256xf32>
    %30 = tpu.matmul %29, %27, %cst_20 {dimension_numbers = #tpu.dot_dimension_numbers<[1], [0], [0], [1], [0, 0, 1, 1], [], []>} : vector<64x32xf32>, vector<32x256xf32>, vector<64x256xf32> -> vector<64x256xf32>
    %31 = arith.addf %23, %30 : vector<64x256xf32>
    %32 = vector.extract_strided_slice %3 {offsets = [0, 17], sizes = [32, 256], strides = [1, 1]} : vector<32x290xf32> to vector<32x256xf32>
    %c4 = arith.constant 4 : index
    %c0_21 = arith.constant 0 : index
    %c0_22 = arith.constant 0 : index
    %33 = vector.load %arg3[%c4, %c0_21, %c0_22] : memref<9x64x32xf32, #tpu.memory_space<vmem>>, vector<1x64x32xf32>
    %34 = vector.shape_cast %33 : vector<1x64x32xf32> to vector<64x32xf32>
    %cst_23 = arith.constant dense<0.000000e+00> : vector<64x256xf32>
    %35 = tpu.matmul %34, %32, %cst_23 {dimension_numbers = #tpu.dot_dimension_numbers<[1], [0], [0], [1], [0, 0, 1, 1], [], []>} : vector<64x32xf32>, vector<32x256xf32>, vector<64x256xf32> -> vector<64x256xf32>
    %36 = arith.addf %31, %35 : vector<64x256xf32>
    %37 = vector.extract_strided_slice %3 {offsets = [0, 18], sizes = [32, 256], strides = [1, 1]} : vector<32x290xf32> to vector<32x256xf32>
    %c5 = arith.constant 5 : index
    %c0_24 = arith.constant 0 : index
    %38 = vector.load %arg2[%c5, %c0_24] : memref<9x256xf32, #tpu.memory_space<vmem>>, vector<1x256xf32>
    %39 = vector.broadcast %38 : vector<1x256xf32> to vector<32x256xf32>
    %40 = arith.mulf %37, %39 : vector<32x256xf32>
    %c5_25 = arith.constant 5 : index
    %c0_26 = arith.constant 0 : index
    %c0_27 = arith.constant 0 : index
    %41 = vector.load %arg3[%c5_25, %c0_26, %c0_27] : memref<9x64x32xf32, #tpu.memory_space<vmem>>, vector<1x64x32xf32>
    %42 = vector.shape_cast %41 : vector<1x64x32xf32> to vector<64x32xf32>
    %cst_28 = arith.constant dense<0.000000e+00> : vector<64x256xf32>
    %43 = tpu.matmul %42, %40, %cst_28 {dimension_numbers = #tpu.dot_dimension_numbers<[1], [0], [0], [1], [0, 0, 1, 1], [], []>} : vector<64x32xf32>, vector<32x256xf32>, vector<64x256xf32> -> vector<64x256xf32>
    %44 = arith.addf %36, %43 : vector<64x256xf32>
    %45 = vector.extract_strided_slice %3 {offsets = [0, 32], sizes = [32, 256], strides = [1, 1]} : vector<32x290xf32> to vector<32x256xf32>
    %c6 = arith.constant 6 : index
    %c0_29 = arith.constant 0 : index
    %46 = vector.load %arg2[%c6, %c0_29] : memref<9x256xf32, #tpu.memory_space<vmem>>, vector<1x256xf32>
    %47 = vector.broadcast %46 : vector<1x256xf32> to vector<32x256xf32>
    %48 = arith.mulf %45, %47 : vector<32x256xf32>
    %c6_30 = arith.constant 6 : index
    %c0_31 = arith.constant 0 : index
    %c0_32 = arith.constant 0 : index
    %49 = vector.load %arg3[%c6_30, %c0_31, %c0_32] : memref<9x64x32xf32, #tpu.memory_space<vmem>>, vector<1x64x32xf32>
    %50 = vector.shape_cast %49 : vector<1x64x32xf32> to vector<64x32xf32>
    %cst_33 = arith.constant dense<0.000000e+00> : vector<64x256xf32>
    %51 = tpu.matmul %50, %48, %cst_33 {dimension_numbers = #tpu.dot_dimension_numbers<[1], [0], [0], [1], [0, 0, 1, 1], [], []>} : vector<64x32xf32>, vector<32x256xf32>, vector<64x256xf32> -> vector<64x256xf32>
    %52 = arith.addf %44, %51 : vector<64x256xf32>
    %53 = vector.extract_strided_slice %3 {offsets = [0, 33], sizes = [32, 256], strides = [1, 1]} : vector<32x290xf32> to vector<32x256xf32>
    %c7 = arith.constant 7 : index
    %c0_34 = arith.constant 0 : index
    %c0_35 = arith.constant 0 : index
    %54 = vector.load %arg3[%c7, %c0_34, %c0_35] : memref<9x64x32xf32, #tpu.memory_space<vmem>>, vector<1x64x32xf32>
    %55 = vector.shape_cast %54 : vector<1x64x32xf32> to vector<64x32xf32>
    %cst_36 = arith.constant dense<0.000000e+00> : vector<64x256xf32>
    %56 = tpu.matmul %55, %53, %cst_36 {dimension_numbers = #tpu.dot_dimension_numbers<[1], [0], [0], [1], [0, 0, 1, 1], [], []>} : vector<64x32xf32>, vector<32x256xf32>, vector<64x256xf32> -> vector<64x256xf32>
    %57 = arith.addf %52, %56 : vector<64x256xf32>
    %58 = vector.extract_strided_slice %3 {offsets = [0, 34], sizes = [32, 256], strides = [1, 1]} : vector<32x290xf32> to vector<32x256xf32>
    %c8 = arith.constant 8 : index
    %c0_37 = arith.constant 0 : index
    %59 = vector.load %arg2[%c8, %c0_37] : memref<9x256xf32, #tpu.memory_space<vmem>>, vector<1x256xf32>
    %60 = vector.broadcast %59 : vector<1x256xf32> to vector<32x256xf32>
    %61 = arith.mulf %58, %60 : vector<32x256xf32>
    %c8_38 = arith.constant 8 : index
    %c0_39 = arith.constant 0 : index
    %c0_40 = arith.constant 0 : index
    %62 = vector.load %arg3[%c8_38, %c0_39, %c0_40] : memref<9x64x32xf32, #tpu.memory_space<vmem>>, vector<1x64x32xf32>
    %63 = vector.shape_cast %62 : vector<1x64x32xf32> to vector<64x32xf32>
    %cst_41 = arith.constant dense<0.000000e+00> : vector<64x256xf32>
    %64 = tpu.matmul %63, %61, %cst_41 {dimension_numbers = #tpu.dot_dimension_numbers<[1], [0], [0], [1], [0, 0, 1, 1], [], []>} : vector<64x32xf32>, vector<32x256xf32>, vector<64x256xf32> -> vector<64x256xf32>
    %65 = arith.addf %57, %64 : vector<64x256xf32>
    %c0_42 = arith.constant 0 : index
    %c0_43 = arith.constant 0 : index
    %66 = vector.load %arg4[%c0_42, %c0_43] : memref<64x1xf32, #tpu.memory_space<vmem>>, vector<64x1xf32>
    %67 = vector.broadcast %66 : vector<64x1xf32> to vector<64x256xf32>
    %68 = arith.addf %65, %67 : vector<64x256xf32>
    %cst_44 = arith.constant 0.000000e+00 : f32
    %69 = vector.broadcast %cst_44 : f32 to vector<64x256xf32>
    %70 = arith.maximumf %68, %69 : vector<64x256xf32>
    %cst_45 = arith.constant 0.000000e+00 : f32
    %71 = vector.broadcast %cst_45 : f32 to vector<64x17xf32>
    %72 = tpu.concatenate %71, %70, %71 in 1 : vector<64x17xf32>, vector<64x256xf32>, vector<64x17xf32> -> vector<64x290xf32>
    %73 = vector.extract_strided_slice %72 {offsets = [48, 0], sizes = [16, 290], strides = [1, 1]} : vector<64x290xf32> to vector<16x290xf32>
    %74 = vector.extract_strided_slice %73 {offsets = [0, 0], sizes = [16, 256], strides = [1, 1]} : vector<16x290xf32> to vector<16x256xf32>
    %c0_46 = arith.constant 0 : index
    %c0_47 = arith.constant 0 : index
    %75 = vector.load %arg2[%c0_46, %c0_47] : memref<9x256xf32, #tpu.memory_space<vmem>>, vector<1x256xf32>
    %76 = vector.broadcast %75 : vector<1x256xf32> to vector<16x256xf32>
    %77 = arith.mulf %74, %76 : vector<16x256xf32>
    %c0_48 = arith.constant 0 : index
    %c0_49 = arith.constant 0 : index
    %c0_50 = arith.constant 0 : index
    %78 = vector.load %arg5[%c0_48, %c0_49, %c0_50] : memref<16x48x16xf32, #tpu.memory_space<vmem>>, vector<1x48x16xf32>
    %79 = vector.shape_cast %78 : vector<1x48x16xf32> to vector<48x16xf32>
    %cst_51 = arith.constant dense<0.000000e+00> : vector<48x256xf32>
    %80 = tpu.matmul %79, %77, %cst_51 {dimension_numbers = #tpu.dot_dimension_numbers<[1], [0], [0], [1], [0, 0, 1, 1], [], []>} : vector<48x16xf32>, vector<16x256xf32>, vector<48x256xf32> -> vector<48x256xf32>
    %81 = vector.extract_strided_slice %72 {offsets = [32, 0], sizes = [16, 290], strides = [1, 1]} : vector<64x290xf32> to vector<16x290xf32>
    %82 = vector.extract_strided_slice %81 {offsets = [0, 1], sizes = [16, 256], strides = [1, 1]} : vector<16x290xf32> to vector<16x256xf32>
    %c1_52 = arith.constant 1 : index
    %c0_53 = arith.constant 0 : index
    %c0_54 = arith.constant 0 : index
    %83 = vector.load %arg5[%c1_52, %c0_53, %c0_54] : memref<16x48x16xf32, #tpu.memory_space<vmem>>, vector<1x48x16xf32>
    %84 = vector.shape_cast %83 : vector<1x48x16xf32> to vector<48x16xf32>
    %cst_55 = arith.constant dense<0.000000e+00> : vector<48x256xf32>
    %85 = tpu.matmul %84, %82, %cst_55 {dimension_numbers = #tpu.dot_dimension_numbers<[1], [0], [0], [1], [0, 0, 1, 1], [], []>} : vector<48x16xf32>, vector<16x256xf32>, vector<48x256xf32> -> vector<48x256xf32>
    %86 = arith.addf %80, %85 : vector<48x256xf32>
    %87 = vector.extract_strided_slice %72 {offsets = [48, 0], sizes = [16, 290], strides = [1, 1]} : vector<64x290xf32> to vector<16x290xf32>
    %88 = vector.extract_strided_slice %87 {offsets = [0, 1], sizes = [16, 256], strides = [1, 1]} : vector<16x290xf32> to vector<16x256xf32>
    %c2_56 = arith.constant 2 : index
    %c0_57 = arith.constant 0 : index
    %c0_58 = arith.constant 0 : index
    %89 = vector.load %arg5[%c2_56, %c0_57, %c0_58] : memref<16x48x16xf32, #tpu.memory_space<vmem>>, vector<1x48x16xf32>
    %90 = vector.shape_cast %89 : vector<1x48x16xf32> to vector<48x16xf32>
    %cst_59 = arith.constant dense<0.000000e+00> : vector<48x256xf32>
    %91 = tpu.matmul %90, %88, %cst_59 {dimension_numbers = #tpu.dot_dimension_numbers<[1], [0], [0], [1], [0, 0, 1, 1], [], []>} : vector<48x16xf32>, vector<16x256xf32>, vector<48x256xf32> -> vector<48x256xf32>
    %92 = arith.addf %86, %91 : vector<48x256xf32>
    %93 = vector.extract_strided_slice %72 {offsets = [32, 0], sizes = [16, 290], strides = [1, 1]} : vector<64x290xf32> to vector<16x290xf32>
    %94 = vector.extract_strided_slice %93 {offsets = [0, 2], sizes = [16, 256], strides = [1, 1]} : vector<16x290xf32> to vector<16x256xf32>
    %c2_60 = arith.constant 2 : index
    %c0_61 = arith.constant 0 : index
    %95 = vector.load %arg2[%c2_60, %c0_61] : memref<9x256xf32, #tpu.memory_space<vmem>>, vector<1x256xf32>
    %96 = vector.broadcast %95 : vector<1x256xf32> to vector<16x256xf32>
    %97 = arith.mulf %94, %96 : vector<16x256xf32>
    %c3_62 = arith.constant 3 : index
    %c0_63 = arith.constant 0 : index
    %c0_64 = arith.constant 0 : index
    %98 = vector.load %arg5[%c3_62, %c0_63, %c0_64] : memref<16x48x16xf32, #tpu.memory_space<vmem>>, vector<1x48x16xf32>
    %99 = vector.shape_cast %98 : vector<1x48x16xf32> to vector<48x16xf32>
    %cst_65 = arith.constant dense<0.000000e+00> : vector<48x256xf32>
    %100 = tpu.matmul %99, %97, %cst_65 {dimension_numbers = #tpu.dot_dimension_numbers<[1], [0], [0], [1], [0, 0, 1, 1], [], []>} : vector<48x16xf32>, vector<16x256xf32>, vector<48x256xf32> -> vector<48x256xf32>
    %101 = arith.addf %92, %100 : vector<48x256xf32>
    %102 = vector.extract_strided_slice %72 {offsets = [16, 0], sizes = [16, 290], strides = [1, 1]} : vector<64x290xf32> to vector<16x290xf32>
    %103 = vector.extract_strided_slice %102 {offsets = [0, 16], sizes = [16, 256], strides = [1, 1]} : vector<16x290xf32> to vector<16x256xf32>
    %c3_66 = arith.constant 3 : index
    %c0_67 = arith.constant 0 : index
    %104 = vector.load %arg2[%c3_66, %c0_67] : memref<9x256xf32, #tpu.memory_space<vmem>>, vector<1x256xf32>
    %105 = vector.broadcast %104 : vector<1x256xf32> to vector<16x256xf32>
    %106 = arith.mulf %103, %105 : vector<16x256xf32>
    %c4_68 = arith.constant 4 : index
    %c0_69 = arith.constant 0 : index
    %c0_70 = arith.constant 0 : index
    %107 = vector.load %arg5[%c4_68, %c0_69, %c0_70] : memref<16x48x16xf32, #tpu.memory_space<vmem>>, vector<1x48x16xf32>
    %108 = vector.shape_cast %107 : vector<1x48x16xf32> to vector<48x16xf32>
    %cst_71 = arith.constant dense<0.000000e+00> : vector<48x256xf32>
    %109 = tpu.matmul %108, %106, %cst_71 {dimension_numbers = #tpu.dot_dimension_numbers<[1], [0], [0], [1], [0, 0, 1, 1], [], []>} : vector<48x16xf32>, vector<16x256xf32>, vector<48x256xf32> -> vector<48x256xf32>
    %110 = arith.addf %101, %109 : vector<48x256xf32>
    %111 = vector.extract_strided_slice %72 {offsets = [0, 0], sizes = [16, 290], strides = [1, 1]} : vector<64x290xf32> to vector<16x290xf32>
    %112 = vector.extract_strided_slice %111 {offsets = [0, 17], sizes = [16, 256], strides = [1, 1]} : vector<16x290xf32> to vector<16x256xf32>
    %c5_72 = arith.constant 5 : index
    %c0_73 = arith.constant 0 : index
    %c0_74 = arith.constant 0 : index
    %113 = vector.load %arg5[%c5_72, %c0_73, %c0_74] : memref<16x48x16xf32, #tpu.memory_space<vmem>>, vector<1x48x16xf32>
    %114 = vector.shape_cast %113 : vector<1x48x16xf32> to vector<48x16xf32>
    %cst_75 = arith.constant dense<0.000000e+00> : vector<48x256xf32>
    %115 = tpu.matmul %114, %112, %cst_75 {dimension_numbers = #tpu.dot_dimension_numbers<[1], [0], [0], [1], [0, 0, 1, 1], [], []>} : vector<48x16xf32>, vector<16x256xf32>, vector<48x256xf32> -> vector<48x256xf32>
    %116 = arith.addf %110, %115 : vector<48x256xf32>
    %117 = vector.extract_strided_slice %72 {offsets = [16, 0], sizes = [16, 290], strides = [1, 1]} : vector<64x290xf32> to vector<16x290xf32>
    %118 = vector.extract_strided_slice %117 {offsets = [0, 17], sizes = [16, 256], strides = [1, 1]} : vector<16x290xf32> to vector<16x256xf32>
    %c6_76 = arith.constant 6 : index
    %c0_77 = arith.constant 0 : index
    %c0_78 = arith.constant 0 : index
    %119 = vector.load %arg5[%c6_76, %c0_77, %c0_78] : memref<16x48x16xf32, #tpu.memory_space<vmem>>, vector<1x48x16xf32>
    %120 = vector.shape_cast %119 : vector<1x48x16xf32> to vector<48x16xf32>
    %cst_79 = arith.constant dense<0.000000e+00> : vector<48x256xf32>
    %121 = tpu.matmul %120, %118, %cst_79 {dimension_numbers = #tpu.dot_dimension_numbers<[1], [0], [0], [1], [0, 0, 1, 1], [], []>} : vector<48x16xf32>, vector<16x256xf32>, vector<48x256xf32> -> vector<48x256xf32>
    %122 = arith.addf %116, %121 : vector<48x256xf32>
    %123 = vector.extract_strided_slice %72 {offsets = [0, 0], sizes = [16, 290], strides = [1, 1]} : vector<64x290xf32> to vector<16x290xf32>
    %124 = vector.extract_strided_slice %123 {offsets = [0, 18], sizes = [16, 256], strides = [1, 1]} : vector<16x290xf32> to vector<16x256xf32>
    %c5_80 = arith.constant 5 : index
    %c0_81 = arith.constant 0 : index
    %125 = vector.load %arg2[%c5_80, %c0_81] : memref<9x256xf32, #tpu.memory_space<vmem>>, vector<1x256xf32>
    %126 = vector.broadcast %125 : vector<1x256xf32> to vector<16x256xf32>
    %127 = arith.mulf %124, %126 : vector<16x256xf32>
    %c7_82 = arith.constant 7 : index
    %c0_83 = arith.constant 0 : index
    %c0_84 = arith.constant 0 : index
    %128 = vector.load %arg5[%c7_82, %c0_83, %c0_84] : memref<16x48x16xf32, #tpu.memory_space<vmem>>, vector<1x48x16xf32>
    %129 = vector.shape_cast %128 : vector<1x48x16xf32> to vector<48x16xf32>
    %cst_85 = arith.constant dense<0.000000e+00> : vector<48x256xf32>
    %130 = tpu.matmul %129, %127, %cst_85 {dimension_numbers = #tpu.dot_dimension_numbers<[1], [0], [0], [1], [0, 0, 1, 1], [], []>} : vector<48x16xf32>, vector<16x256xf32>, vector<48x256xf32> -> vector<48x256xf32>
    %131 = arith.addf %122, %130 : vector<48x256xf32>
    %132 = vector.extract_strided_slice %72 {offsets = [48, 0], sizes = [16, 290], strides = [1, 1]} : vector<64x290xf32> to vector<16x290xf32>
    %133 = vector.extract_strided_slice %132 {offsets = [0, 16], sizes = [16, 256], strides = [1, 1]} : vector<16x290xf32> to vector<16x256xf32>
    %c3_86 = arith.constant 3 : index
    %c0_87 = arith.constant 0 : index
    %134 = vector.load %arg2[%c3_86, %c0_87] : memref<9x256xf32, #tpu.memory_space<vmem>>, vector<1x256xf32>
    %135 = vector.broadcast %134 : vector<1x256xf32> to vector<16x256xf32>
    %136 = arith.mulf %133, %135 : vector<16x256xf32>
    %c8_88 = arith.constant 8 : index
    %c0_89 = arith.constant 0 : index
    %c0_90 = arith.constant 0 : index
    %137 = vector.load %arg5[%c8_88, %c0_89, %c0_90] : memref<16x48x16xf32, #tpu.memory_space<vmem>>, vector<1x48x16xf32>
    %138 = vector.shape_cast %137 : vector<1x48x16xf32> to vector<48x16xf32>
    %cst_91 = arith.constant dense<0.000000e+00> : vector<48x256xf32>
    %139 = tpu.matmul %138, %136, %cst_91 {dimension_numbers = #tpu.dot_dimension_numbers<[1], [0], [0], [1], [0, 0, 1, 1], [], []>} : vector<48x16xf32>, vector<16x256xf32>, vector<48x256xf32> -> vector<48x256xf32>
    %140 = arith.addf %131, %139 : vector<48x256xf32>
    %141 = vector.extract_strided_slice %72 {offsets = [32, 0], sizes = [16, 290], strides = [1, 1]} : vector<64x290xf32> to vector<16x290xf32>
    %142 = vector.extract_strided_slice %141 {offsets = [0, 17], sizes = [16, 256], strides = [1, 1]} : vector<16x290xf32> to vector<16x256xf32>
    %c9 = arith.constant 9 : index
    %c0_92 = arith.constant 0 : index
    %c0_93 = arith.constant 0 : index
    %143 = vector.load %arg5[%c9, %c0_92, %c0_93] : memref<16x48x16xf32, #tpu.memory_space<vmem>>, vector<1x48x16xf32>
    %144 = vector.shape_cast %143 : vector<1x48x16xf32> to vector<48x16xf32>
    %cst_94 = arith.constant dense<0.000000e+00> : vector<48x256xf32>
    %145 = tpu.matmul %144, %142, %cst_94 {dimension_numbers = #tpu.dot_dimension_numbers<[1], [0], [0], [1], [0, 0, 1, 1], [], []>} : vector<48x16xf32>, vector<16x256xf32>, vector<48x256xf32> -> vector<48x256xf32>
    %146 = arith.addf %140, %145 : vector<48x256xf32>
    %147 = vector.extract_strided_slice %72 {offsets = [48, 0], sizes = [16, 290], strides = [1, 1]} : vector<64x290xf32> to vector<16x290xf32>
    %148 = vector.extract_strided_slice %147 {offsets = [0, 17], sizes = [16, 256], strides = [1, 1]} : vector<16x290xf32> to vector<16x256xf32>
    %c10 = arith.constant 10 : index
    %c0_95 = arith.constant 0 : index
    %c0_96 = arith.constant 0 : index
    %149 = vector.load %arg5[%c10, %c0_95, %c0_96] : memref<16x48x16xf32, #tpu.memory_space<vmem>>, vector<1x48x16xf32>
    %150 = vector.shape_cast %149 : vector<1x48x16xf32> to vector<48x16xf32>
    %cst_97 = arith.constant dense<0.000000e+00> : vector<48x256xf32>
    %151 = tpu.matmul %150, %148, %cst_97 {dimension_numbers = #tpu.dot_dimension_numbers<[1], [0], [0], [1], [0, 0, 1, 1], [], []>} : vector<48x16xf32>, vector<16x256xf32>, vector<48x256xf32> -> vector<48x256xf32>
    %152 = arith.addf %146, %151 : vector<48x256xf32>
    %153 = vector.extract_strided_slice %72 {offsets = [32, 0], sizes = [16, 290], strides = [1, 1]} : vector<64x290xf32> to vector<16x290xf32>
    %154 = vector.extract_strided_slice %153 {offsets = [0, 18], sizes = [16, 256], strides = [1, 1]} : vector<16x290xf32> to vector<16x256xf32>
    %c5_98 = arith.constant 5 : index
    %c0_99 = arith.constant 0 : index
    %155 = vector.load %arg2[%c5_98, %c0_99] : memref<9x256xf32, #tpu.memory_space<vmem>>, vector<1x256xf32>
    %156 = vector.broadcast %155 : vector<1x256xf32> to vector<16x256xf32>
    %157 = arith.mulf %154, %156 : vector<16x256xf32>
    %c11 = arith.constant 11 : index
    %c0_100 = arith.constant 0 : index
    %c0_101 = arith.constant 0 : index
    %158 = vector.load %arg5[%c11, %c0_100, %c0_101] : memref<16x48x16xf32, #tpu.memory_space<vmem>>, vector<1x48x16xf32>
    %159 = vector.shape_cast %158 : vector<1x48x16xf32> to vector<48x16xf32>
    %cst_102 = arith.constant dense<0.000000e+00> : vector<48x256xf32>
    %160 = tpu.matmul %159, %157, %cst_102 {dimension_numbers = #tpu.dot_dimension_numbers<[1], [0], [0], [1], [0, 0, 1, 1], [], []>} : vector<48x16xf32>, vector<16x256xf32>, vector<48x256xf32> -> vector<48x256xf32>
    %161 = arith.addf %152, %160 : vector<48x256xf32>
    %162 = vector.extract_strided_slice %72 {offsets = [16, 0], sizes = [16, 290], strides = [1, 1]} : vector<64x290xf32> to vector<16x290xf32>
    %163 = vector.extract_strided_slice %162 {offsets = [0, 32], sizes = [16, 256], strides = [1, 1]} : vector<16x290xf32> to vector<16x256xf32>
    %c6_103 = arith.constant 6 : index
    %c0_104 = arith.constant 0 : index
    %164 = vector.load %arg2[%c6_103, %c0_104] : memref<9x256xf32, #tpu.memory_space<vmem>>, vector<1x256xf32>
    %165 = vector.broadcast %164 : vector<1x256xf32> to vector<16x256xf32>
    %166 = arith.mulf %163, %165 : vector<16x256xf32>
    %c12 = arith.constant 12 : index
    %c0_105 = arith.constant 0 : index
    %c0_106 = arith.constant 0 : index
    %167 = vector.load %arg5[%c12, %c0_105, %c0_106] : memref<16x48x16xf32, #tpu.memory_space<vmem>>, vector<1x48x16xf32>
    %168 = vector.shape_cast %167 : vector<1x48x16xf32> to vector<48x16xf32>
    %cst_107 = arith.constant dense<0.000000e+00> : vector<48x256xf32>
    %169 = tpu.matmul %168, %166, %cst_107 {dimension_numbers = #tpu.dot_dimension_numbers<[1], [0], [0], [1], [0, 0, 1, 1], [], []>} : vector<48x16xf32>, vector<16x256xf32>, vector<48x256xf32> -> vector<48x256xf32>
    %170 = arith.addf %161, %169 : vector<48x256xf32>
    %171 = vector.extract_strided_slice %72 {offsets = [0, 0], sizes = [16, 290], strides = [1, 1]} : vector<64x290xf32> to vector<16x290xf32>
    %172 = vector.extract_strided_slice %171 {offsets = [0, 33], sizes = [16, 256], strides = [1, 1]} : vector<16x290xf32> to vector<16x256xf32>
    %c13 = arith.constant 13 : index
    %c0_108 = arith.constant 0 : index
    %c0_109 = arith.constant 0 : index
    %173 = vector.load %arg5[%c13, %c0_108, %c0_109] : memref<16x48x16xf32, #tpu.memory_space<vmem>>, vector<1x48x16xf32>
    %174 = vector.shape_cast %173 : vector<1x48x16xf32> to vector<48x16xf32>
    %cst_110 = arith.constant dense<0.000000e+00> : vector<48x256xf32>
    %175 = tpu.matmul %174, %172, %cst_110 {dimension_numbers = #tpu.dot_dimension_numbers<[1], [0], [0], [1], [0, 0, 1, 1], [], []>} : vector<48x16xf32>, vector<16x256xf32>, vector<48x256xf32> -> vector<48x256xf32>
    %176 = arith.addf %170, %175 : vector<48x256xf32>
    %177 = vector.extract_strided_slice %72 {offsets = [16, 0], sizes = [16, 290], strides = [1, 1]} : vector<64x290xf32> to vector<16x290xf32>
    %178 = vector.extract_strided_slice %177 {offsets = [0, 33], sizes = [16, 256], strides = [1, 1]} : vector<16x290xf32> to vector<16x256xf32>
    %c14 = arith.constant 14 : index
    %c0_111 = arith.constant 0 : index
    %c0_112 = arith.constant 0 : index
    %179 = vector.load %arg5[%c14, %c0_111, %c0_112] : memref<16x48x16xf32, #tpu.memory_space<vmem>>, vector<1x48x16xf32>
    %180 = vector.shape_cast %179 : vector<1x48x16xf32> to vector<48x16xf32>
    %cst_113 = arith.constant dense<0.000000e+00> : vector<48x256xf32>
    %181 = tpu.matmul %180, %178, %cst_113 {dimension_numbers = #tpu.dot_dimension_numbers<[1], [0], [0], [1], [0, 0, 1, 1], [], []>} : vector<48x16xf32>, vector<16x256xf32>, vector<48x256xf32> -> vector<48x256xf32>
    %182 = arith.addf %176, %181 : vector<48x256xf32>
    %183 = vector.extract_strided_slice %72 {offsets = [0, 0], sizes = [16, 290], strides = [1, 1]} : vector<64x290xf32> to vector<16x290xf32>
    %184 = vector.extract_strided_slice %183 {offsets = [0, 34], sizes = [16, 256], strides = [1, 1]} : vector<16x290xf32> to vector<16x256xf32>
    %c8_114 = arith.constant 8 : index
    %c0_115 = arith.constant 0 : index
    %185 = vector.load %arg2[%c8_114, %c0_115] : memref<9x256xf32, #tpu.memory_space<vmem>>, vector<1x256xf32>
    %186 = vector.broadcast %185 : vector<1x256xf32> to vector<16x256xf32>
    %187 = arith.mulf %184, %186 : vector<16x256xf32>
    %c15 = arith.constant 15 : index
    %c0_116 = arith.constant 0 : index
    %c0_117 = arith.constant 0 : index
    %188 = vector.load %arg5[%c15, %c0_116, %c0_117] : memref<16x48x16xf32, #tpu.memory_space<vmem>>, vector<1x48x16xf32>
    %189 = vector.shape_cast %188 : vector<1x48x16xf32> to vector<48x16xf32>
    %cst_118 = arith.constant dense<0.000000e+00> : vector<48x256xf32>
    %190 = tpu.matmul %189, %187, %cst_118 {dimension_numbers = #tpu.dot_dimension_numbers<[1], [0], [0], [1], [0, 0, 1, 1], [], []>} : vector<48x16xf32>, vector<16x256xf32>, vector<48x256xf32> -> vector<48x256xf32>
    %191 = arith.addf %182, %190 : vector<48x256xf32>
    %c0_119 = arith.constant 0 : index
    %c0_120 = arith.constant 0 : index
    %192 = vector.load %arg6[%c0_119, %c0_120] : memref<48x1xf32, #tpu.memory_space<vmem>>, vector<48x1xf32>
    %193 = vector.broadcast %192 : vector<48x1xf32> to vector<48x256xf32>
    %194 = arith.addf %191, %193 : vector<48x256xf32>
    %195 = arith.negf %194 : vector<48x256xf32>
    %196 = math.exp %195 : vector<48x256xf32>
    %cst_121 = arith.constant 1.000000e+00 : f32
    %197 = vector.broadcast %cst_121 : f32 to vector<48x256xf32>
    %198 = arith.addf %197, %196 : vector<48x256xf32>
    %199 = arith.divf %197, %198 : vector<48x256xf32>
    %c0_122 = arith.constant 0 : index
    %c0_123 = arith.constant 0 : index
    %c0_124 = arith.constant 0 : index
    %200 = vector.load %arg7[%c0_122, %c0_123, %c0_124] : memref<1x48x256xf32, #tpu.memory_space<vmem>>, vector<1x48x256xf32>
    %201 = vector.shape_cast %200 : vector<1x48x256xf32> to vector<48x256xf32>
    %202 = vector.shape_cast %199 : vector<48x256xf32> to vector<1x48x256xf32>
    tpu.vector_store %arg7[%c0_122, %c0_123, %c0_124], %202 {strides = array<i32>} : memref<1x48x256xf32, #tpu.memory_space<vmem>>, vector<1x48x256xf32>,
    return
  }
  func.func @transform_0(%arg0: i32) -> (i32, i32, i32) {
    %c0_i32 = arith.constant 0 : i32
    %c0_i32_0 = arith.constant 0 : i32
    %c0_i32_1 = arith.constant 0 : i32
    return %arg0, %c0_i32, %c0_i32_0 : i32, i32, i32
  }
  func.func @transform_1(%arg0: i32) -> (i32, i32) {
    %c0_i32 = arith.constant 0 : i32
    %c0_i32_0 = arith.constant 0 : i32
    %c0_i32_1 = arith.constant 0 : i32
    return %c0_i32, %c0_i32_0 : i32, i32
  }
  func.func @transform_2(%arg0: i32) -> (i32, i32, i32) {
    %c0_i32 = arith.constant 0 : i32
    %c0_i32_0 = arith.constant 0 : i32
    %c0_i32_1 = arith.constant 0 : i32
    %c0_i32_2 = arith.constant 0 : i32
    return %c0_i32, %c0_i32_0, %c0_i32_1 : i32, i32, i32
  }
  func.func @transform_3(%arg0: i32) -> (i32, i32) {
    %c0_i32 = arith.constant 0 : i32
    %c0_i32_0 = arith.constant 0 : i32
    %c0_i32_1 = arith.constant 0 : i32
    return %c0_i32, %c0_i32_0 : i32, i32
  }
  func.func @transform_4(%arg0: i32) -> (i32, i32, i32) {
    %c0_i32 = arith.constant 0 : i32
    %c0_i32_0 = arith.constant 0 : i32
    %c0_i32_1 = arith.constant 0 : i32
    %c0_i32_2 = arith.constant 0 : i32
    return %c0_i32, %c0_i32_0, %c0_i32_1 : i32, i32, i32
  }
  func.func @transform_5(%arg0: i32) -> (i32, i32) {
    %c0_i32 = arith.constant 0 : i32
    %c0_i32_0 = arith.constant 0 : i32
    %c0_i32_1 = arith.constant 0 : i32
    return %c0_i32, %c0_i32_0 : i32, i32
  }
  func.func @transform_6(%arg0: i32) -> (i32, i32, i32) {
    %c0_i32 = arith.constant 0 : i32
    %c0_i32_0 = arith.constant 0 : i32
    %c0_i32_1 = arith.constant 0 : i32
    return %arg0, %c0_i32, %c0_i32_0 : i32, i32, i32
  }
}

</mosaic_0001>

<bundles_post_ra>
// kernel: small_vae_forward.2
= control target key start
LH: loop header
LB: loop body
LE: loop exit
PB: predicated region body
PF: predicated region fallthrough
CT: control target
= control target key end

     0   :  { %8 = vsyncpa [#allocation3], 0  ;;  %s3415_s0 = inlined_call_operand.hbm [shape: f32[2,128], index: 0, kind: input, shape index: {}]   ;;  %s3416_s1 = inlined_call_operand.hbm [shape: f32[128,8192], index: 1, kind: input, shape index: {}]   ;;  %s3417_s2 = inlined_call_operand.hbm [shape: f32[1,8192], index: 2, kind: input, shape index: {}]   ;;  %s3418_s3 = inlined_call_operand.vmem [shape: f32[2,8192], index: 3, kind: output, shape index: {}]  }
   0x1   :  { %9 = vsyncpa [#allocation5], 0 }
   0x2   :  { %11 = vsyncpa [#allocation5 + $0x1], 0  ;;  %s2574_s12 = smov 0   ;;  %s2576_s13 = smov 0  }
   0x3   :  { %s2578_s14 = smov 0   ;;  %s2580_s15 = smov 0  }
   0x4 LB: > { %s2595_s16 = sadd.s32 1, %s2544_s15   ;;  %s45_s17 = sadd.s32 1, %s2540_s14  ;;  %s2544_s15 = sphi %s2580_s15, %s3432_s15   ;;  %s2540_s14 = sphi %s2578_s14, %s3431_s14   ;;  %s2536_s13 = sphi %s2576_s13, %s3430_s13   ;;  %s2532_s12 = sphi %s2574_s12, %s3429_s12  }
   0x5   : > { %s42_s18 = ssub.s32 %s2544_s15, %s2595_s16  ;;  %p52_p0 = scmp.ne.s32.totalorder %s2540_s14, %s2536_s13 }
   0x6   : > { %p43_p1 = scmp.eq.s32.totalorder %s42_s18, 0  ;;  %p53_p2 = scmp.eq.s32.totalorder %s2544_s15, 0 }
   0x7   : > { %p2383_p3 = scmp.lt.s32.totalorder %s2544_s15, 2  ;;  %s145_s20 = sand.u32 1, %s2544_s15  }
   0x8   : > { %s2605_s19 = scalar_select %p43_p1, %s2540_s14, %s45_s17  }
   0x9   : > { %p54_p4 = por %p53_p2, %p52_p0  ;;  %s147_s21 = sand.u32 1, %s2540_s14  }
   0xa   : > { %s2347_s22 = sshll.u32 %s147_s21, 12  ;;  %s2361_s23 = sshll.u32 %s2544_s15, 12 }
   0xb   : > { %s2615_s26 = scalar_lea.hbm %s3416_s1, %s2361_s23  ;;  %s149_s27 = scalar_lea.vmem [#allocation4], %s2347_s22 }
   0xc   : > { %s156_s28 = sshll.u32 %s149_s27, 4  ;;  %p2617_p5 = pnand %p2383_p3, %p54_p4  ;;  %s2621_s28 = int_to_ptr.vmem [resolvable:$true] %s156_s28 }
   0xd   : > { %s2623_s30 = scalar_lea.sflag [#allocation5], %s145_s20  ;;  %s2424_s4 = scalar_lea.hbm %s2615_s26, 65536 }
   0xe   : > { %p2425_p6 = scmp.ne.s32.totalorder %s2615_s26, %s2424_s4  ;;  %p2426_p7 = pneg %p2617_p5 }
   0xf   : > { %s2429_s7 = scalar_lea.hbm %s3416_s1, 131072  ;;  %p2430_p10 = scmp.lt.s32.totalorder %s2615_s26, %s3416_s1 }
  0x10   : > { %p2427_p8 = pnand %p2426_p7, %p2425_p6  ;;  %p2431_p11 = scmp.lt.s32.totalorder %s2429_s7, %s2424_s4 }
  0x12   : > { %p2428_p9 = pneg %p2427_p8  ;;  %p2432_p12 = por %p2431_p11, %p2430_p10 }
  0x14   : > { %p2433_p13 = pnand %p2432_p12, %p2428_p9 }
  0x16   : > { %2436 = shalt.err (!%p2433_p13)
}
  0x17   : > { %s2437_s10 = scalar_lea.vmem %s2621_s28, 65536  ;;  %s2546_s11 = smov [#allocation4]  }
  0x18   : > { %p2438_p0 = scmp.ne.s32.totalorder %s2621_s28, %s2437_s10  ;;  %s2442_s17 = sshll.u32 %s2546_s11, 4  ;;  %s2443_s17 = int_to_ptr.vmem [resolvable:$false] %s2442_s17 }
  0x19   : > { %s2444_s18 = scalar_lea.vmem %s2443_s17, 131072  ;;  %p2445_p3 = scmp.lt.s32.totalorder %s2621_s28, %s2443_s17 }
  0x1a   : > { %p2440_p1 = pnand %p2438_p0, %p2426_p7  ;;  %p2446_p4 = scmp.lt.s32.totalorder %s2444_s18, %s2437_s10 }
  0x1c   : > { %p2441_p2 = pneg %p2440_p1  ;;  %p2447_p6 = por %p2446_p4, %p2445_p3 }
  0x1e   : > { %p2448_p8 = pnand %p2447_p6, %p2441_p2 }
  0x20   : > { %2451 = shalt.err (!%p2448_p8)
}
  0x21   : > { %s2547_s20 = smov 8192   ;;  %s2548_s22 = smov 4096  }
  0x22   : > { %s2549_s23 = smov 256   ;;  %s2651_s24 = sadd.s32 4294967295, %s2544_s15  }
  0x23   : > { %2378 = dma.hbm_to_vmem [thread:$0]  (!%p2617_p5), %s2615_s26, 65536, %s2621_s28, %s2623_s30, %s2547_s20, %s2548_s22, %s2549_s23  }
  0x24   : > { %p58_p9 = scmp.ne.s32.totalorder %s2536_s13, %s2532_s12  ;;  %p3419_p10 = scmp.eq.s32.totalorder %s2651_s24, 0 }
  0x25   : > { %p2344_p11 = scmp.ge.s32.totalorder %s2544_s15, 1  ;;  %p121_p12 = scmp.lt.s32.totalorder %s2544_s15, 3 }
  0x26   : > { %p2660_p13 = por %p3419_p10, %p58_p9  ;;  %s2550_s26 = smov [#allocation2]  }
  0x27   : > { %p2664_p0 = pnand %p2344_p11, %p121_p12  ;;  %s134_s28 = sshll.u32 %s2550_s26, 4  ;;  %s135_s28 = int_to_ptr.vmem [resolvable:$true] %s134_s28 }
  0x28   : > { %s3422_s25 = scalar_select %p2660_p13, 1, 0 }
  0x29   : > { %s2350_s4 = sshll.u32 %s147_s21, 5  ;;  %p2371_p1 = pneg %p2664_p0 }
  0x2a   : > { %s2362_s12 = sshll.u32 %s2544_s15, 9  ;;  %s170_s9 = scalar_lea.vmem [#allocation6], %s2350_s4 }
  0x2b   : > { %p2675_p2 = pnand %p2371_p1, %p3419_p10  ;;  %s2682_s8 = scalar_lea.hbm %s3417_s2, %s2362_s12 }
  0x2c   : > { %s178_s10 = sshll.u32 %s170_s9, 4  ;;  %s2463_s21 = scalar_lea.vmem %s135_s28, 32  ;;  %s2684_s10 = int_to_ptr.vmem [resolvable:$true] %s178_s10 }
  0x2d   : > { %p2454_p3 = pneg %p2675_p2  ;;  %p2464_p4 = scmp.ne.s32.totalorder %s135_s28, %s2463_s21 }
  0x2e   : > { %p2471_p9 = scmp.lt.s32.totalorder %s135_s28, %s135_s28  ;;  %p2472_p11 = scmp.lt.s32.totalorder %s2463_s21, %s2463_s21 }
  0x2f   : > { %p2466_p6 = pnand %p2464_p4, %p2454_p3 }
  0x30   : > { %p2473_p12 = por %p2472_p11, %p2471_p9 }
  0x31   : > { %p2467_p8 = pneg %p2466_p6 }
  0x33   : > { %p2474_p1 = pnand %p2473_p12, %p2467_p8 }
  0x35   : > { %2477 = shalt.err (!%p2474_p1)
}
  0x36   : > { %2374 = dma.hbm_to_vmem [thread:$0]  (!%p2675_p2), %s3415_s0, 32, %s135_s28, [#allocation3]  }
  0x37   : > { %s2478_s17 = scalar_lea.hbm %s2682_s8, 512  ;;  %s2483_s22 = scalar_lea.hbm %s3417_s2, 1024 }
  0x38   : > { %p2479_p10 = scmp.ne.s32.totalorder %s2682_s8, %s2478_s17  ;;  %p2484_p6 = scmp.lt.s32.totalorder %s2682_s8, %s3417_s2 }
  0x39   : > { %p2485_p8 = scmp.lt.s32.totalorder %s2483_s22, %s2478_s17 }
  0x3a   : > { %p2481_p3 = pnand %p2479_p10, %p2426_p7 }
  0x3b   : > { %p2486_p9 = por %p2485_p8, %p2484_p6 }
  0x3c   : > { %p2482_p4 = pneg %p2481_p3 }
  0x3e   : > { %p2487_p11 = pnand %p2486_p9, %p2482_p4 }
  0x40   : > { %2490 = shalt.err (!%p2487_p11)
}
  0x41   : > { %s2491_s28 = scalar_lea.vmem %s2684_s10, 512  ;;  %s2551_s4 = smov [#allocation6]  }
  0x42   : > { %p2492_p2 = scmp.ne.s32.totalorder %s2684_s10, %s2491_s28  ;;  %s2496_s12 = sshll.u32 %s2551_s4, 4  ;;  %s2497_s12 = int_to_ptr.vmem [resolvable:$false] %s2496_s12 }
  0x43   : > { %s2498_s5 = scalar_lea.vmem %s2497_s12, 1024  ;;  %p2499_p1 = scmp.lt.s32.totalorder %s2684_s10, %s2497_s12 }
  0x44   : > { %p2494_p10 = pnand %p2492_p2, %p2426_p7  ;;  %p2500_p3 = scmp.lt.s32.totalorder %s2498_s5, %s2491_s28 }
  0x46   : > { %p2495_p12 = pneg %p2494_p10  ;;  %p2501_p13 = por %p2500_p3, %p2499_p1 }
  0x48   : > { %p2502_p6 = pnand %p2501_p13, %p2495_p12 }
  0x4a   : > { %2505 = shalt.err (!%p2502_p6)
}
  0x4b   : > { %2381 = dma.hbm_to_vmem [thread:$0]  (!%p2617_p5), %s2682_s8, 512, %s2684_s10, %s2623_s30  }
  0x4c   : > { %187 = sbr.rel (%p2664_p0) target bundleno = 563 (0x233), region = 32  ;;  %p3425_p7 = scmp.eq.s32.totalorder (!%p2664_p0), %s2651_s24, 0 }
  0x51   : > { %2523 = dma.done.wait (%p3425_p7), [#allocation3], 32   ;;  %p3426_p4 = pmov %p3425_p7 }
  0x52   : > { %s193_s6 = sand.u32 1, %s2651_s24   ;;  %s195_s7 = sand.u32 1, %s2536_s13  }
  0x53   : > { %2525 = vsyncadd (%p3426_p4), [#allocation3], 4294967264  ;;  %s2355_s29 = sshll.u32 %s195_s7, 12  ;;  %s194_s9 = scalar_lea.sflag [#allocation5], %s193_s6 }
  0x54   : > { %s2726_s21 = scalar_lea.vmem [#allocation4], %s2355_s29  ;;  %p3427_p5 = scmp.ne.s32.totalorder %s3422_s25, 0 }
  0x56   : > { %2527 = dma.done.wait (%p3427_p5), %s194_s9, 66048  }
  0x57   : > { %2529 = vsyncadd (%p3427_p5), %s194_s9, 4294901248  ;;  %v2552_v0 = vmov 0.0   ;;  %v724_v1 = vld [vmem:[%s2726_s21 + $0xf08] sm:$0xff]  ;;  %v726_v2 = vld [vmem:[%s2726_s21 + $0xf18] sm:$0xff]  ;;  %s2356_s30 = sshll.u32 %s195_s7, 5  ;;  %s2357_s27 = sshll.u32 %s2651_s24, 5 }
  0x58   : > { %987 = vmatprep.mubr.f32.mxu0 %v2552_v0  ;;  %1058 = vmatprep.mubr.f32.mxu1 %v2552_v0  ;;  %v723_v3 = vld [vmem:[%s2726_s21 + $0xf00] sm:$0xff]  ;;  %v725_v4 = vld [vmem:[%s2726_s21 + $0xf10] sm:$0xff]  ;;  %v692_v5 = vld [vmem:[%s2726_s21 + $0xe08] sm:$0xff]  ;;  %s3192_s25 = scalar_lea.vmem [#allocation6], %s2356_s30  ;;  %p3216_p13 = scmp.lt.s32.totalorder %s2357_s27, 63 }
  0x59   : > { %923 = vmatprep.subr.mxu0 %v724_v1  ;;  %994 = vmatprep.subr.mxu1 %v726_v2  ;;  %v694_v6 = vld [vmem:[%s2726_s21 + $0xe18] sm:$0xff]  ;;  %v691_v7 = vld [vmem:[%s2726_s21 + $0xe00] sm:$0xff]  ;;  %v693_v8 = vld [vmem:[%s2726_s21 + $0xe10] sm:$0xff] }
  0x5a   : > { %924 = vmatpush1.msra.mxu0 %v723_v3  ;;  %995 = vmatpush1.msra.mxu1 %v725_v4  ;;  %v660_v9 = vld [vmem:[%s2726_s21 + $0xd08] sm:$0xff]  ;;  %v662_v10 = vld [vmem:[%s2726_s21 + $0xd18] sm:$0xff]  ;;  %v659_v11 = vld [vmem:[%s2726_s21 + $0xd00] sm:$0xff]  ;;  %s3434_s27 = smov (!%p3216_p13, %s2357_s27), 63 }
  0x5b   : > { %925 = vmatprep.subr.mxu0 %v692_v5  ;;  %996 = vmatprep.subr.mxu1 %v694_v6  ;;  %v661_v12 = vld [vmem:[%s2726_s21 + $0xd10] sm:$0xff]  ;;  %v628_v13 = vld [vmem:[%s2726_s21 + $0xc08] sm:$0xff]  ;;  %v630_v14 = vld [vmem:[%s2726_s21 + $0xc18] sm:$0xff]  ;;  %s2358_s24 = sshll.u32 %s3434_s27, 1 }
  0x5c   : > { %926 = vmatpush1.msra.mxu0 %v691_v7  ;;  %997 = vmatpush1.msra.mxu1 %v693_v8  ;;  %v627_v15 = vld [vmem:[%s2726_s21 + $0xc00] sm:$0xff]  ;;  %v629_v16 = vld [vmem:[%s2726_s21 + $0xc10] sm:$0xff]  ;;  %v596_v17 = vld [vmem:[%s2726_s21 + $0xb08] sm:$0xff]  ;;  %s3259_s11 = scalar_lea.vmem %s3418_s3, %s2358_s24 }
  0x5d   : > { %927 = vmatprep.subr.mxu0 %v660_v9  ;;  %998 = vmatprep.subr.mxu1 %v662_v10  ;;  %v598_v18 = vld [vmem:[%s2726_s21 + $0xb18] sm:$0xff]  ;;  %v595_v19 = vld [vmem:[%s2726_s21 + $0xb00] sm:$0xff]  ;;  %v597_v20 = vld [vmem:[%s2726_s21 + $0xb10] sm:$0xff] }
  0x5e   : > { %928 = vmatpush1.msra.mxu0 %v659_v11  ;;  %999 = vmatpush1.msra.mxu1 %v661_v12  ;;  %v564_v21 = vld [vmem:[%s2726_s21 + $0xa08] sm:$0xff]  ;;  %v566_v22 = vld [vmem:[%s2726_s21 + $0xa18] sm:$0xff]  ;;  %v563_v23 = vld [vmem:[%s2726_s21 + $0xa00] sm:$0xff] }
  0x5f   : > { %929 = vmatprep.subr.mxu0 %v628_v13  ;;  %1000 = vmatprep.subr.mxu1 %v630_v14  ;;  %v565_v24 = vld [vmem:[%s2726_s21 + $0xa10] sm:$0xff]  ;;  %v532_v25 = vld [vmem:[%s2726_s21 + $0x908] sm:$0xff]  ;;  %v534_v26 = vld [vmem:[%s2726_s21 + $0x918] sm:$0xff] }
  0x60   : > { %930 = vmatpush1.msra.mxu0 %v627_v15  ;;  %1001 = vmatpush1.msra.mxu1 %v629_v16  ;;  %v531_v27 = vld [vmem:[%s2726_s21 + $0x900] sm:$0xff]  ;;  %v533_v28 = vld [vmem:[%s2726_s21 + $0x910] sm:$0xff]  ;;  %v500_v29 = vld [vmem:[%s2726_s21 + $0x808] sm:$0xff] }
  0x61   : > { %931 = vmatprep.subr.mxu0 %v596_v17  ;;  %1002 = vmatprep.subr.mxu1 %v598_v18  ;;  %v502_v30 = vld [vmem:[%s2726_s21 + $0x818] sm:$0xff]  ;;  %v499_v31 = vld [vmem:[%s2726_s21 + $0x800] sm:$0xff]  ;;  %v501_v32 = vld [vmem:[%s2726_s21 + $0x810] sm:$0xff] }
  0x62   : > { %932 = vmatpush1.msra.mxu0 %v595_v19  ;;  %1003 = vmatpush1.msra.mxu1 %v597_v20  ;;  %v468_v33 = vld [vmem:[%s2726_s21 + $0x708] sm:$0xff]  ;;  %v470_v34 = vld [vmem:[%s2726_s21 + $0x718] sm:$0xff]  ;;  %v467_v35 = vld [vmem:[%s2726_s21 + $0x700] sm:$0xff] }
  0x63   : > { %933 = vmatprep.subr.mxu0 %v564_v21  ;;  %1004 = vmatprep.subr.mxu1 %v566_v22  ;;  %v469_v36 = vld [vmem:[%s2726_s21 + $0x710] sm:$0xff]  ;;  %v436_v37 = vld [vmem:[%s2726_s21 + $0x608] sm:$0xff]  ;;  %v438_v38 = vld [vmem:[%s2726_s21 + $0x618] sm:$0xff] }
  0x64   : > { %934 = vmatpush1.msra.mxu0 %v563_v23  ;;  %1005 = vmatpush1.msra.mxu1 %v565_v24  ;;  %v435_v39 = vld [vmem:[%s2726_s21 + $0x600] sm:$0xff]  ;;  %v437_v40 = vld [vmem:[%s2726_s21 + $0x610] sm:$0xff]  ;;  %v404_v41 = vld [vmem:[%s2726_s21 + $0x508] sm:$0xff] }
  0x65   : > { %935 = vmatprep.subr.mxu0 %v532_v25  ;;  %1006 = vmatprep.subr.mxu1 %v534_v26  ;;  %v406_v42 = vld [vmem:[%s2726_s21 + $0x518] sm:$0xff]  ;;  %v403_v43 = vld [vmem:[%s2726_s21 + $0x500] sm:$0xff]  ;;  %v405_v44 = vld [vmem:[%s2726_s21 + $0x510] sm:$0xff] }
  0x66   : > { %936 = vmatpush1.msra.mxu0 %v531_v27  ;;  %1007 = vmatpush1.msra.mxu1 %v533_v28  ;;  %v372_v45 = vld [vmem:[%s2726_s21 + $0x408] sm:$0xff]  ;;  %v374_v46 = vld [vmem:[%s2726_s21 + $0x418] sm:$0xff]  ;;  %v371_v47 = vld [vmem:[%s2726_s21 + $0x400] sm:$0xff] }
  0x67   : > { %937 = vmatprep.subr.mxu0 %v500_v29  ;;  %1008 = vmatprep.subr.mxu1 %v502_v30  ;;  %v373_v48 = vld [vmem:[%s2726_s21 + $0x410] sm:$0xff]  ;;  %v340_v49 = vld [vmem:[%s2726_s21 + $0x308] sm:$0xff]  ;;  %v342_v50 = vld [vmem:[%s2726_s21 + $0x318] sm:$0xff] }
  0x68   : > { %938 = vmatpush1.msra.mxu0 %v499_v31  ;;  %1009 = vmatpush1.msra.mxu1 %v501_v32  ;;  %v339_v51 = vld [vmem:[%s2726_s21 + $0x300] sm:$0xff]  ;;  %v341_v52 = vld [vmem:[%s2726_s21 + $0x310] sm:$0xff]  ;;  %v308_v53 = vld [vmem:[%s2726_s21 + $0x208] sm:$0xff] }
  0x69   : > { %939 = vmatprep.subr.mxu0 %v468_v33  ;;  %1010 = vmatprep.subr.mxu1 %v470_v34  ;;  %v310_v54 = vld [vmem:[%s2726_s21 + $0x218] sm:$0xff]  ;;  %v307_v55 = vld [vmem:[%s2726_s21 + $0x200] sm:$0xff]  ;;  %v309_v56 = vld [vmem:[%s2726_s21 + $0x210] sm:$0xff] }
  0x6a   : > { %940 = vmatpush1.msra.mxu0 %v467_v35  ;;  %1011 = vmatpush1.msra.mxu1 %v469_v36  ;;  %v276_v57 = vld [vmem:[%s2726_s21 + $0x108] sm:$0xff]  ;;  %v278_v58 = vld [vmem:[%s2726_s21 + $0x118] sm:$0xff]  ;;  %v275_v59 = vld [vmem:[%s2726_s21 + $0x100] sm:$0xff] }
  0x6b   : > { %941 = vmatprep.subr.mxu0 %v436_v37  ;;  %1012 = vmatprep.subr.mxu1 %v438_v38  ;;  %v277_v60 = vld [vmem:[%s2726_s21 + $0x110] sm:$0xff]  ;;  %v244_v61 = vld [vmem:[%s2726_s21 + $0x8] sm:$0xff]  ;;  %v246_v62 = vld [vmem:[%s2726_s21 + $0x18] sm:$0xff] }
  0x6c   : > { %942 = vmatpush1.msra.mxu0 %v435_v39  ;;  %1013 = vmatpush1.msra.mxu1 %v437_v40  ;;  %v243_v63 = vld [vmem:[%s2726_s21] sm:$0xff]  ;;  %v245_v1 = vld [vmem:[%s2726_s21 + $0x10] sm:$0xff]  ;;  %v2798_v2 = vld [vmem:[#allocation2] sm:$0x3] }
  0x6d   : > { %943 = vmatprep.subr.mxu0 %v404_v41  ;;  %1014 = vmatprep.subr.mxu1 %v406_v42  ;;  %v728_v3 = vld [vmem:[%s2726_s21 + $0xf28] sm:$0xff]  ;;  %v730_v4 = vld [vmem:[%s2726_s21 + $0xf38] sm:$0xff]  ;;  %v727_v5 = vld [vmem:[%s2726_s21 + $0xf20] sm:$0xff] }
  0x6e   : > { %944 = vmatpush1.msra.mxu0 %v403_v43  ;;  %1015 = vmatpush1.msra.mxu1 %v405_v44  ;;  %v729_v6 = vld [vmem:[%s2726_s21 + $0xf30] sm:$0xff]  ;;  %v696_v7 = vld [vmem:[%s2726_s21 + $0xe28] sm:$0xff]  ;;  %v698_v8 = vld [vmem:[%s2726_s21 + $0xe38] sm:$0xff] }
  0x6f   : > { %945 = vmatprep.subr.mxu0 %v372_v45  ;;  %1016 = vmatprep.subr.mxu1 %v374_v46  ;;  %v695_v9 = vld [vmem:[%s2726_s21 + $0xe20] sm:$0xff]  ;;  %v697_v10 = vld [vmem:[%s2726_s21 + $0xe30] sm:$0xff]  ;;  %v664_v11 = vld [vmem:[%s2726_s21 + $0xd28] sm:$0xff] }
  0x70   : > { %946 = vmatpush1.msra.mxu0 %v371_v47  ;;  %1017 = vmatpush1.msra.mxu1 %v373_v48  ;;  %v666_v12 = vld [vmem:[%s2726_s21 + $0xd38] sm:$0xff]  ;;  %v663_v13 = vld [vmem:[%s2726_s21 + $0xd20] sm:$0xff]  ;;  %v665_v14 = vld [vmem:[%s2726_s21 + $0xd30] sm:$0xff] }
  0x71   : > { %947 = vmatprep.subr.mxu0 %v340_v49  ;;  %1018 = vmatprep.subr.mxu1 %v342_v50  ;;  %v632_v15 = vld [vmem:[%s2726_s21 + $0xc28] sm:$0xff]  ;;  %v634_v16 = vld [vmem:[%s2726_s21 + $0xc38] sm:$0xff]  ;;  %v631_v17 = vld [vmem:[%s2726_s21 + $0xc20] sm:$0xff] }
  0x72   : > { %948 = vmatpush1.msra.mxu0 %v339_v51  ;;  %1019 = vmatpush1.msra.mxu1 %v341_v52  ;;  %v633_v18 = vld [vmem:[%s2726_s21 + $0xc30] sm:$0xff]  ;;  %v600_v19 = vld [vmem:[%s2726_s21 + $0xb28] sm:$0xff]  ;;  %v602_v20 = vld [vmem:[%s2726_s21 + $0xb38] sm:$0xff] }
  0x73   : > { %949 = vmatprep.subr.mxu0 %v308_v53  ;;  %1020 = vmatprep.subr.mxu1 %v310_v54  ;;  %v599_v21 = vld [vmem:[%s2726_s21 + $0xb20] sm:$0xff]  ;;  %v601_v22 = vld [vmem:[%s2726_s21 + $0xb30] sm:$0xff]  ;;  %v568_v23 = vld [vmem:[%s2726_s21 + $0xa28] sm:$0xff] }
  0x74   : > { %950 = vmatpush1.msra.mxu0 %v307_v55  ;;  %1021 = vmatpush1.msra.mxu1 %v309_v56  ;;  %v570_v24 = vld [vmem:[%s2726_s21 + $0xa38] sm:$0xff]  ;;  %v567_v25 = vld [vmem:[%s2726_s21 + $0xa20] sm:$0xff]  ;;  %v569_v26 = vld [vmem:[%s2726_s21 + $0xa30] sm:$0xff] }
  0x75   : > { %951 = vmatprep.subr.mxu0 %v276_v57  ;;  %1022 = vmatprep.subr.mxu1 %v278_v58  ;;  %v536_v27 = vld [vmem:[%s2726_s21 + $0x928] sm:$0xff]  ;;  %v538_v28 = vld [vmem:[%s2726_s21 + $0x938] sm:$0xff]  ;;  %v535_v29 = vld [vmem:[%s2726_s21 + $0x920] sm:$0xff] }
  0x76   : > { %952 = vmatpush1.msra.mxu0 %v275_v59  ;;  %1023 = vmatpush1.msra.mxu1 %v277_v60  ;;  %v537_v30 = vld [vmem:[%s2726_s21 + $0x930] sm:$0xff]  ;;  %v504_v31 = vld [vmem:[%s2726_s21 + $0x828] sm:$0xff]  ;;  %v506_v32 = vld [vmem:[%s2726_s21 + $0x838] sm:$0xff] }
  0x77   : > { %953 = vmatprep.subr.mxu0 %v244_v61  ;;  %1024 = vmatprep.subr.mxu1 %v246_v62  ;;  %v503_v33 = vld [vmem:[%s2726_s21 + $0x820] sm:$0xff]  ;;  %v505_v34 = vld [vmem:[%s2726_s21 + $0x830] sm:$0xff]  ;;  %v472_v35 = vld [vmem:[%s2726_s21 + $0x728] sm:$0xff] }
  0x78   : > { %954 = vmatpush1.msra.mxu0 %v243_v63  ;;  %1025 = vmatpush1.msra.mxu1 %v245_v1  ;;  %v474_v36 = vld [vmem:[%s2726_s21 + $0x738] sm:$0xff]  ;;  %v471_v37 = vld [vmem:[%s2726_s21 + $0x720] sm:$0xff]  ;;  %v473_v38 = vld [vmem:[%s2726_s21 + $0x730] sm:$0xff] }
  0x79   : > { %988 = vmatmul.mubr.f32.vlgmr.msra.gmra.mxu0 %v2798_v2  ;;  %1059 = vmatmul.mubr.f32.vlgmr.msra.gmra.mxu1 %v2798_v2  ;;  %v440_v39 = vld [vmem:[%s2726_s21 + $0x628] sm:$0xff]  ;;  %v442_v40 = vld [vmem:[%s2726_s21 + $0x638] sm:$0xff]  ;;  %v439_v41 = vld [vmem:[%s2726_s21 + $0x620] sm:$0xff] }
  0x7a   : > { %1065 = vmatprep.subr.mxu0 %v728_v3  ;;  %1136 = vmatprep.subr.mxu1 %v730_v4  ;;  %v441_v42 = vld [vmem:[%s2726_s21 + $0x630] sm:$0xff]  ;;  %v408_v43 = vld [vmem:[%s2726_s21 + $0x528] sm:$0xff]  ;;  %v410_v44 = vld [vmem:[%s2726_s21 + $0x538] sm:$0xff] }
  0x7b   : > { %1066 = vmatpush1.msra.mxu0 %v727_v5  ;;  %1137 = vmatpush1.msra.mxu1 %v729_v6  ;;  %v407_v45 = vld [vmem:[%s2726_s21 + $0x520] sm:$0xff]  ;;  %v409_v46 = vld [vmem:[%s2726_s21 + $0x530] sm:$0xff]  ;;  %v376_v47 = vld [vmem:[%s2726_s21 + $0x428] sm:$0xff] }
  0x7c   : > { %1067 = vmatprep.subr.mxu0 %v696_v7  ;;  %1138 = vmatprep.subr.mxu1 %v698_v8  ;;  %v378_v48 = vld [vmem:[%s2726_s21 + $0x438] sm:$0xff]  ;;  %v375_v49 = vld [vmem:[%s2726_s21 + $0x420] sm:$0xff]  ;;  %v377_v50 = vld [vmem:[%s2726_s21 + $0x430] sm:$0xff] }
  0x7d   : > { %1068 = vmatpush1.msra.mxu0 %v695_v9  ;;  %1139 = vmatpush1.msra.mxu1 %v697_v10  ;;  %v344_v51 = vld [vmem:[%s2726_s21 + $0x328] sm:$0xff]  ;;  %v346_v52 = vld [vmem:[%s2726_s21 + $0x338] sm:$0xff]  ;;  %v343_v53 = vld [vmem:[%s2726_s21 + $0x320] sm:$0xff] }
  0x7e   : > { %1069 = vmatprep.subr.mxu0 %v664_v11  ;;  %1140 = vmatprep.subr.mxu1 %v666_v12  ;;  %v345_v54 = vld [vmem:[%s2726_s21 + $0x330] sm:$0xff]  ;;  %v312_v55 = vld [vmem:[%s2726_s21 + $0x228] sm:$0xff]  ;;  %v314_v56 = vld [vmem:[%s2726_s21 + $0x238] sm:$0xff] }
  0x7f   : > { %1070 = vmatpush1.msra.mxu0 %v663_v13  ;;  %1141 = vmatpush1.msra.mxu1 %v665_v14  ;;  %v311_v57 = vld [vmem:[%s2726_s21 + $0x220] sm:$0xff]  ;;  %v313_v58 = vld [vmem:[%s2726_s21 + $0x230] sm:$0xff]  ;;  %v280_v59 = vld [vmem:[%s2726_s21 + $0x128] sm:$0xff] }
  0x80   : > { %1071 = vmatprep.subr.mxu0 %v632_v15  ;;  %1142 = vmatprep.subr.mxu1 %v634_v16  ;;  %v282_v60 = vld [vmem:[%s2726_s21 + $0x138] sm:$0xff]  ;;  %v279_v61 = vld [vmem:[%s2726_s21 + $0x120] sm:$0xff]  ;;  %v281_v62 = vld [vmem:[%s2726_s21 + $0x130] sm:$0xff] }
  0x81   : > { %1072 = vmatpush1.msra.mxu0 %v631_v17  ;;  %1143 = vmatpush1.msra.mxu1 %v633_v18  ;;  %v248_v63 = vld [vmem:[%s2726_s21 + $0x28] sm:$0xff]  ;;  %v250_v1 = vld [vmem:[%s2726_s21 + $0x38] sm:$0xff]  ;;  %v247_v3 = vld [vmem:[%s2726_s21 + $0x20] sm:$0xff] }
  0x82   : > { %1073 = vmatprep.subr.mxu0 %v600_v19  ;;  %1144 = vmatprep.subr.mxu1 %v602_v20  ;;  %v249_v4 = vld [vmem:[%s2726_s21 + $0x30] sm:$0xff]  ;;  %v732_v5 = vld [vmem:[%s2726_s21 + $0xf48] sm:$0xff]  ;;  %v734_v6 = vld [vmem:[%s2726_s21 + $0xf58] sm:$0xff] }
  0x83   : > { %1074 = vmatpush1.msra.mxu0 %v599_v21  ;;  %1145 = vmatpush1.msra.mxu1 %v601_v22  ;;  %v731_v7 = vld [vmem:[%s2726_s21 + $0xf40] sm:$0xff]  ;;  %v733_v8 = vld [vmem:[%s2726_s21 + $0xf50] sm:$0xff]  ;;  %v700_v9 = vld [vmem:[%s2726_s21 + $0xe48] sm:$0xff] }
  0x84   : > { %1075 = vmatprep.subr.mxu0 %v568_v23  ;;  %1146 = vmatprep.subr.mxu1 %v570_v24  ;;  %v702_v10 = vld [vmem:[%s2726_s21 + $0xe58] sm:$0xff]  ;;  %v699_v11 = vld [vmem:[%s2726_s21 + $0xe40] sm:$0xff]  ;;  %v701_v12 = vld [vmem:[%s2726_s21 + $0xe50] sm:$0xff] }
  0x85   : > { %1076 = vmatpush1.msra.mxu0 %v567_v25  ;;  %1147 = vmatpush1.msra.mxu1 %v569_v26  ;;  %v668_v13 = vld [vmem:[%s2726_s21 + $0xd48] sm:$0xff]  ;;  %v670_v14 = vld [vmem:[%s2726_s21 + $0xd58] sm:$0xff]  ;;  %v667_v15 = vld [vmem:[%s2726_s21 + $0xd40] sm:$0xff] }
  0x86   : > { %1077 = vmatprep.subr.mxu0 %v536_v27  ;;  %1148 = vmatprep.subr.mxu1 %v538_v28  ;;  %v669_v16 = vld [vmem:[%s2726_s21 + $0xd50] sm:$0xff]  ;;  %v636_v17 = vld [vmem:[%s2726_s21 + $0xc48] sm:$0xff]  ;;  %v638_v18 = vld [vmem:[%s2726_s21 + $0xc58] sm:$0xff] }
  0x87   : > { %1078 = vmatpush1.msra.mxu0 %v535_v29  ;;  %1149 = vmatpush1.msra.mxu1 %v537_v30  ;;  %v635_v19 = vld [vmem:[%s2726_s21 + $0xc40] sm:$0xff]  ;;  %v637_v20 = vld [vmem:[%s2726_s21 + $0xc50] sm:$0xff]  ;;  %v604_v21 = vld [vmem:[%s2726_s21 + $0xb48] sm:$0xff] }
  0x88   : > { %1079 = vmatprep.subr.mxu0 %v504_v31  ;;  %1150 = vmatprep.subr.mxu1 %v506_v32  ;;  %v606_v22 = vld [vmem:[%s2726_s21 + $0xb58] sm:$0xff]  ;;  %v603_v23 = vld [vmem:[%s2726_s21 + $0xb40] sm:$0xff]  ;;  %v605_v24 = vld [vmem:[%s2726_s21 + $0xb50] sm:$0xff] }
  0x89   : > { %1080 = vmatpush1.msra.mxu0 %v503_v33  ;;  %1151 = vmatpush1.msra.mxu1 %v505_v34  ;;  %v572_v25 = vld [vmem:[%s2726_s21 + $0xa48] sm:$0xff]  ;;  %v574_v26 = vld [vmem:[%s2726_s21 + $0xa58] sm:$0xff]  ;;  %v571_v27 = vld [vmem:[%s2726_s21 + $0xa40] sm:$0xff] }
  0x8a   : > { %1081 = vmatprep.subr.mxu0 %v472_v35  ;;  %1152 = vmatprep.subr.mxu1 %v474_v36  ;;  %v573_v28 = vld [vmem:[%s2726_s21 + $0xa50] sm:$0xff]  ;;  %v540_v29 = vld [vmem:[%s2726_s21 + $0x948] sm:$0xff]  ;;  %v542_v30 = vld [vmem:[%s2726_s21 + $0x958] sm:$0xff] }
  0x8b   : > { %1082 = vmatpush1.msra.mxu0 %v471_v37  ;;  %1153 = vmatpush1.msra.mxu1 %v473_v38  ;;  %v539_v31 = vld [vmem:[%s2726_s21 + $0x940] sm:$0xff]  ;;  %v541_v32 = vld [vmem:[%s2726_s21 + $0x950] sm:$0xff]  ;;  %v508_v33 = vld [vmem:[%s2726_s21 + $0x848] sm:$0xff] }
  0x8c   : > { %1083 = vmatprep.subr.mxu0 %v440_v39  ;;  %1154 = vmatprep.subr.mxu1 %v442_v40  ;;  %v510_v34 = vld [vmem:[%s2726_s21 + $0x858] sm:$0xff]  ;;  %v507_v35 = vld [vmem:[%s2726_s21 + $0x840] sm:$0xff]  ;;  %v509_v36 = vld [vmem:[%s2726_s21 + $0x850] sm:$0xff] }
  0x8d   : > { %1084 = vmatpush1.msra.mxu0 %v439_v41  ;;  %1155 = vmatpush1.msra.mxu1 %v441_v42  ;;  %v476_v37 = vld [vmem:[%s2726_s21 + $0x748] sm:$0xff]  ;;  %v478_v38 = vld [vmem:[%s2726_s21 + $0x758] sm:$0xff]  ;;  %v475_v39 = vld [vmem:[%s2726_s21 + $0x740] sm:$0xff] }
  0x8e   : > { %1085 = vmatprep.subr.mxu0 %v408_v43  ;;  %1156 = vmatprep.subr.mxu1 %v410_v44  ;;  %v477_v40 = vld [vmem:[%s2726_s21 + $0x750] sm:$0xff]  ;;  %v444_v41 = vld [vmem:[%s2726_s21 + $0x648] sm:$0xff]  ;;  %v446_v42 = vld [vmem:[%s2726_s21 + $0x658] sm:$0xff] }
  0x8f   : > { %1086 = vmatpush1.msra.mxu0 %v407_v45  ;;  %1157 = vmatpush1.msra.mxu1 %v409_v46  ;;  %v443_v43 = vld [vmem:[%s2726_s21 + $0x640] sm:$0xff]  ;;  %v445_v44 = vld [vmem:[%s2726_s21 + $0x650] sm:$0xff]  ;;  %v412_v45 = vld [vmem:[%s2726_s21 + $0x548] sm:$0xff] }
  0x90   : > { %1087 = vmatprep.subr.mxu0 %v376_v47  ;;  %1158 = vmatprep.subr.mxu1 %v378_v48  ;;  %v414_v46 = vld [vmem:[%s2726_s21 + $0x558] sm:$0xff]  ;;  %v411_v47 = vld [vmem:[%s2726_s21 + $0x540] sm:$0xff]  ;;  %v413_v48 = vld [vmem:[%s2726_s21 + $0x550] sm:$0xff] }
  0x91   : > { %1088 = vmatpush1.msra.mxu0 %v375_v49  ;;  %1159 = vmatpush1.msra.mxu1 %v377_v50  ;;  %v380_v49 = vld [vmem:[%s2726_s21 + $0x448] sm:$0xff]  ;;  %v382_v50 = vld [vmem:[%s2726_s21 + $0x458] sm:$0xff] }
  0x92   : > { %1089 = vmatprep.subr.mxu0 %v344_v51  ;;  %1160 = vmatprep.subr.mxu1 %v346_v52  ;;  %v379_v51 = vld [vmem:[%s2726_s21 + $0x440] sm:$0xff]  ;;  %v381_v52 = vld [vmem:[%s2726_s21 + $0x450] sm:$0xff] }
  0x93   : > { %1090 = vmatpush1.msra.mxu0 %v343_v53  ;;  %1161 = vmatpush1.msra.mxu1 %v345_v54  ;;  %v348_v53 = vld [vmem:[%s2726_s21 + $0x348] sm:$0xff]  ;;  %v350_v54 = vld [vmem:[%s2726_s21 + $0x358] sm:$0xff] }
  0x94   : > { %1091 = vmatprep.subr.mxu0 %v312_v55  ;;  %1162 = vmatprep.subr.mxu1 %v314_v56  ;;  %v347_v55 = vld [vmem:[%s2726_s21 + $0x340] sm:$0xff]  ;;  %v349_v56 = vld [vmem:[%s2726_s21 + $0x350] sm:$0xff] }
  0x95   : > { %1092 = vmatpush1.msra.mxu0 %v311_v57  ;;  %1163 = vmatpush1.msra.mxu1 %v313_v58  ;;  %v316_v57 = vld [vmem:[%s2726_s21 + $0x248] sm:$0xff]  ;;  %v318_v58 = vld [vmem:[%s2726_s21 + $0x258] sm:$0xff] }
  0x96   : > { %1093 = vmatprep.subr.mxu0 %v280_v59  ;;  %1164 = vmatprep.subr.mxu1 %v282_v60  ;;  %v315_v59 = vld [vmem:[%s2726_s21 + $0x240] sm:$0xff]  ;;  %v317_v60 = vld [vmem:[%s2726_s21 + $0x250] sm:$0xff] }
  0x97   : > { %1094 = vmatpush1.msra.mxu0 %v279_v61  ;;  %1165 = vmatpush1.msra.mxu1 %v281_v62  ;;  %v284_v61 = vld [vmem:[%s2726_s21 + $0x148] sm:$0xff]  ;;  %v286_v62 = vld [vmem:[%s2726_s21 + $0x158] sm:$0xff] }
  0x98   : > { %1095 = vmatprep.subr.mxu0 %v248_v63  ;;  %1166 = vmatprep.subr.mxu1 %v250_v1  ;;  %v283_v63 = vld [vmem:[%s2726_s21 + $0x140] sm:$0xff]  ;;  %v285_v1 = vld [vmem:[%s2726_s21 + $0x150] sm:$0xff] }
  0x99   : > { %1096 = vmatpush1.msra.mxu0 %v247_v3  ;;  %1129 = vmatprep.mubr.f32.mxu0 %v2552_v0  ;;  %v252_v3 = vld [vmem:[%s2726_s21 + $0x48] sm:$0xff] }
  0x9a   : > { %1167 = vmatpush1.msra.mxu1 %v249_v4  ;;  %1200 = vmatprep.mubr.f32.mxu1 %v2552_v0  ;;  %v254_v4 = vld [vmem:[%s2726_s21 + $0x58] sm:$0xff] }
  0x9b   : > { %1130 = vmatmul.mubr.f32.vlgmr.msra.gmra.mxu0 %v2798_v2  ;;  %1201 = vmatmul.mubr.f32.vlgmr.msra.gmra.mxu1 %v2798_v2 }
  0x9c   : > { %1207 = vmatprep.subr.mxu0 %v732_v5  ;;  %1278 = vmatprep.subr.mxu1 %v734_v6  ;;  %v251_v5 = vld [vmem:[%s2726_s21 + $0x40] sm:$0xff]  ;;  %v253_v6 = vld [vmem:[%s2726_s21 + $0x50] sm:$0xff] }
  0x9d   : > { %1208 = vmatpush1.msra.mxu0 %v731_v7  ;;  %1279 = vmatpush1.msra.mxu1 %v733_v8  ;;  %v736_v7 = vld [vmem:[%s2726_s21 + $0xf68] sm:$0xff]  ;;  %v738_v8 = vld [vmem:[%s2726_s21 + $0xf78] sm:$0xff] }
  0x9e   : > { %1209 = vmatprep.subr.mxu0 %v700_v9  ;;  %1280 = vmatprep.subr.mxu1 %v702_v10  ;;  %v735_v9 = vld [vmem:[%s2726_s21 + $0xf60] sm:$0xff]  ;;  %v737_v10 = vld [vmem:[%s2726_s21 + $0xf70] sm:$0xff] }
  0x9f   : > { %1210 = vmatpush1.msra.mxu0 %v699_v11  ;;  %1281 = vmatpush1.msra.mxu1 %v701_v12  ;;  %v704_v11 = vld [vmem:[%s2726_s21 + $0xe68] sm:$0xff]  ;;  %v706_v12 = vld [vmem:[%s2726_s21 + $0xe78] sm:$0xff] }
  0xa0   : > { %1211 = vmatprep.subr.mxu0 %v668_v13  ;;  %1282 = vmatprep.subr.mxu1 %v670_v14  ;;  %v703_v13 = vld [vmem:[%s2726_s21 + $0xe60] sm:$0xff]  ;;  %v705_v14 = vld [vmem:[%s2726_s21 + $0xe70] sm:$0xff] }
  0xa1   : > { %1212 = vmatpush1.msra.mxu0 %v667_v15  ;;  %1283 = vmatpush1.msra.mxu1 %v669_v16  ;;  %v672_v15 = vld [vmem:[%s2726_s21 + $0xd68] sm:$0xff]  ;;  %v674_v16 = vld [vmem:[%s2726_s21 + $0xd78] sm:$0xff] }
  0xa2   : > { %1213 = vmatprep.subr.mxu0 %v636_v17  ;;  %1284 = vmatprep.subr.mxu1 %v638_v18  ;;  %v671_v17 = vld [vmem:[%s2726_s21 + $0xd60] sm:$0xff]  ;;  %v673_v18 = vld [vmem:[%s2726_s21 + $0xd70] sm:$0xff] }
  0xa3   : > { %1214 = vmatpush1.msra.mxu0 %v635_v19  ;;  %1285 = vmatpush1.msra.mxu1 %v637_v20  ;;  %v640_v19 = vld [vmem:[%s2726_s21 + $0xc68] sm:$0xff]  ;;  %v642_v20 = vld [vmem:[%s2726_s21 + $0xc78] sm:$0xff] }
  0xa4   : > { %1215 = vmatprep.subr.mxu0 %v604_v21  ;;  %1286 = vmatprep.subr.mxu1 %v606_v22  ;;  %v639_v21 = vld [vmem:[%s2726_s21 + $0xc60] sm:$0xff]  ;;  %v641_v22 = vld [vmem:[%s2726_s21 + $0xc70] sm:$0xff] }
  0xa5   : > { %1216 = vmatpush1.msra.mxu0 %v603_v23  ;;  %1287 = vmatpush1.msra.mxu1 %v605_v24  ;;  %v608_v23 = vld [vmem:[%s2726_s21 + $0xb68] sm:$0xff]  ;;  %v610_v24 = vld [vmem:[%s2726_s21 + $0xb78] sm:$0xff] }
  0xa6   : > { %1217 = vmatprep.subr.mxu0 %v572_v25  ;;  %1288 = vmatprep.subr.mxu1 %v574_v26  ;;  %v607_v25 = vld [vmem:[%s2726_s21 + $0xb60] sm:$0xff]  ;;  %v609_v26 = vld [vmem:[%s2726_s21 + $0xb70] sm:$0xff] }
  0xa7   : > { %1218 = vmatpush1.msra.mxu0 %v571_v27  ;;  %1289 = vmatpush1.msra.mxu1 %v573_v28  ;;  %v576_v27 = vld [vmem:[%s2726_s21 + $0xa68] sm:$0xff]  ;;  %v578_v28 = vld [vmem:[%s2726_s21 + $0xa78] sm:$0xff] }
  0xa8   : > { %1219 = vmatprep.subr.mxu0 %v540_v29  ;;  %1290 = vmatprep.subr.mxu1 %v542_v30  ;;  %v575_v29 = vld [vmem:[%s2726_s21 + $0xa60] sm:$0xff]  ;;  %v577_v30 = vld [vmem:[%s2726_s21 + $0xa70] sm:$0xff] }
  0xa9   : > { %1220 = vmatpush1.msra.mxu0 %v539_v31  ;;  %1291 = vmatpush1.msra.mxu1 %v541_v32  ;;  %v544_v31 = vld [vmem:[%s2726_s21 + $0x968] sm:$0xff]  ;;  %v546_v32 = vld [vmem:[%s2726_s21 + $0x978] sm:$0xff] }
  0xaa   : > { %1221 = vmatprep.subr.mxu0 %v508_v33  ;;  %1292 = vmatprep.subr.mxu1 %v510_v34  ;;  %v543_v33 = vld [vmem:[%s2726_s21 + $0x960] sm:$0xff]  ;;  %v545_v34 = vld [vmem:[%s2726_s21 + $0x970] sm:$0xff] }
  0xab   : > { %1222 = vmatpush1.msra.mxu0 %v507_v35  ;;  %1293 = vmatpush1.msra.mxu1 %v509_v36  ;;  %v512_v35 = vld [vmem:[%s2726_s21 + $0x868] sm:$0xff]  ;;  %v514_v36 = vld [vmem:[%s2726_s21 + $0x878] sm:$0xff] }
  0xac   : > { %1223 = vmatprep.subr.mxu0 %v476_v37  ;;  %1294 = vmatprep.subr.mxu1 %v478_v38  ;;  %v511_v37 = vld [vmem:[%s2726_s21 + $0x860] sm:$0xff]  ;;  %v513_v38 = vld [vmem:[%s2726_s21 + $0x870] sm:$0xff] }
  0xad   : > { %1224 = vmatpush1.msra.mxu0 %v475_v39  ;;  %1295 = vmatpush1.msra.mxu1 %v477_v40  ;;  %v480_v39 = vld [vmem:[%s2726_s21 + $0x768] sm:$0xff]  ;;  %v482_v40 = vld [vmem:[%s2726_s21 + $0x778] sm:$0xff] }
  0xae   : > { %1225 = vmatprep.subr.mxu0 %v444_v41  ;;  %1296 = vmatprep.subr.mxu1 %v446_v42  ;;  %v479_v41 = vld [vmem:[%s2726_s21 + $0x760] sm:$0xff]  ;;  %v481_v42 = vld [vmem:[%s2726_s21 + $0x770] sm:$0xff] }
  0xaf   : > { %1226 = vmatpush1.msra.mxu0 %v443_v43  ;;  %1297 = vmatpush1.msra.mxu1 %v445_v44  ;;  %v448_v43 = vld [vmem:[%s2726_s21 + $0x668] sm:$0xff]  ;;  %v450_v44 = vld [vmem:[%s2726_s21 + $0x678] sm:$0xff] }
  0xb0   : > { %1227 = vmatprep.subr.mxu0 %v412_v45  ;;  %1298 = vmatprep.subr.mxu1 %v414_v46  ;;  %v447_v45 = vld [vmem:[%s2726_s21 + $0x660] sm:$0xff]  ;;  %v449_v46 = vld [vmem:[%s2726_s21 + $0x670] sm:$0xff] }
  0xb1   : > { %1228 = vmatpush1.msra.mxu0 %v411_v47  ;;  %1299 = vmatpush1.msra.mxu1 %v413_v48  ;;  %v416_v47 = vld [vmem:[%s2726_s21 + $0x568] sm:$0xff]  ;;  %v418_v48 = vld [vmem:[%s2726_s21 + $0x578] sm:$0xff] }
  0xb2   : > { %1229 = vmatprep.subr.mxu0 %v380_v49  ;;  %1300 = vmatprep.subr.mxu1 %v382_v50  ;;  %v415_v49 = vld [vmem:[%s2726_s21 + $0x560] sm:$0xff]  ;;  %v417_v50 = vld [vmem:[%s2726_s21 + $0x570] sm:$0xff] }
  0xb3   : > { %1230 = vmatpush1.msra.mxu0 %v379_v51  ;;  %1301 = vmatpush1.msra.mxu1 %v381_v52  ;;  %v384_v51 = vld [vmem:[%s2726_s21 + $0x468] sm:$0xff]  ;;  %v386_v52 = vld [vmem:[%s2726_s21 + $0x478] sm:$0xff] }
  0xb4   : > { %1231 = vmatprep.subr.mxu0 %v348_v53  ;;  %1302 = vmatprep.subr.mxu1 %v350_v54  ;;  %v383_v53 = vld [vmem:[%s2726_s21 + $0x460] sm:$0xff]  ;;  %v385_v54 = vld [vmem:[%s2726_s21 + $0x470] sm:$0xff] }
  0xb5   : > { %1232 = vmatpush1.msra.mxu0 %v347_v55  ;;  %1303 = vmatpush1.msra.mxu1 %v349_v56  ;;  %v352_v55 = vld [vmem:[%s2726_s21 + $0x368] sm:$0xff]  ;;  %v354_v56 = vld [vmem:[%s2726_s21 + $0x378] sm:$0xff] }
  0xb6   : > { %1233 = vmatprep.subr.mxu0 %v316_v57  ;;  %1304 = vmatprep.subr.mxu1 %v318_v58  ;;  %v351_v57 = vld [vmem:[%s2726_s21 + $0x360] sm:$0xff]  ;;  %v353_v58 = vld [vmem:[%s2726_s21 + $0x370] sm:$0xff] }
  0xb7   : > { %1234 = vmatpush1.msra.mxu0 %v315_v59  ;;  %1305 = vmatpush1.msra.mxu1 %v317_v60  ;;  %v320_v59 = vld [vmem:[%s2726_s21 + $0x268] sm:$0xff]  ;;  %v322_v60 = vld [vmem:[%s2726_s21 + $0x278] sm:$0xff] }
  0xb8   : > { %1235 = vmatprep.subr.mxu0 %v284_v61  ;;  %1306 = vmatprep.subr.mxu1 %v286_v62  ;;  %v319_v61 = vld [vmem:[%s2726_s21 + $0x260] sm:$0xff]  ;;  %v321_v62 = vld [vmem:[%s2726_s21 + $0x270] sm:$0xff] }
  0xb9   : > { %1236 = vmatpush1.msra.mxu0 %v283_v63  ;;  %1307 = vmatpush1.msra.mxu1 %v285_v1  ;;  %v288_v63 = vld [vmem:[%s2726_s21 + $0x168] sm:$0xff]  ;;  %v290_v1 = vld [vmem:[%s2726_s21 + $0x178] sm:$0xff] }
  0xba   : > { %1237 = vmatprep.subr.mxu0 %v252_v3  ;;  %1308 = vmatprep.subr.mxu1 %v254_v4  ;;  %v287_v3 = vld [vmem:[%s2726_s21 + $0x160] sm:$0xff]  ;;  %v289_v4 = vld [vmem:[%s2726_s21 + $0x170] sm:$0xff] }
  0xbb   : > { %1238 = vmatpush1.msra.mxu0 %v251_v5  ;;  %1271 = vmatprep.mubr.f32.mxu0 %v2552_v0  ;;  %v256_v5 = vld [vmem:[%s2726_s21 + $0x68] sm:$0xff] }
  0xbc   : > { %1309 = vmatpush1.msra.mxu1 %v253_v6  ;;  %1342 = vmatprep.mubr.f32.mxu1 %v2552_v0  ;;  %v258_v6 = vld [vmem:[%s2726_s21 + $0x78] sm:$0xff] }
  0xbd   : > { %1272 = vmatmul.mubr.f32.vlgmr.msra.gmra.mxu0 %v2798_v2  ;;  %1343 = vmatmul.mubr.f32.vlgmr.msra.gmra.mxu1 %v2798_v2 }
  0xbe   : > { %1349 = vmatprep.subr.mxu0 %v736_v7  ;;  %1420 = vmatprep.subr.mxu1 %v738_v8  ;;  %v255_v7 = vld [vmem:[%s2726_s21 + $0x60] sm:$0xff]  ;;  %v257_v8 = vld [vmem:[%s2726_s21 + $0x70] sm:$0xff] }
  0xbf   : > { %1350 = vmatpush1.msra.mxu0 %v735_v9  ;;  %1421 = vmatpush1.msra.mxu1 %v737_v10  ;;  %v740_v9 = vld [vmem:[%s2726_s21 + $0xf88] sm:$0xff]  ;;  %v742_v10 = vld [vmem:[%s2726_s21 + $0xf98] sm:$0xff] }
  0xc0   : > { %1351 = vmatprep.subr.mxu0 %v704_v11  ;;  %1422 = vmatprep.subr.mxu1 %v706_v12  ;;  %v739_v11 = vld [vmem:[%s2726_s21 + $0xf80] sm:$0xff]  ;;  %v741_v12 = vld [vmem:[%s2726_s21 + $0xf90] sm:$0xff] }
  0xc1   : > { %1352 = vmatpush1.msra.mxu0 %v703_v13  ;;  %1423 = vmatpush1.msra.mxu1 %v705_v14  ;;  %v708_v13 = vld [vmem:[%s2726_s21 + $0xe88] sm:$0xff]  ;;  %v710_v14 = vld [vmem:[%s2726_s21 + $0xe98] sm:$0xff] }
  0xc2   : > { %1353 = vmatprep.subr.mxu0 %v672_v15  ;;  %1424 = vmatprep.subr.mxu1 %v674_v16  ;;  %v707_v15 = vld [vmem:[%s2726_s21 + $0xe80] sm:$0xff]  ;;  %v709_v16 = vld [vmem:[%s2726_s21 + $0xe90] sm:$0xff] }
  0xc3   : > { %1354 = vmatpush1.msra.mxu0 %v671_v17  ;;  %1425 = vmatpush1.msra.mxu1 %v673_v18  ;;  %v676_v17 = vld [vmem:[%s2726_s21 + $0xd88] sm:$0xff]  ;;  %v678_v18 = vld [vmem:[%s2726_s21 + $0xd98] sm:$0xff] }
  0xc4   : > { %1355 = vmatprep.subr.mxu0 %v640_v19  ;;  %1426 = vmatprep.subr.mxu1 %v642_v20  ;;  %v675_v19 = vld [vmem:[%s2726_s21 + $0xd80] sm:$0xff]  ;;  %v644_v20 = vld [vmem:[%s2726_s21 + $0xc88] sm:$0xff] }
  0xc5   : > { %1356 = vmatpush1.msra.mxu0 %v639_v21  ;;  %1427 = vmatpush1.msra.mxu1 %v641_v22  ;;  %v646_v21 = vld [vmem:[%s2726_s21 + $0xc98] sm:$0xff]  ;;  %v643_v22 = vld [vmem:[%s2726_s21 + $0xc80] sm:$0xff] }
  0xc6   : > { %1357 = vmatprep.subr.mxu0 %v608_v23  ;;  %1428 = vmatprep.subr.mxu1 %v610_v24  ;;  %v645_v23 = vld [vmem:[%s2726_s21 + $0xc90] sm:$0xff]  ;;  %v612_v24 = vld [vmem:[%s2726_s21 + $0xb88] sm:$0xff] }
  0xc7   : > { %1358 = vmatpush1.msra.mxu0 %v607_v25  ;;  %1429 = vmatpush1.msra.mxu1 %v609_v26  ;;  %v614_v25 = vld [vmem:[%s2726_s21 + $0xb98] sm:$0xff]  ;;  %v611_v26 = vld [vmem:[%s2726_s21 + $0xb80] sm:$0xff] }
  0xc8   : > { %1359 = vmatprep.subr.mxu0 %v576_v27  ;;  %1430 = vmatprep.subr.mxu1 %v578_v28  ;;  %v613_v27 = vld [vmem:[%s2726_s21 + $0xb90] sm:$0xff]  ;;  %v580_v28 = vld [vmem:[%s2726_s21 + $0xa88] sm:$0xff] }
  0xc9   : > { %1360 = vmatpush1.msra.mxu0 %v575_v29  ;;  %1431 = vmatpush1.msra.mxu1 %v577_v30  ;;  %v582_v29 = vld [vmem:[%s2726_s21 + $0xa98] sm:$0xff]  ;;  %v579_v30 = vld [vmem:[%s2726_s21 + $0xa80] sm:$0xff] }
  0xca   : > { %1361 = vmatprep.subr.mxu0 %v544_v31  ;;  %1432 = vmatprep.subr.mxu1 %v546_v32  ;;  %v581_v31 = vld [vmem:[%s2726_s21 + $0xa90] sm:$0xff]  ;;  %v548_v32 = vld [vmem:[%s2726_s21 + $0x988] sm:$0xff] }
  0xcb   : > { %1362 = vmatpush1.msra.mxu0 %v543_v33  ;;  %1433 = vmatpush1.msra.mxu1 %v545_v34  ;;  %v550_v33 = vld [vmem:[%s2726_s21 + $0x998] sm:$0xff]  ;;  %v547_v34 = vld [vmem:[%s2726_s21 + $0x980] sm:$0xff] }
  0xcc   : > { %1363 = vmatprep.subr.mxu0 %v512_v35  ;;  %1434 = vmatprep.subr.mxu1 %v514_v36  ;;  %v549_v35 = vld [vmem:[%s2726_s21 + $0x990] sm:$0xff]  ;;  %v516_v36 = vld [vmem:[%s2726_s21 + $0x888] sm:$0xff] }
  0xcd   : > { %1364 = vmatpush1.msra.mxu0 %v511_v37  ;;  %1435 = vmatpush1.msra.mxu1 %v513_v38  ;;  %v518_v37 = vld [vmem:[%s2726_s21 + $0x898] sm:$0xff]  ;;  %v515_v38 = vld [vmem:[%s2726_s21 + $0x880] sm:$0xff] }
  0xce   : > { %1365 = vmatprep.subr.mxu0 %v480_v39  ;;  %1436 = vmatprep.subr.mxu1 %v482_v40  ;;  %v517_v39 = vld [vmem:[%s2726_s21 + $0x890] sm:$0xff]  ;;  %v484_v40 = vld [vmem:[%s2726_s21 + $0x788] sm:$0xff] }
  0xcf   : > { %1366 = vmatpush1.msra.mxu0 %v479_v41  ;;  %1437 = vmatpush1.msra.mxu1 %v481_v42  ;;  %v486_v41 = vld [vmem:[%s2726_s21 + $0x798] sm:$0xff]  ;;  %v483_v42 = vld [vmem:[%s2726_s21 + $0x780] sm:$0xff] }
  0xd0   : > { %1367 = vmatprep.subr.mxu0 %v448_v43  ;;  %1438 = vmatprep.subr.mxu1 %v450_v44  ;;  %v485_v43 = vld [vmem:[%s2726_s21 + $0x790] sm:$0xff]  ;;  %v452_v44 = vld [vmem:[%s2726_s21 + $0x688] sm:$0xff] }
  0xd1   : > { %1368 = vmatpush1.msra.mxu0 %v447_v45  ;;  %1439 = vmatpush1.msra.mxu1 %v449_v46  ;;  %v454_v45 = vld [vmem:[%s2726_s21 + $0x698] sm:$0xff]  ;;  %v451_v46 = vld [vmem:[%s2726_s21 + $0x680] sm:$0xff] }
  0xd2   : > { %1369 = vmatprep.subr.mxu0 %v416_v47  ;;  %1440 = vmatprep.subr.mxu1 %v418_v48  ;;  %v453_v47 = vld [vmem:[%s2726_s21 + $0x690] sm:$0xff]  ;;  %v420_v48 = vld [vmem:[%s2726_s21 + $0x588] sm:$0xff] }
  0xd3   : > { %1370 = vmatpush1.msra.mxu0 %v415_v49  ;;  %1441 = vmatpush1.msra.mxu1 %v417_v50  ;;  %v422_v49 = vld [vmem:[%s2726_s21 + $0x598] sm:$0xff]  ;;  %v419_v50 = vld [vmem:[%s2726_s21 + $0x580] sm:$0xff] }
  0xd4   : > { %1371 = vmatprep.subr.mxu0 %v384_v51  ;;  %1442 = vmatprep.subr.mxu1 %v386_v52  ;;  %v421_v51 = vld [vmem:[%s2726_s21 + $0x590] sm:$0xff]  ;;  %v388_v52 = vld [vmem:[%s2726_s21 + $0x488] sm:$0xff] }
  0xd5   : > { %1372 = vmatpush1.msra.mxu0 %v383_v53  ;;  %1443 = vmatpush1.msra.mxu1 %v385_v54  ;;  %v390_v53 = vld [vmem:[%s2726_s21 + $0x498] sm:$0xff]  ;;  %v387_v54 = vld [vmem:[%s2726_s21 + $0x480] sm:$0xff] }
  0xd6   : > { %1373 = vmatprep.subr.mxu0 %v352_v55  ;;  %1444 = vmatprep.subr.mxu1 %v354_v56  ;;  %v389_v55 = vld [vmem:[%s2726_s21 + $0x490] sm:$0xff]  ;;  %v356_v56 = vld [vmem:[%s2726_s21 + $0x388] sm:$0xff] }
  0xd7   : > { %1374 = vmatpush1.msra.mxu0 %v351_v57  ;;  %1445 = vmatpush1.msra.mxu1 %v353_v58  ;;  %v358_v57 = vld [vmem:[%s2726_s21 + $0x398] sm:$0xff]  ;;  %v355_v58 = vld [vmem:[%s2726_s21 + $0x380] sm:$0xff] }
  0xd8   : > { %1375 = vmatprep.subr.mxu0 %v320_v59  ;;  %1446 = vmatprep.subr.mxu1 %v322_v60  ;;  %v357_v59 = vld [vmem:[%s2726_s21 + $0x390] sm:$0xff]  ;;  %v324_v60 = vld [vmem:[%s2726_s21 + $0x288] sm:$0xff] }
  0xd9   : > { %1376 = vmatpush1.msra.mxu0 %v319_v61  ;;  %1447 = vmatpush1.msra.mxu1 %v321_v62  ;;  %v326_v61 = vld [vmem:[%s2726_s21 + $0x298] sm:$0xff]  ;;  %v323_v62 = vld [vmem:[%s2726_s21 + $0x280] sm:$0xff] }
  0xda   : > { %1377 = vmatprep.subr.mxu0 %v288_v63  ;;  %1448 = vmatprep.subr.mxu1 %v290_v1  ;;  %v325_v63 = vld [vmem:[%s2726_s21 + $0x290] sm:$0xff]  ;;  %v292_v1 = vld [vmem:[%s2726_s21 + $0x188] sm:$0xff] }
  0xdb   : > { %1378 = vmatpush1.msra.mxu0 %v287_v3  ;;  %1449 = vmatpush1.msra.mxu1 %v289_v4  ;;  %v294_v3 = vld [vmem:[%s2726_s21 + $0x198] sm:$0xff]  ;;  %v291_v4 = vld [vmem:[%s2726_s21 + $0x180] sm:$0xff] }
  0xdc   : > { %1379 = vmatprep.subr.mxu0 %v256_v5  ;;  %1450 = vmatprep.subr.mxu1 %v258_v6  ;;  %v293_v5 = vld [vmem:[%s2726_s21 + $0x190] sm:$0xff]  ;;  %v260_v6 = vld [vmem:[%s2726_s21 + $0x88] sm:$0xff] }
  0xdd   : > { %1380 = vmatpush1.msra.mxu0 %v255_v7  ;;  %1413 = vmatprep.mubr.f32.mxu0 %v2552_v0  ;;  %v262_v7 = vld [vmem:[%s2726_s21 + $0x98] sm:$0xff] }
  0xde   : > { %1451 = vmatpush1.msra.mxu1 %v257_v8  ;;  %1484 = vmatprep.mubr.f32.mxu1 %v2552_v0  ;;  %v259_v8 = vld [vmem:[%s2726_s21 + $0x80] sm:$0xff] }
  0xdf   : > { %1414 = vmatmul.mubr.f32.vlgmr.msra.gmra.mxu0 %v2798_v2  ;;  %1485 = vmatmul.mubr.f32.vlgmr.msra.gmra.mxu1 %v2798_v2  ;;  %v677_v2 = vld [vmem:[%s2726_s21 + $0xd90] sm:$0xff] }
  0xe0   : > { %1491 = vmatprep.subr.mxu0 %v740_v9  ;;  %1562 = vmatprep.subr.mxu1 %v742_v10  ;;  %v261_v9 = vld [vmem:[%s2726_s21 + $0x90] sm:$0xff]  ;;  %v744_v10 = vld [vmem:[%s2726_s21 + $0xfa8] sm:$0xff] }
  0xe1   : > { %1492 = vmatpush1.msra.mxu0 %v739_v11  ;;  %1563 = vmatpush1.msra.mxu1 %v741_v12  ;;  %v746_v11 = vld [vmem:[%s2726_s21 + $0xfb8] sm:$0xff]  ;;  %v743_v12 = vld [vmem:[%s2726_s21 + $0xfa0] sm:$0xff] }
  0xe2   : > { %1493 = vmatprep.subr.mxu0 %v708_v13  ;;  %1564 = vmatprep.subr.mxu1 %v710_v14  ;;  %v745_v13 = vld [vmem:[%s2726_s21 + $0xfb0] sm:$0xff]  ;;  %v3076_v14 = vld [vmem:[#allocation2] sm:$0x3] }
  0xe3   : > { %1494 = vmatpush1.msra.mxu0 %v707_v15  ;;  %1565 = vmatpush1.msra.mxu1 %v709_v16  ;;  %v712_v15 = vld [vmem:[%s2726_s21 + $0xea8] sm:$0xff]  ;;  %v714_v16 = vld [vmem:[%s2726_s21 + $0xeb8] sm:$0xff] }
  0xe4   : > { %1495 = vmatprep.subr.mxu0 %v676_v17  ;;  %1566 = vmatprep.subr.mxu1 %v678_v18  ;;  %v711_v17 = vld [vmem:[%s2726_s21 + $0xea0] sm:$0xff]  ;;  %v713_v18 = vld [vmem:[%s2726_s21 + $0xeb0] sm:$0xff] }
  0xe5   : > { %1496 = vmatpush1.msra.mxu0 %v675_v19  ;;  %1567 = vmatpush1.msra.mxu1 %v677_v2  ;;  %v680_v19 = vld [vmem:[%s2726_s21 + $0xda8] sm:$0xff]  ;;  %v682_v2 = vld [vmem:[%s2726_s21 + $0xdb8] sm:$0xff] }
  0xe6   : > { %1497 = vmatprep.subr.mxu0 %v644_v20  ;;  %1568 = vmatprep.subr.mxu1 %v646_v21  ;;  %v679_v20 = vld [vmem:[%s2726_s21 + $0xda0] sm:$0xff]  ;;  %v681_v21 = vld [vmem:[%s2726_s21 + $0xdb0] sm:$0xff] }
  0xe7   : > { %1498 = vmatpush1.msra.mxu0 %v643_v22  ;;  %1569 = vmatpush1.msra.mxu1 %v645_v23  ;;  %v648_v22 = vld [vmem:[%s2726_s21 + $0xca8] sm:$0xff]  ;;  %v650_v23 = vld [vmem:[%s2726_s21 + $0xcb8] sm:$0xff] }
  0xe8   : > { %1499 = vmatprep.subr.mxu0 %v612_v24  ;;  %1570 = vmatprep.subr.mxu1 %v614_v25  ;;  %v647_v24 = vld [vmem:[%s2726_s21 + $0xca0] sm:$0xff]  ;;  %v649_v25 = vld [vmem:[%s2726_s21 + $0xcb0] sm:$0xff] }
  0xe9   : > { %1500 = vmatpush1.msra.mxu0 %v611_v26  ;;  %1571 = vmatpush1.msra.mxu1 %v613_v27  ;;  %v616_v26 = vld [vmem:[%s2726_s21 + $0xba8] sm:$0xff]  ;;  %v618_v27 = vld [vmem:[%s2726_s21 + $0xbb8] sm:$0xff] }
  0xea   : > { %1501 = vmatprep.subr.mxu0 %v580_v28  ;;  %1572 = vmatprep.subr.mxu1 %v582_v29  ;;  %v615_v28 = vld [vmem:[%s2726_s21 + $0xba0] sm:$0xff]  ;;  %v617_v29 = vld [vmem:[%s2726_s21 + $0xbb0] sm:$0xff] }
  0xeb   : > { %1502 = vmatpush1.msra.mxu0 %v579_v30  ;;  %1573 = vmatpush1.msra.mxu1 %v581_v31  ;;  %v584_v30 = vld [vmem:[%s2726_s21 + $0xaa8] sm:$0xff]  ;;  %v586_v31 = vld [vmem:[%s2726_s21 + $0xab8] sm:$0xff] }
  0xec   : > { %1503 = vmatprep.subr.mxu0 %v548_v32  ;;  %1574 = vmatprep.subr.mxu1 %v550_v33  ;;  %v583_v32 = vld [vmem:[%s2726_s21 + $0xaa0] sm:$0xff]  ;;  %v585_v33 = vld [vmem:[%s2726_s21 + $0xab0] sm:$0xff] }
  0xed   : > { %1504 = vmatpush1.msra.mxu0 %v547_v34  ;;  %1575 = vmatpush1.msra.mxu1 %v549_v35  ;;  %v552_v34 = vld [vmem:[%s2726_s21 + $0x9a8] sm:$0xff]  ;;  %v554_v35 = vld [vmem:[%s2726_s21 + $0x9b8] sm:$0xff] }
  0xee   : > { %1505 = vmatprep.subr.mxu0 %v516_v36  ;;  %1576 = vmatprep.subr.mxu1 %v518_v37  ;;  %v551_v36 = vld [vmem:[%s2726_s21 + $0x9a0] sm:$0xff]  ;;  %v553_v37 = vld [vmem:[%s2726_s21 + $0x9b0] sm:$0xff] }
  0xef   : > { %1506 = vmatpush1.msra.mxu0 %v515_v38  ;;  %1577 = vmatpush1.msra.mxu1 %v517_v39  ;;  %v520_v38 = vld [vmem:[%s2726_s21 + $0x8a8] sm:$0xff]  ;;  %v522_v39 = vld [vmem:[%s2726_s21 + $0x8b8] sm:$0xff] }
  0xf0   : > { %1507 = vmatprep.subr.mxu0 %v484_v40  ;;  %1578 = vmatprep.subr.mxu1 %v486_v41  ;;  %v519_v40 = vld [vmem:[%s2726_s21 + $0x8a0] sm:$0xff]  ;;  %v521_v41 = vld [vmem:[%s2726_s21 + $0x8b0] sm:$0xff] }
  0xf1   : > { %1508 = vmatpush1.msra.mxu0 %v483_v42  ;;  %1579 = vmatpush1.msra.mxu1 %v485_v43  ;;  %v488_v42 = vld [vmem:[%s2726_s21 + $0x7a8] sm:$0xff]  ;;  %v490_v43 = vld [vmem:[%s2726_s21 + $0x7b8] sm:$0xff] }
  0xf2   : > { %1509 = vmatprep.subr.mxu0 %v452_v44  ;;  %1580 = vmatprep.subr.mxu1 %v454_v45  ;;  %v487_v44 = vld [vmem:[%s2726_s21 + $0x7a0] sm:$0xff]  ;;  %v489_v45 = vld [vmem:[%s2726_s21 + $0x7b0] sm:$0xff] }
  0xf3   : > { %1510 = vmatpush1.msra.mxu0 %v451_v46  ;;  %1581 = vmatpush1.msra.mxu1 %v453_v47  ;;  %v456_v46 = vld [vmem:[%s2726_s21 + $0x6a8] sm:$0xff]  ;;  %v458_v47 = vld [vmem:[%s2726_s21 + $0x6b8] sm:$0xff] }
  0xf4   : > { %1511 = vmatprep.subr.mxu0 %v420_v48  ;;  %1582 = vmatprep.subr.mxu1 %v422_v49  ;;  %v455_v48 = vld [vmem:[%s2726_s21 + $0x6a0] sm:$0xff]  ;;  %v457_v49 = vld [vmem:[%s2726_s21 + $0x6b0] sm:$0xff] }
  0xf5   : > { %1512 = vmatpush1.msra.mxu0 %v419_v50  ;;  %1583 = vmatpush1.msra.mxu1 %v421_v51  ;;  %v424_v50 = vld [vmem:[%s2726_s21 + $0x5a8] sm:$0xff]  ;;  %v426_v51 = vld [vmem:[%s2726_s21 + $0x5b8] sm:$0xff] }
  0xf6   : > { %1513 = vmatprep.subr.mxu0 %v388_v52  ;;  %1584 = vmatprep.subr.mxu1 %v390_v53  ;;  %v423_v52 = vld [vmem:[%s2726_s21 + $0x5a0] sm:$0xff]  ;;  %v425_v53 = vld [vmem:[%s2726_s21 + $0x5b0] sm:$0xff] }
  0xf7   : > { %1514 = vmatpush1.msra.mxu0 %v387_v54  ;;  %1585 = vmatpush1.msra.mxu1 %v389_v55  ;;  %v392_v54 = vld [vmem:[%s2726_s21 + $0x4a8] sm:$0xff]  ;;  %v394_v55 = vld [vmem:[%s2726_s21 + $0x4b8] sm:$0xff] }
  0xf8   : > { %1515 = vmatprep.subr.mxu0 %v356_v56  ;;  %1586 = vmatprep.subr.mxu1 %v358_v57  ;;  %v391_v56 = vld [vmem:[%s2726_s21 + $0x4a0] sm:$0xff]  ;;  %v393_v57 = vld [vmem:[%s2726_s21 + $0x4b0] sm:$0xff] }
  0xf9   : > { %1516 = vmatpush1.msra.mxu0 %v355_v58  ;;  %1587 = vmatpush1.msra.mxu1 %v357_v59  ;;  %v360_v58 = vld [vmem:[%s2726_s21 + $0x3a8] sm:$0xff]  ;;  %v362_v59 = vld [vmem:[%s2726_s21 + $0x3b8] sm:$0xff] }
  0xfa   : > { %1517 = vmatprep.subr.mxu0 %v324_v60  ;;  %1588 = vmatprep.subr.mxu1 %v326_v61  ;;  %v359_v60 = vld [vmem:[%s2726_s21 + $0x3a0] sm:$0xff]  ;;  %v361_v61 = vld [vmem:[%s2726_s21 + $0x3b0] sm:$0xff] }
  0xfb   : > { %1518 = vmatpush1.msra.mxu0 %v323_v62  ;;  %1589 = vmatpush1.msra.mxu1 %v325_v63  ;;  %v328_v62 = vld [vmem:[%s2726_s21 + $0x2a8] sm:$0xff]  ;;  %v330_v63 = vld [vmem:[%s2726_s21 + $0x2b8] sm:$0xff] }
  0xfc   : > { %1519 = vmatprep.subr.mxu0 %v292_v1  ;;  %1590 = vmatprep.subr.mxu1 %v294_v3  ;;  %v327_v1 = vld [vmem:[%s2726_s21 + $0x2a0] sm:$0xff]  ;;  %v329_v3 = vld [vmem:[%s2726_s21 + $0x2b0] sm:$0xff] }
  0xfd   : > { %1520 = vmatpush1.msra.mxu0 %v291_v4  ;;  %1591 = vmatpush1.msra.mxu1 %v293_v5  ;;  %v296_v4 = vld [vmem:[%s2726_s21 + $0x1a8] sm:$0xff]  ;;  %v298_v5 = vld [vmem:[%s2726_s21 + $0x1b8] sm:$0xff] }
  0xfe   : > { %1521 = vmatprep.subr.mxu0 %v260_v6  ;;  %1592 = vmatprep.subr.mxu1 %v262_v7  ;;  %v295_v6 = vld [vmem:[%s2726_s21 + $0x1a0] sm:$0xff]  ;;  %v297_v7 = vld [vmem:[%s2726_s21 + $0x1b0] sm:$0xff] }
  0xff   : > { %1522 = vmatpush1.msra.mxu0 %v259_v8  ;;  %1555 = vmatprep.mubr.f32.mxu0 %v2552_v0  ;;  %v264_v8 = vld [vmem:[%s2726_s21 + $0xa8] sm:$0xff] }
 0x100   : > { %1593 = vmatpush1.msra.mxu1 %v261_v9  ;;  %1626 = vmatprep.mubr.f32.mxu1 %v2552_v0  ;;  %v266_v9 = vld [vmem:[%s2726_s21 + $0xb8] sm:$0xff] }
 0x101   : > { %1556 = vmatmul.mubr.f32.vlgmr.msra.gmra.mxu0 %v3076_v14  ;;  %1627 = vmatmul.mubr.f32.vlgmr.msra.gmra.mxu1 %v3076_v14 }
 0x102   : > { %1633 = vmatprep.subr.mxu0 %v744_v10  ;;  %1704 = vmatprep.subr.mxu1 %v746_v11  ;;  %v263_v10 = vld [vmem:[%s2726_s21 + $0xa0] sm:$0xff]  ;;  %v265_v11 = vld [vmem:[%s2726_s21 + $0xb0] sm:$0xff] }
 0x103   : > { %1634 = vmatpush1.msra.mxu0 %v743_v12  ;;  %1705 = vmatpush1.msra.mxu1 %v745_v13  ;;  %v748_v12 = vld [vmem:[%s2726_s21 + $0xfc8] sm:$0xff]  ;;  %v750_v13 = vld [vmem:[%s2726_s21 + $0xfd8] sm:$0xff] }
 0x104   : > { %1635 = vmatprep.subr.mxu0 %v712_v15  ;;  %1706 = vmatprep.subr.mxu1 %v714_v16  ;;  %v747_v15 = vld [vmem:[%s2726_s21 + $0xfc0] sm:$0xff]  ;;  %v749_v16 = vld [vmem:[%s2726_s21 + $0xfd0] sm:$0xff] }
 0x105   : > { %1636 = vmatpush1.msra.mxu0 %v711_v17  ;;  %1707 = vmatpush1.msra.mxu1 %v713_v18  ;;  %v716_v17 = vld [vmem:[%s2726_s21 + $0xec8] sm:$0xff]  ;;  %v718_v18 = vld [vmem:[%s2726_s21 + $0xed8] sm:$0xff] }
 0x106   : > { %1637 = vmatprep.subr.mxu0 %v680_v19  ;;  %1708 = vmatprep.subr.mxu1 %v682_v2  ;;  %v715_v19 = vld [vmem:[%s2726_s21 + $0xec0] sm:$0xff]  ;;  %v717_v2 = vld [vmem:[%s2726_s21 + $0xed0] sm:$0xff] }
 0x107   : > { %1638 = vmatpush1.msra.mxu0 %v679_v20  ;;  %1709 = vmatpush1.msra.mxu1 %v681_v21  ;;  %v684_v20 = vld [vmem:[%s2726_s21 + $0xdc8] sm:$0xff]  ;;  %v686_v21 = vld [vmem:[%s2726_s21 + $0xdd8] sm:$0xff] }
 0x108   : > { %1639 = vmatprep.subr.mxu0 %v648_v22  ;;  %1710 = vmatprep.subr.mxu1 %v650_v23  ;;  %v683_v22 = vld [vmem:[%s2726_s21 + $0xdc0] sm:$0xff]  ;;  %v685_v23 = vld [vmem:[%s2726_s21 + $0xdd0] sm:$0xff] }
 0x109   : > { %1640 = vmatpush1.msra.mxu0 %v647_v24  ;;  %1711 = vmatpush1.msra.mxu1 %v649_v25  ;;  %v652_v24 = vld [vmem:[%s2726_s21 + $0xcc8] sm:$0xff]  ;;  %v654_v25 = vld [vmem:[%s2726_s21 + $0xcd8] sm:$0xff] }
 0x10a   : > { %1641 = vmatprep.subr.mxu0 %v616_v26  ;;  %1712 = vmatprep.subr.mxu1 %v618_v27  ;;  %v651_v26 = vld [vmem:[%s2726_s21 + $0xcc0] sm:$0xff]  ;;  %v653_v27 = vld [vmem:[%s2726_s21 + $0xcd0] sm:$0xff] }
 0x10b   : > { %1642 = vmatpush1.msra.mxu0 %v615_v28  ;;  %1713 = vmatpush1.msra.mxu1 %v617_v29  ;;  %v620_v28 = vld [vmem:[%s2726_s21 + $0xbc8] sm:$0xff]  ;;  %v622_v29 = vld [vmem:[%s2726_s21 + $0xbd8] sm:$0xff] }
 0x10c   : > { %1643 = vmatprep.subr.mxu0 %v584_v30  ;;  %1714 = vmatprep.subr.mxu1 %v586_v31  ;;  %v619_v30 = vld [vmem:[%s2726_s21 + $0xbc0] sm:$0xff]  ;;  %v621_v31 = vld [vmem:[%s2726_s21 + $0xbd0] sm:$0xff] }
 0x10d   : > { %1644 = vmatpush1.msra.mxu0 %v583_v32  ;;  %1715 = vmatpush1.msra.mxu1 %v585_v33  ;;  %v763_v32 = vlaneseq  ;;  %v588_v33 = vld [vmem:[%s2726_s21 + $0xac8] sm:$0xff] }
 0x10e   : > { %1645 = vmatprep.subr.mxu0 %v552_v34  ;;  %1716 = vmatprep.subr.mxu1 %v554_v35  ;;  %v590_v34 = vld [vmem:[%s2726_s21 + $0xad8] sm:$0xff]  ;;  %v587_v35 = vld [vmem:[%s2726_s21 + $0xac0] sm:$0xff] }
 0x10f   : > { %1646 = vmatpush1.msra.mxu0 %v551_v36  ;;  %1717 = vmatpush1.msra.mxu1 %v553_v37  ;;  %v589_v36 = vld [vmem:[%s2726_s21 + $0xad0] sm:$0xff]  ;;  %v556_v37 = vld [vmem:[%s2726_s21 + $0x9c8] sm:$0xff] }
 0x110   : > { %1647 = vmatprep.subr.mxu0 %v520_v38  ;;  %1718 = vmatprep.subr.mxu1 %v522_v39  ;;  %v558_v38 = vld [vmem:[%s2726_s21 + $0x9d8] sm:$0xff]  ;;  %v555_v39 = vld [vmem:[%s2726_s21 + $0x9c0] sm:$0xff] }
 0x111   : > { %1648 = vmatpush1.msra.mxu0 %v519_v40  ;;  %1719 = vmatpush1.msra.mxu1 %v521_v41  ;;  %v557_v40 = vld [vmem:[%s2726_s21 + $0x9d0] sm:$0xff]  ;;  %v3174_v41 = vshrl.u32 %v763_v32, 7 }
 0x112   : > { %1649 = vmatprep.subr.mxu0 %v488_v42  ;;  %1720 = vmatprep.subr.mxu1 %v490_v43  ;;  %v524_v42 = vld [vmem:[%s2726_s21 + $0x8c8] sm:$0xff]  ;;  %v526_v43 = vld [vmem:[%s2726_s21 + $0x8d8] sm:$0xff]  ;;  %v301_v32 = vld [vmem:[%s2726_s21 + $0x1d0] sm:$0xff] }
 0x113   : > { %1650 = vmatpush1.msra.mxu0 %v487_v44  ;;  %1721 = vmatpush1.msra.mxu1 %v489_v45  ;;  %v523_v44 = vld [vmem:[%s2726_s21 + $0x8c0] sm:$0xff]  ;;  %v525_v45 = vld [vmem:[%s2726_s21 + $0x8d0] sm:$0xff] }
 0x114   : > { %1651 = vmatprep.subr.mxu0 %v456_v46  ;;  %1722 = vmatprep.subr.mxu1 %v458_v47  ;;  %v492_v46 = vld [vmem:[%s2726_s21 + $0x7c8] sm:$0xff]  ;;  %v494_v47 = vld [vmem:[%s2726_s21 + $0x7d8] sm:$0xff] }
 0x115   : > { %1652 = vmatpush1.msra.mxu0 %v455_v48  ;;  %1723 = vmatpush1.msra.mxu1 %v457_v49  ;;  %v491_v48 = vld [vmem:[%s2726_s21 + $0x7c0] sm:$0xff]  ;;  %v493_v49 = vld [vmem:[%s2726_s21 + $0x7d0] sm:$0xff] }
 0x116   : > { %1653 = vmatprep.subr.mxu0 %v424_v50  ;;  %1724 = vmatprep.subr.mxu1 %v426_v51  ;;  %v3185_v50 = vsub.s32 0, %v3174_v41  ;;  %v3188_v51 = vsub.s32 2, %v3174_v41 }
 0x117   : > { %1654 = vmatpush1.msra.mxu0 %v423_v52  ;;  %1725 = vmatpush1.msra.mxu1 %v425_v53  ;;  %v460_v52 = vld [vmem:[%s2726_s21 + $0x6c8] sm:$0xff]  ;;  %v462_v53 = vld [vmem:[%s2726_s21 + $0x6d8] sm:$0xff] }
 0x118   : > { %1655 = vmatprep.subr.mxu0 %v392_v54  ;;  %1726 = vmatprep.subr.mxu1 %v394_v55  ;;  %v3195_v54 = vld [vmem:[%s3192_s25] sm:$0xff] }
 0x119   : > { %1656 = vmatpush1.msra.mxu0 %v391_v56  ;;  %1727 = vmatpush1.msra.mxu1 %v393_v57  ;;  %v459_v55 = vld [vmem:[%s2726_s21 + $0x6c0] sm:$0xff]  ;;  %v461_v56 = vld [vmem:[%s2726_s21 + $0x6d0] sm:$0xff]  ;;  %v3201_v57 = vsub.s32 1, %v3174_v41 }
 0x11a   : > { %1657 = vmatprep.subr.mxu0 %v360_v58  ;;  %1728 = vmatprep.subr.mxu1 %v362_v59  ;;  %v2553_v58 = vmov 1983009808  }
 0x11b   : > { %1658 = vmatpush1.msra.mxu0 %v359_v60  ;;  %1729 = vmatpush1.msra.mxu1 %v361_v61  ;;  %v2094_v59 = vunpack.c.l.s4 %v2553_v58  ;;  %v3204_v60 = vsub.s32 3, %v3174_v41  ;;  %v428_v61 = vld [vmem:[%s2726_s21 + $0x5c8] sm:$0xff]  ;;  %v689_v58 = vld [vmem:[%s2726_s21 + $0xdf0] sm:$0xff] }
 0x11c   : > { %1659 = vmatprep.subr.mxu0 %v328_v62  ;;  %1730 = vmatprep.subr.mxu1 %v330_v63  ;;  %v430_v62 = vld [vmem:[%s2726_s21 + $0x5d8] sm:$0xff]  ;;  %v427_v63 = vld [vmem:[%s2726_s21 + $0x5c0] sm:$0xff] }
 0x11d   : > { %1660 = vmatpush1.msra.mxu0 %v327_v1  ;;  %1731 = vmatpush1.msra.mxu1 %v329_v3  ;;  %v429_v1 = vld [vmem:[%s2726_s21 + $0x5d0] sm:$0xff]  ;;  %v766_v3 = vrot.slane %v3195_v54, %v3185_v50 }
 0x11e   : > { %1661 = vmatprep.subr.mxu0 %v296_v4  ;;  %1732 = vmatprep.subr.mxu1 %v298_v5  ;;  %v774_v4 = vrot.slane %v3195_v54, %v3188_v51  ;;  %v396_v5 = vld [vmem:[%s2726_s21 + $0x4c8] sm:$0xff] }
 0x11f   : > { %1662 = vmatpush1.msra.mxu0 %v295_v6  ;;  %1733 = vmatpush1.msra.mxu1 %v297_v7  ;;  %v398_v6 = vld [vmem:[%s2726_s21 + $0x4d8] sm:$0xff]  ;;  %v395_v7 = vld [vmem:[%s2726_s21 + $0x4c0] sm:$0xff] }
 0x120   : > { %1663 = vmatprep.subr.mxu0 %v264_v8  ;;  %1734 = vmatprep.subr.mxu1 %v266_v9  ;;  %v397_v8 = vld [vmem:[%s2726_s21 + $0x4d0] sm:$0xff]  ;;  %v770_v9 = vrot.slane %v3195_v54, %v3201_v57 }
 0x121   : > { %1664 = vmatpush1.msra.mxu0 %v263_v10  ;;  %1697 = vmatprep.mubr.f32.mxu0 %v2552_v0  ;;  %v2095_v10 = vunpack.c.0.s8 %v2094_v59  ;;  %v656_v59 = vld [vmem:[%s2726_s21 + $0xce8] sm:$0xff] }
 0x122   : > { %1735 = vmatpush1.msra.mxu1 %v265_v11  ;;  %1768 = vmatprep.mubr.f32.mxu1 %v2552_v0  ;;  %v778_v11 = vrot.slane %v3195_v54, %v3204_v60 }
 0x123   : > { %1698 = vmatmul.mubr.f32.vlgmr.msra.gmra.mxu0 %v3076_v14  ;;  %1769 = vmatmul.mubr.f32.vlgmr.msra.gmra.mxu1 %v3076_v14 }
 0x124   : > { %1775 = vmatprep.subr.mxu0 %v748_v12  ;;  %1846 = vmatprep.subr.mxu1 %v750_v13  ;;  %v364_v12 = vld [vmem:[%s2726_s21 + $0x3c8] sm:$0xff]  ;;  %v366_v13 = vld [vmem:[%s2726_s21 + $0x3d8] sm:$0xff] }
 0x125   : > { %1776 = vmatpush1.msra.mxu0 %v747_v15  ;;  %1847 = vmatpush1.msra.mxu1 %v749_v16 }
 0x126   : > { %1777 = vmatprep.subr.mxu0 %v716_v17  ;;  %1848 = vmatprep.subr.mxu1 %v718_v18  ;;  %v363_v17 = vld [vmem:[%s2726_s21 + $0x3c0] sm:$0xff]  ;;  %v365_v18 = vld [vmem:[%s2726_s21 + $0x3d0] sm:$0xff] }
 0x127   : > { %1778 = vmatpush1.msra.mxu0 %v715_v19  ;;  %1849 = vmatpush1.msra.mxu1 %v717_v2 }
 0x128   : > { %1779 = vmatprep.subr.mxu0 %v684_v20  ;;  %1850 = vmatprep.subr.mxu1 %v686_v21  ;;  %v332_v20 = vld [vmem:[%s2726_s21 + $0x2c8] sm:$0xff]  ;;  %v334_v21 = vld [vmem:[%s2726_s21 + $0x2d8] sm:$0xff] }
 0x129   : > { %1780 = vmatpush1.msra.mxu0 %v683_v22  ;;  %1851 = vmatpush1.msra.mxu1 %v685_v23 }
 0x12a   : > { %1781 = vmatprep.subr.mxu0 %v652_v24  ;;  %1852 = vmatprep.subr.mxu1 %v654_v25  ;;  %v331_v24 = vld [vmem:[%s2726_s21 + $0x2c0] sm:$0xff]  ;;  %v333_v25 = vld [vmem:[%s2726_s21 + $0x2d0] sm:$0xff] }
 0x12b   : > { %1782 = vmatpush1.msra.mxu0 %v651_v26  ;;  %1853 = vmatpush1.msra.mxu1 %v653_v27  ;;  %v3243_v27 = vsub.s32 %v2095_v10, %v3174_v41  ;;  %v560_v10 = vld [vmem:[%s2726_s21 + $0x9e8] sm:$0xff] }
 0x12c   : > { %1783 = vmatprep.subr.mxu0 %v620_v28  ;;  %1854 = vmatprep.subr.mxu1 %v622_v29  ;;  %v300_v29 = vld [vmem:[%s2726_s21 + $0x1c8] sm:$0xff] }
 0x12d   : > { %1784 = vmatpush1.msra.mxu0 %v619_v30  ;;  %1855 = vmatpush1.msra.mxu1 %v621_v31  ;;  %v302_v30 = vld [vmem:[%s2726_s21 + $0x1d8] sm:$0xff]  ;;  %v299_v31 = vld [vmem:[%s2726_s21 + $0x1c0] sm:$0xff] }
 0x12e   : > { %1785 = vmatprep.subr.mxu0 %v588_v33  ;;  %1856 = vmatprep.subr.mxu1 %v590_v34 }
 0x12f   : > { %1786 = vmatpush1.msra.mxu0 %v587_v35  ;;  %1857 = vmatpush1.msra.mxu1 %v589_v36  ;;  %v268_v35 = vld [vmem:[%s2726_s21 + $0xc8] sm:$0xff]  ;;  %v270_v36 = vld [vmem:[%s2726_s21 + $0xd8] sm:$0xff] }
 0x130   : > { %1787 = vmatprep.subr.mxu0 %v556_v37  ;;  %1858 = vmatprep.subr.mxu1 %v558_v38  ;;  %v267_v37 = vld [vmem:[%s2726_s21 + $0xc0] sm:$0xff] }
 0x131   : > { %1788 = vmatpush1.msra.mxu0 %v555_v39  ;;  %1859 = vmatpush1.msra.mxu1 %v557_v40  ;;  %v269_v40 = vld [vmem:[%s2726_s21 + $0xd0] sm:$0xff] }
 0x132   : > { %1789 = vmatprep.subr.mxu0 %v524_v42  ;;  %1860 = vmatprep.subr.mxu1 %v526_v43  ;;  %v752_v43 = vld [vmem:[%s2726_s21 + $0xfe8] sm:$0xff] }
 0x133   : > { %1790 = vmatpush1.msra.mxu0 %v523_v44  ;;  %1861 = vmatpush1.msra.mxu1 %v525_v45  ;;  %v754_v44 = vld [vmem:[%s2726_s21 + $0xff8] sm:$0xff]  ;;  %v751_v45 = vld [vmem:[%s2726_s21 + $0xfe0] sm:$0xff] }
 0x134   : > { %1791 = vmatprep.subr.mxu0 %v492_v46  ;;  %1862 = vmatprep.subr.mxu1 %v494_v47  ;;  %v753_v46 = vld [vmem:[%s2726_s21 + $0xff0] sm:$0xff]  ;;  %v720_v47 = vld [vmem:[%s2726_s21 + $0xee8] sm:$0xff] }
 0x135   : > { %1792 = vmatpush1.msra.mxu0 %v491_v48  ;;  %1863 = vmatpush1.msra.mxu1 %v493_v49  ;;  %v722_v48 = vld [vmem:[%s2726_s21 + $0xef8] sm:$0xff]  ;;  %v719_v49 = vld [vmem:[%s2726_s21 + $0xee0] sm:$0xff] }
 0x136   : > { %1793 = vmatprep.subr.mxu0 %v460_v52  ;;  %1864 = vmatprep.subr.mxu1 %v462_v53  ;;  %v721_v52 = vld [vmem:[%s2726_s21 + $0xef0] sm:$0xff]  ;;  %v688_v53 = vld [vmem:[%s2726_s21 + $0xde8] sm:$0xff] }
 0x137   : > { %1794 = vmatpush1.msra.mxu0 %v459_v55  ;;  %1865 = vmatpush1.msra.mxu1 %v461_v56  ;;  %v690_v55 = vld [vmem:[%s2726_s21 + $0xdf8] sm:$0xff]  ;;  %v687_v56 = vld [vmem:[%s2726_s21 + $0xde0] sm:$0xff] }
 0x138   : > { %1795 = vmatprep.subr.mxu0 %v428_v61  ;;  %1866 = vmatprep.subr.mxu1 %v430_v62  ;;  %v658_v61 = vld [vmem:[%s2726_s21 + $0xcf8] sm:$0xff]  ;;  %v655_v62 = vld [vmem:[%s2726_s21 + $0xce0] sm:$0xff] }
 0x139   : > { %1796 = vmatpush1.msra.mxu0 %v427_v63  ;;  %1867 = vmatpush1.msra.mxu1 %v429_v1  ;;  %v989_v15 = vpop.f32.mrf.mxu0  ;;  %v1060_v16 = vpop.f32.mrf.mxu1  ;;  %v657_v63 = vld [vmem:[%s2726_s21 + $0xcf0] sm:$0xff]  ;;  %v624_v1 = vld [vmem:[%s2726_s21 + $0xbe8] sm:$0xff] }
 0x13a   : > { %1797 = vmatprep.subr.mxu0 %v396_v5  ;;  %1868 = vmatprep.subr.mxu1 %v398_v6  ;;  %v990_v19 = vadd.f32 %v989_v15, %v766_v3  ;;  %v1061_v2 = vadd.f32 %v1060_v16, %v774_v4  ;;  %v626_v3 = vld [vmem:[%s2726_s21 + $0xbf8] sm:$0xff]  ;;  %v623_v4 = vld [vmem:[%s2726_s21 + $0xbe0] sm:$0xff]  ;;  %v625_v5 = vld [vmem:[%s2726_s21 + $0xbf0] sm:$0xff] }
 0x13b   : > { %1798 = vmatpush1.msra.mxu0 %v395_v7  ;;  %1869 = vmatpush1.msra.mxu1 %v397_v8  ;;  %v991_v22 = vpop.f32.mrf.mxu0  ;;  %v1062_v23 = vpop.f32.mrf.mxu1  ;;  %v592_v6 = vld [vmem:[%s2726_s21 + $0xae8] sm:$0xff]  ;;  %v594_v7 = vld [vmem:[%s2726_s21 + $0xaf8] sm:$0xff]  ;;  %v591_v8 = vld [vmem:[%s2726_s21 + $0xae0] sm:$0xff] }
 0x13c   : > { %1799 = vmatprep.subr.mxu0 %v364_v12  ;;  %1870 = vmatprep.subr.mxu1 %v366_v13  ;;  %v992_v26 = vadd.f32 %v991_v22, %v770_v9  ;;  %v1063_v28 = vadd.f32 %v1062_v23, %v778_v11  ;;  %v593_v9 = vld [vmem:[%s2726_s21 + $0xaf0] sm:$0xff]  ;;  %v562_v11 = vld [vmem:[%s2726_s21 + $0x9f8] sm:$0xff]  ;;  %v559_v12 = vld [vmem:[%s2726_s21 + $0x9e0] sm:$0xff]  ;;  %v3303_v22 = vsub.s32 4, %v3174_v41  ;;  %v3306_v23 = vsub.s32 6, %v3174_v41 }
 0x13d   : > { %1800 = vmatpush1.msra.mxu0 %v363_v17  ;;  %1871 = vmatpush1.msra.mxu1 %v365_v18  ;;  %v561_v13 = vld [vmem:[%s2726_s21 + $0x9f0] sm:$0xff]  ;;  %v528_v15 = vld [vmem:[%s2726_s21 + $0x8e8] sm:$0xff]  ;;  %v530_v16 = vld [vmem:[%s2726_s21 + $0x8f8] sm:$0xff] }
 0x13e   : > { %1801 = vmatprep.subr.mxu0 %v332_v20  ;;  %1872 = vmatprep.subr.mxu1 %v334_v21  ;;  %v2091_v33 = vcombine.low %v990_v19, %v992_v26  ;;  %v2092_v34 = vcombine.low %v1061_v2, %v1063_v28  ;;  %v527_v17 = vld [vmem:[%s2726_s21 + $0x8e0] sm:$0xff]  ;;  %v529_v18 = vld [vmem:[%s2726_s21 + $0x8f0] sm:$0xff]  ;;  %v496_v19 = vld [vmem:[%s2726_s21 + $0x7e8] sm:$0xff] }
 0x13f   : > { %1802 = vmatpush1.msra.mxu0 %v331_v24  ;;  %1873 = vmatpush1.msra.mxu1 %v333_v25  ;;  %v498_v2 = vld [vmem:[%s2726_s21 + $0x7f8] sm:$0xff]  ;;  %v495_v20 = vld [vmem:[%s2726_s21 + $0x7e0] sm:$0xff]  ;;  %v497_v21 = vld [vmem:[%s2726_s21 + $0x7f0] sm:$0xff] }
 0x140   : > { %1803 = vmatprep.subr.mxu0 %v300_v29  ;;  %1874 = vmatprep.subr.mxu1 %v302_v30  ;;  %v2099_v38 = vrot.slane %v2091_v33, %v3243_v27  ;;  %v2106_v39 = vrot.slane %v2092_v34, %v3243_v27  ;;  %v464_v24 = vld [vmem:[%s2726_s21 + $0x6e8] sm:$0xff]  ;;  %v466_v25 = vld [vmem:[%s2726_s21 + $0x6f8] sm:$0xff]  ;;  %v463_v26 = vld [vmem:[%s2726_s21 + $0x6e0] sm:$0xff]  ;;  %v3313_v29 = vsub.s32 5, %v3174_v41  ;;  %v3316_v30 = vsub.s32 7, %v3174_v41 }
 0x141   : > { %1804 = vmatpush1.msra.mxu0 %v299_v31  ;;  %1875 = vmatpush1.msra.mxu1 %v301_v32  ;;  %v465_v28 = vld [vmem:[%s2726_s21 + $0x6f0] sm:$0xff]  ;;  %v432_v31 = vld [vmem:[%s2726_s21 + $0x5e8] sm:$0xff]  ;;  %v434_v32 = vld [vmem:[%s2726_s21 + $0x5f8] sm:$0xff] }
 0x142   : > { %1805 = vmatprep.subr.mxu0 %v268_v35  ;;  %1876 = vmatprep.subr.mxu1 %v270_v36  ;;  %v2107_v42 = vcombine.low %v2099_v38, %v2106_v39  ;;  %v431_v33 = vld [vmem:[%s2726_s21 + $0x5e0] sm:$0xff]  ;;  %v433_v34 = vld [vmem:[%s2726_s21 + $0x5f0] sm:$0xff]  ;;  %v782_v35 = vrot.slane %v3195_v54, %v3303_v22  ;;  %v790_v36 = vrot.slane %v3195_v54, %v3306_v23  ;;  %v400_v41 = vld [vmem:[%s2726_s21 + $0x4e8] sm:$0xff] }
 0x143   : > { %1806 = vmatpush1.msra.mxu0 %v267_v37  ;;  %1839 = vmatprep.mubr.f32.mxu0 %v2552_v0  ;;  %v402_v37 = vld [vmem:[%s2726_s21 + $0x4f8] sm:$0xff]  ;;  %v399_v38 = vld [vmem:[%s2726_s21 + $0x4e0] sm:$0xff]  ;;  %v401_v39 = vld [vmem:[%s2726_s21 + $0x4f0] sm:$0xff] }
 0x144   : > { %1877 = vmatpush1.msra.mxu1 %v269_v40  ;;  %1910 = vmatprep.mubr.f32.mxu1 %v2552_v0  ;;  %2235 = vst [vmem:[%s3259_s11] sm:$0xff] %v2107_v42  ;;  %v786_v40 = vrot.slane %v3195_v54, %v3313_v29  ;;  %v794_v42 = vrot.slane %v3195_v54, %v3316_v30  ;;  %v336_v54 = vld [vmem:[%s2726_s21 + $0x2e8] sm:$0xff] }
 0x145   : > { %1840 = vmatmul.mubr.f32.vlgmr.msra.gmra.mxu0 %v3076_v14  ;;  %1911 = vmatmul.mubr.f32.vlgmr.msra.gmra.mxu1 %v3076_v14 }
 0x146   : > { %1917 = vmatprep.subr.mxu0 %v752_v43  ;;  %1988 = vmatprep.subr.mxu1 %v754_v44  ;;  %v368_v43 = vld [vmem:[%s2726_s21 + $0x3e8] sm:$0xff]  ;;  %v370_v44 = vld [vmem:[%s2726_s21 + $0x3f8] sm:$0xff] }
 0x147   : > { %1918 = vmatpush1.msra.mxu0 %v751_v45  ;;  %1989 = vmatpush1.msra.mxu1 %v753_v46 }
 0x148   : > { %1919 = vmatprep.subr.mxu0 %v720_v47  ;;  %1990 = vmatprep.subr.mxu1 %v722_v48  ;;  %v367_v47 = vld [vmem:[%s2726_s21 + $0x3e0] sm:$0xff]  ;;  %v369_v48 = vld [vmem:[%s2726_s21 + $0x3f0] sm:$0xff] }
 0x149   : > { %1920 = vmatpush1.msra.mxu0 %v719_v49  ;;  %1991 = vmatpush1.msra.mxu1 %v721_v52 }
 0x14a   : > { %1921 = vmatprep.subr.mxu0 %v688_v53  ;;  %1992 = vmatprep.subr.mxu1 %v690_v55  ;;  %v338_v53 = vld [vmem:[%s2726_s21 + $0x2f8] sm:$0xff] }
 0x14b   : > { %1922 = vmatpush1.msra.mxu0 %v687_v56  ;;  %1993 = vmatpush1.msra.mxu1 %v689_v58  ;;  %v335_v58 = vld [vmem:[%s2726_s21 + $0x2e0] sm:$0xff] }
 0x14c   : > { %1923 = vmatprep.subr.mxu0 %v656_v59  ;;  %1994 = vmatprep.subr.mxu1 %v658_v61  ;;  %v337_v59 = vld [vmem:[%s2726_s21 + $0x2f0] sm:$0xff] }
 0x14d   : > { %1924 = vmatpush1.msra.mxu0 %v655_v62  ;;  %1995 = vmatpush1.msra.mxu1 %v657_v63  ;;  %v304_v63 = vld [vmem:[%s2726_s21 + $0x1e8] sm:$0xff] }
 0x14e   : > { %1925 = vmatprep.subr.mxu0 %v624_v1  ;;  %1996 = vmatprep.subr.mxu1 %v626_v3  ;;  %v306_v1 = vld [vmem:[%s2726_s21 + $0x1f8] sm:$0xff]  ;;  %v303_v3 = vld [vmem:[%s2726_s21 + $0x1e0] sm:$0xff] }
 0x14f   : > { %1926 = vmatpush1.msra.mxu0 %v623_v4  ;;  %1997 = vmatpush1.msra.mxu1 %v625_v5  ;;  %v305_v4 = vld [vmem:[%s2726_s21 + $0x1f0] sm:$0xff] }
 0x150   : > { %1927 = vmatprep.subr.mxu0 %v592_v6  ;;  %1998 = vmatprep.subr.mxu1 %v594_v7  ;;  %v272_v7 = vld [vmem:[%s2726_s21 + $0xe8] sm:$0xff] }
 0x151   : > { %1928 = vmatpush1.msra.mxu0 %v591_v8  ;;  %1999 = vmatpush1.msra.mxu1 %v593_v9  ;;  %v274_v8 = vld [vmem:[%s2726_s21 + $0xf8] sm:$0xff]  ;;  %v271_v9 = vld [vmem:[%s2726_s21 + $0xe0] sm:$0xff] }
 0x152   : > { %1929 = vmatprep.subr.mxu0 %v560_v10  ;;  %2000 = vmatprep.subr.mxu1 %v562_v11 }
 0x153   : > { %1930 = vmatpush1.msra.mxu0 %v559_v12  ;;  %2001 = vmatpush1.msra.mxu1 %v561_v13  ;;  %v273_v12 = vld [vmem:[%s2726_s21 + $0xf0] sm:$0xff] }
 0x154   : > { %1931 = vmatprep.subr.mxu0 %v528_v15  ;;  %2002 = vmatprep.subr.mxu1 %v530_v16  ;;  %v756_v15 = vld [vmem:[%s3192_s25 + $0x8] sm:$0xff] }
 0x155   : > { %1932 = vmatpush1.msra.mxu0 %v527_v17  ;;  %2003 = vmatpush1.msra.mxu1 %v529_v18  ;;  %v798_v16 = vrot.slane %v756_v15, %v3185_v50  ;;  %v806_v17 = vrot.slane %v756_v15, %v3188_v51  ;;  %v802_v18 = vrot.slane %v756_v15, %v3201_v57 }
 0x156   : > { %1933 = vmatprep.subr.mxu0 %v496_v19  ;;  %2004 = vmatprep.subr.mxu1 %v498_v2  ;;  %v810_v19 = vrot.slane %v756_v15, %v3204_v60 }
 0x157   : > { %1934 = vmatpush1.msra.mxu0 %v495_v20  ;;  %2005 = vmatpush1.msra.mxu1 %v497_v21 }
 0x158   : > { %1935 = vmatprep.subr.mxu0 %v464_v24  ;;  %2006 = vmatprep.subr.mxu1 %v466_v25 }
 0x159   : > { %1936 = vmatpush1.msra.mxu0 %v463_v26  ;;  %2007 = vmatpush1.msra.mxu1 %v465_v28 }
 0x15a   : > { %1937 = vmatprep.subr.mxu0 %v432_v31  ;;  %2008 = vmatprep.subr.mxu1 %v434_v32 }
 0x15b   : > { %1938 = vmatpush1.msra.mxu0 %v431_v33  ;;  %2009 = vmatpush1.msra.mxu1 %v433_v34  ;;  %v1131_v45 = vpop.f32.mrf.mxu0  ;;  %v1202_v46 = vpop.f32.mrf.mxu1 }
 0x15c   : > { %1939 = vmatprep.subr.mxu0 %v400_v41  ;;  %2010 = vmatprep.subr.mxu1 %v402_v37  ;;  %v1132_v49 = vadd.f32 %v1131_v45, %v782_v35  ;;  %v1203_v52 = vadd.f32 %v1202_v46, %v790_v36  ;;  %v814_v35 = vrot.slane %v756_v15, %v3303_v22 }
 0x15d   : > { %1940 = vmatpush1.msra.mxu0 %v399_v38  ;;  %2011 = vmatpush1.msra.mxu1 %v401_v39  ;;  %v1133_v55 = vpop.f32.mrf.mxu0  ;;  %v1204_v56 = vpop.f32.mrf.mxu1  ;;  %v822_v36 = vrot.slane %v756_v15, %v3306_v23  ;;  %v818_v41 = vrot.slane %v756_v15, %v3313_v29  ;;  %v826_v37 = vrot.slane %v756_v15, %v3316_v30 }
 0x15e   : > { %1941 = vmatprep.subr.mxu0 %v368_v43  ;;  %2012 = vmatprep.subr.mxu1 %v370_v44  ;;  %v1134_v61 = vadd.f32 %v1133_v55, %v786_v40  ;;  %v1205_v62 = vadd.f32 %v1204_v56, %v794_v42 }
 0x15f   : > { %1942 = vmatpush1.msra.mxu0 %v367_v47  ;;  %2013 = vmatpush1.msra.mxu1 %v369_v48 }
 0x160   : > { %1943 = vmatprep.subr.mxu0 %v336_v54  ;;  %2014 = vmatprep.subr.mxu1 %v338_v53  ;;  %v2108_v5 = vcombine.low %v1132_v49, %v1134_v61  ;;  %v2109_v6 = vcombine.low %v1203_v52, %v1205_v62  ;;  %v757_v53 = vld [vmem:[%s3192_s25 + $0x10] sm:$0xff] }
 0x161   : > { %1944 = vmatpush1.msra.mxu0 %v335_v58  ;;  %2015 = vmatpush1.msra.mxu1 %v337_v59  ;;  %v830_v55 = vrot.slane %v757_v53, %v3185_v50  ;;  %v838_v56 = vrot.slane %v757_v53, %v3188_v51  ;;  %v834_v58 = vrot.slane %v757_v53, %v3201_v57 }
 0x162   : > { %1945 = vmatprep.subr.mxu0 %v304_v63  ;;  %2016 = vmatprep.subr.mxu1 %v306_v1  ;;  %v2116_v10 = vrot.slane %v2108_v5, %v3243_v27  ;;  %v2123_v11 = vrot.slane %v2109_v6, %v3243_v27  ;;  %v842_v59 = vrot.slane %v757_v53, %v3204_v60 }
 0x163   : > { %1946 = vmatpush1.msra.mxu0 %v303_v3  ;;  %2017 = vmatpush1.msra.mxu1 %v305_v4  ;;  %v850_v15 = vrot.slane %v757_v53, %v3313_v29 }
 0x164   : > { %1947 = vmatprep.subr.mxu0 %v272_v7  ;;  %2018 = vmatprep.subr.mxu1 %v274_v8  ;;  %v2124_v13 = vcombine.low %v2116_v10, %v2123_v11 }
 0x165   : > { %1948 = vmatpush1.msra.mxu0 %v271_v9  ;;  %1981 = vmatprep.mubr.f32.mxu0 %v2552_v0 }
 0x166   : > { %2019 = vmatpush1.msra.mxu1 %v273_v12  ;;  %2052 = vmatprep.mubr.f32.mxu1 %v2552_v0  ;;  %2236 = vst [vmem:[%s3259_s11 + $0x8] sm:$0xff] %v2124_v13  ;;  %v846_v12 = vrot.slane %v757_v53, %v3303_v22  ;;  %v854_v13 = vrot.slane %v757_v53, %v3306_v23 }
 0x167   : > { %1982 = vmatmul.mubr.f32.vlgmr.msra.gmra.mxu0 %v3076_v14  ;;  %2053 = vmatmul.mubr.f32.vlgmr.msra.gmra.mxu1 %v3076_v14 }
 0x17d   : > { %v1273_v2 = vpop.f32.mrf.mxu0  ;;  %v1344_v20 = vpop.f32.mrf.mxu1 }
 0x17e   : > { %v1274_v21 = vadd.f32 %v1273_v2, %v798_v16  ;;  %v1345_v24 = vadd.f32 %v1344_v20, %v806_v17  ;;  %v858_v16 = vrot.slane %v757_v53, %v3316_v30 }
 0x17f   : > { %v1275_v0 = vpop.f32.mrf.mxu0  ;;  %v1346_v25 = vpop.f32.mrf.mxu1 }
 0x180   : > { %v1276_v26 = vadd.f32 %v1275_v0, %v802_v18  ;;  %v1347_v28 = vadd.f32 %v1346_v25, %v810_v19 }
 0x182   : > { %v2125_v31 = vcombine.low %v1274_v21, %v1276_v26  ;;  %v2126_v14 = vcombine.low %v1345_v24, %v1347_v28 }
 0x184   : > { %v2133_v32 = vrot.slane %v2125_v31, %v3243_v27  ;;  %v2140_v33 = vrot.slane %v2126_v14, %v3243_v27 }
 0x186   : > { %v2141_v34 = vcombine.low %v2133_v32, %v2140_v33  ;;  %v758_v32 = vld [vmem:[%s3192_s25 + $0x18] sm:$0xff] }
 0x187   : > { %v862_v33 = vrot.slane %v758_v32, %v3185_v50 }
 0x188   : > { %2237 = vst [vmem:[%s3259_s11 + $0x10] sm:$0xff] %v2141_v34  ;;  %v870_v34 = vrot.slane %v758_v32, %v3188_v51 }
 0x19f   : > { %v1415_v38 = vpop.f32.mrf.mxu0  ;;  %v1486_v39 = vpop.f32.mrf.mxu1 }
 0x1a0   : > { %v1416_v40 = vadd.f32 %v1415_v38, %v814_v35  ;;  %v1487_v42 = vadd.f32 %v1486_v39, %v822_v36  ;;  %v866_v35 = vrot.slane %v758_v32, %v3201_v57  ;;  %v874_v36 = vrot.slane %v758_v32, %v3204_v60 }
 0x1a1   : > { %v1417_v43 = vpop.f32.mrf.mxu0  ;;  %v1488_v44 = vpop.f32.mrf.mxu1  ;;  %v878_v57 = vrot.slane %v758_v32, %v3303_v22  ;;  %v886_v60 = vrot.slane %v758_v32, %v3306_v23 }
 0x1a2   : > { %v1418_v45 = vadd.f32 %v1417_v43, %v818_v41  ;;  %v1489_v46 = vadd.f32 %v1488_v44, %v826_v37 }
 0x1a4   : > { %v2142_v47 = vcombine.low %v1416_v40, %v1418_v45  ;;  %v2143_v48 = vcombine.low %v1487_v42, %v1489_v46 }
 0x1a6   : > { %v2150_v49 = vrot.slane %v2142_v47, %v3243_v27  ;;  %v2157_v52 = vrot.slane %v2143_v48, %v3243_v27  ;;  %v882_v48 = vrot.slane %v758_v32, %v3313_v29 }
 0x1a8   : > { %v2158_v54 = vcombine.low %v2150_v49, %v2157_v52  ;;  %v890_v49 = vrot.slane %v758_v32, %v3316_v30 }
 0x1aa   : > { %2238 = vst [vmem:[%s3259_s11 + $0x18] sm:$0xff] %v2158_v54 }
 0x1c1   : > { %v1557_v61 = vpop.f32.mrf.mxu0  ;;  %v1628_v62 = vpop.f32.mrf.mxu1 }
 0x1c2   : > { %v1558_v63 = vadd.f32 %v1557_v61, %v830_v55  ;;  %v1629_v1 = vadd.f32 %v1628_v62, %v838_v56 }
 0x1c3   : > { %v1559_v3 = vpop.f32.mrf.mxu0  ;;  %v1630_v4 = vpop.f32.mrf.mxu1 }
 0x1c4   : > { %v1560_v5 = vadd.f32 %v1559_v3, %v834_v58  ;;  %v1631_v6 = vadd.f32 %v1630_v4, %v842_v59 }
 0x1c6   : > { %v2159_v7 = vcombine.low %v1558_v63, %v1560_v5  ;;  %v2160_v8 = vcombine.low %v1629_v1, %v1631_v6 }
 0x1c8   : > { %v2167_v9 = vrot.slane %v2159_v7, %v3243_v27  ;;  %v2174_v10 = vrot.slane %v2160_v8, %v3243_v27 }
 0x1ca   : > { %v2175_v11 = vcombine.low %v2167_v9, %v2174_v10 }
 0x1cc   : > { %2239 = vst [vmem:[%s3259_s11 + $0x20] sm:$0xff] %v2175_v11 }
 0x1e3   : > { %v1699_v17 = vpop.f32.mrf.mxu0  ;;  %v1770_v18 = vpop.f32.mrf.mxu1 }
 0x1e4   : > { %v1700_v19 = vadd.f32 %v1699_v17, %v846_v12  ;;  %v1771_v2 = vadd.f32 %v1770_v18, %v854_v13 }
 0x1e5   : > { %v1701_v20 = vpop.f32.mrf.mxu0  ;;  %v1772_v21 = vpop.f32.mrf.mxu1 }
 0x1e6   : > { %v1702_v24 = vadd.f32 %v1701_v20, %v850_v15  ;;  %v1773_v0 = vadd.f32 %v1772_v21, %v858_v16 }
 0x1e8   : > { %v2176_v25 = vcombine.low %v1700_v19, %v1702_v24  ;;  %v2177_v26 = vcombine.low %v1771_v2, %v1773_v0 }
 0x1ea   : > { %v2184_v28 = vrot.slane %v2176_v25, %v3243_v27  ;;  %v2191_v31 = vrot.slane %v2177_v26, %v3243_v27 }
 0x1ec   : > { %v2192_v14 = vcombine.low %v2184_v28, %v2191_v31 }
 0x1ee   : > { %2240 = vst [vmem:[%s3259_s11 + $0x28] sm:$0xff] %v2192_v14 }
 0x205   : > { %v1841_v41 = vpop.f32.mrf.mxu0  ;;  %v1912_v37 = vpop.f32.mrf.mxu1 }
 0x206   : > { %v1842_v38 = vadd.f32 %v1841_v41, %v862_v33  ;;  %v1913_v39 = vadd.f32 %v1912_v37, %v870_v34 }
 0x207   : > { %v1843_v40 = vpop.f32.mrf.mxu0  ;;  %v1914_v42 = vpop.f32.mrf.mxu1 }
 0x208   : > { %v1844_v43 = vadd.f32 %v1843_v40, %v866_v35  ;;  %v1915_v44 = vadd.f32 %v1914_v42, %v874_v36 }
 0x20a   : > { %v2193_v45 = vcombine.low %v1842_v38, %v1844_v43  ;;  %v2194_v46 = vcombine.low %v1913_v39, %v1915_v44 }
 0x20c   : > { %v2201_v47 = vrot.slane %v2193_v45, %v3243_v27  ;;  %v2208_v50 = vrot.slane %v2194_v46, %v3243_v27 }
 0x20e   : > { %v2209_v51 = vcombine.low %v2201_v47, %v2208_v50 }
 0x210   : > { %2241 = vst [vmem:[%s3259_s11 + $0x30] sm:$0xff] %v2209_v51 }
 0x227   : > { %v1983_v52 = vpop.f32.mrf.mxu0  ;;  %v2054_v54 = vpop.f32.mrf.mxu1 }
 0x228   : > { %v1984_v56 = vadd.f32 %v1983_v52, %v878_v57  ;;  %v2055_v58 = vadd.f32 %v2054_v54, %v886_v60 }
 0x229   : > { %v1985_v53 = vpop.f32.mrf.mxu0  ;;  %v2056_v55 = vpop.f32.mrf.mxu1 }
 0x22a   : > { %v1986_v59 = vadd.f32 %v1985_v53, %v882_v48  ;;  %v2057_v61 = vadd.f32 %v2056_v55, %v890_v49 }
 0x22c   : > { %v2210_v62 = vcombine.low %v1984_v56, %v1986_v59  ;;  %v2211_v63 = vcombine.low %v2055_v58, %v2057_v61 }
 0x22e   : > { %v2218_v1 = vrot.slane %v2210_v62, %v3243_v27  ;;  %v2225_v22 = vrot.slane %v2211_v63, %v3243_v27 }
 0x230   : > { %v2226_v23 = vcombine.low %v2218_v1, %v2225_v22 }
 0x232   : > { %2242 = vst [vmem:[%s3259_s11 + $0x38] sm:$0xff] %v2226_v23 }
 0x233 PF: > { %p14_p0 = scmp.ge.s32.totalorder %s2595_s16, 4   ;;  %s3429_s12 = smov %s2536_s13 }
 0x234   : > { %s3430_s13 = smov %s2540_s14  ;;  %s3431_s14 = smov %s2605_s19 }
 0x235   : > { %s3432_s15 = smov %s2595_s16  ;;  %16 = sbr.rel (!%p14_p0) target bundleno = 4 (0x4), region = 88 }
 0x23a   :  { %2265 = vsyncpa [#allocation3], 1 }
 0x23b   :  { %2267 = vsyncpa [#allocation3 + $0x1], 1 }
 0x23c   :  { %2268 = vsyncpa [#allocation5], 1 }
 0x23d   :  { %2270 = vsyncpa [#allocation5 + $0x1], 1 }

// kernel: small_vae_forward.3
= control target key start
LH: loop header
LB: loop body
LE: loop exit
PB: predicated region body
PF: predicated region fallthrough
CT: control target
= control target key end

     0   :  { %s5752_s21 = smov 0   ;;  %s8063_s0 = inlined_call_operand.vmem [shape: f32[2,32,256], index: 0, kind: input, shape index: {}]   ;;  %s8064_s1 = inlined_call_operand.vmem [shape: f32[9,256], index: 1, kind: input, shape index: {}]   ;;  %s8065_s2 = inlined_call_operand.vmem [shape: f32[9,64,32], index: 2, kind: input, shape index: {}]   ;;  %s8066_s3 = inlined_call_operand.vmem [shape: f32[64,1], index: 3, kind: input, shape index: {}]   ;;  %s8067_s4 = inlined_call_operand.vmem [shape: f32[16,48,16], index: 4, kind: input, shape index: {}]   ;;  %s8068_s5 = inlined_call_operand.vmem [shape: f32[48,1], index: 5, kind: input, shape index: {}]   ;;  %s8069_s6 = inlined_call_operand.vmem [shape: f32[2,48,256], index: 6, kind: output, shape index: {}]  }
   0x1 LB: > { %s5260_s22 = sadd.s32 4294967295, %s5699_s21   ;;  %p5264_p0 = scmp.ge.s32.totalorder %s5699_s21, 1  ;;  %s5699_s21 = sphi %s5752_s21, %s16_s21  }
   0x2   : > { %p212_p1 = scmp.lt.s32.totalorder %s5699_s21, 3 }
   0x4   : > { %p213_p2 = pnand %p5264_p0, %p212_p1 }
   0x6   : > { %216 = sbr.rel (%p213_p2) target bundleno = 1424 (0x590), region = 44 }
   0xb   : > { %p242_p3 = scmp.lt.s32.totalorder %s5260_s22, 1  ;;  %s5701_s27 = smov 17   ;;  %v311_v2 = vlaneseq  ;;  %v5292_v12 = vld [vmem:[%s8064_s1 + $0x2] ss:$8 sm:$0x3]  ;;  %vm284_vm0 = vcmask 138240  }
   0xc   : > { %v5309_v15 = vld [vmem:[%s8064_s1 + $0x3] ss:$8 sm:$0x3]  ;;  %s5702_s8 = smov 2   ;;  %s5703_s11 = smov 16   ;;  %v8070_v57 = vmov 0.0  }
   0xd   : > { %s8230_s22 = smov (!%p242_p3, %s5260_s22), 1  ;;  %v312_v5 = vshrl.u32 %v311_v2, 7  ;;  %v5342_v18 = vld [vmem:[%s8064_s1 + $0x5] ss:$8 sm:$0x3]  ;;  %s5704_s14 = smov 18   ;;  %484 = vmatprep.mubr.f32.mxu0 %v8070_v57  ;;  %633 = vmatprep.mubr.f32.mxu1 %v8070_v57 }
   0xe   : > { %s5609_s23 = sshll.u32 %s8230_s22, 6  ;;  %v5359_v21 = vld [vmem:[%s8064_s1 + $0x6] ss:$8 sm:$0x3]  ;;  %s5705_s17 = smov 32   ;;  %vm395_vm1 = vcmask 261120  }
   0xf   : > { %s246_s26 = scalar_lea.vmem %s8063_s0, %s5609_s23  ;;  %v317_v8 = vsub.s32 1, %v312_v5  ;;  %v313_v9 = vsub.s32 0, %v312_v5  ;;  %v5392_v24 = vld [vmem:[%s8064_s1 + $0x10] ss:$8 sm:$0x3]  ;;  %s5706_s18 = smov 34  }
  0x10   : > { %v258_v0 = vld [vmem:[%s246_s26 + $0x30] sm:$0xff]  ;;  %v256_v1 = vld [vmem:[%s246_s26 + $0x20] sm:$0xff]  ;;  %v259_v3 = vld [vmem:[%s246_s26 + $0x38] sm:$0xff]  ;;  %s5707_s23 = smov 127   ;;  %s5709_s24 = smov 111   ;;  %vm685_vm2 = vcmask 15360  }
  0x11   : > { %280 = vrot.lane.b32.xlu0 %v258_v0, %s5701_s27  ;;  %276 = vrot.lane.b32.xlu1 %v256_v1, %s5701_s27  ;;  %v257_v4 = vld [vmem:[%s246_s26 + $0x28] sm:$0xff]  ;;  %v255_v6 = vld [vmem:[%s246_s26 + $0x18] sm:$0xff]  ;;  %v680_v13 = vrot.slane %v5292_v12, %v317_v8  ;;  %v676_v14 = vrot.slane %v5292_v12, %v313_v9  ;;  %v927_v16 = vrot.slane %v5309_v15, %v317_v8  ;;  %s5710_s25 = smov 126   ;;  %s5711_s9 = smov 112   ;;  %vm932_vm3 = vcmask 130048  }
  0x12   : > { %v254_v7 = vld [vmem:[%s246_s26 + $0x10] sm:$0xff]  ;;  %v253_v10 = vld [vmem:[%s246_s26 + $0x8] sm:$0xff]  ;;  %v252_v11 = vld [vmem:[%s246_s26] sm:$0xff]  ;;  %v923_v17 = vrot.slane %v5309_v15, %v313_v9  ;;  %v1373_v19 = vrot.slane %v5342_v18, %v313_v9  ;;  %v1377_v20 = vrot.slane %v5342_v18, %v317_v8  ;;  %v1624_v22 = vrot.slane %v5359_v21, %v317_v8  ;;  %s5712_s16 = smov 110   ;;  %s5714_s28 = smov 95  }
  0x13   : > { %v1620_v23 = vrot.slane %v5359_v21, %v313_v9  ;;  %v2069_v25 = vrot.slane %v5392_v24, %v313_v9  ;;  %v2073_v26 = vrot.slane %v5392_v24, %v317_v8  ;;  %v309_v29 = vld [vmem:[%s8064_s1] ss:$8 sm:$0x3]  ;;  %v331_v1 = vld [vmem:[%s8065_s2 + $0x10] sm:$0xff]  ;;  %v332_v5 = vld [vmem:[%s8065_s2 + $0x18] sm:$0xff]  ;;  %vm1382_vm4 = vcmask 146432  }
  0x14   : > { %v5792_v30 = vrot.slane %v309_v29, %v317_v8  ;;  %v5794_v31 = vrot.slane %v309_v29, %v313_v9  ;;  %v333_v9 = vld [vmem:[%s8065_s2 + $0x20] sm:$0xff]  ;;  %v334_v12 = vld [vmem:[%s8065_s2 + $0x28] sm:$0xff]  ;;  %v335_v15 = vld [vmem:[%s8065_s2 + $0x30] sm:$0xff]  ;;  %vm378_vm5 = vcmask 1039360   ;;  %vm2078_vm6 = vcmask 277504   ;;  %s5715_s10 = smov 94  }
  0x15   : > { %282 = vrot.lane.b32.xlu0 %v259_v3, %s5701_s27  ;;  %278 = vrot.lane.b32.xlu1 %v257_v4, %s5701_s27  ;;  %vm747_vm7 = vcmask 1031168   ;;  %vm1197_vm8 = vcmask 908288   ;;  %vm994_vm9 = vcmask 916480   ;;  %vm1444_vm10 = vcmask 900096  }
  0x16   : > { %8106 = vst [vmem:[#allocation2_spill] sm:$0xff] %v5792_v30  ;;  %8107 = vst [vmem:[#allocation3_spill] sm:$0xff] %v5794_v31  ;;  %vm1690_vm11 = vcmask 785408   ;;  %vm1893_vm12 = vcmask 777216   ;;  %vm2140_vm13 = vcmask 769024  }
  0x19   : > { %274 = vrot.lane.b32.xlu1 %v255_v6, %s5701_s27  ;;  %272 = vrot.lane.b32.xlu0 %v254_v7, %s5701_s27 }
  0x1d   : > { %270 = vrot.lane.b32.xlu1 %v253_v10, %s5701_s27  ;;  %268 = vrot.lane.b32.xlu0 %v252_v11, %s5701_s27 }
  0x21   : > { %683 = vrot.lane.b32.xlu1 %v680_v13, %s5702_s8  ;;  %681 = vrot.lane.b32.xlu0 %v676_v14, %s5702_s8 }
  0x25   : > { %930 = vrot.lane.b32.xlu1 %v927_v16, %s5703_s11  ;;  %928 = vrot.lane.b32.xlu0 %v923_v17, %s5703_s11 }
  0x29   : > { %1378 = vrot.lane.b32.xlu1 %v1373_v19, %s5704_s14  ;;  %1380 = vrot.lane.b32.xlu0 %v1377_v20, %s5704_s14  ;;  %v336_v19 = vld [vmem:[%s8065_s2 + $0x38] sm:$0xff] }
  0x2d   : > { %1627 = vrot.lane.b32.xlu1 %v1624_v22, %s5705_s17  ;;  %1625 = vrot.lane.b32.xlu0 %v1620_v23, %s5705_s17  ;;  %s5713_s17 = smov 96  }
  0x31   : > { %2074 = vrot.lane.b32.xlu1 %v2069_v25, %s5706_s18  ;;  %2076 = vrot.lane.b32.xlu0 %v2073_v26, %s5706_s18 }
  0x83   : > { %v281_v27 = vpop.permute.xlu0 %280  ;;  %v277_v28 = vpop.permute.xlu1 %276 }
  0x84   : > { %v5797_v32 = vsel %vm284_vm0, 0.0, %v281_v27  ;;  %v5809_v38 = vsel %vm284_vm0, 0.0, %v277_v28 }
  0x85   : > { %v5825_v41 = vmul.f32 %v5794_v31, %v5797_v32  ;;  %v5837_v46 = vmul.f32 %v5794_v31, %v5809_v38 }
  0x87   : > { %v283_v33 = vpop.permute.xlu0 %282  ;;  %v279_v34 = vpop.permute.xlu1 %278 }
  0x88   : > { %v5800_v35 = vsel %vm284_vm0, %v281_v27, %v283_v33  ;;  %v5803_v36 = vsel %vm284_vm0, %v283_v33, 0.0  ;;  %v5806_v37 = vsel %vm284_vm0, %v277_v28, %v279_v34  ;;  %v5862_v53 = vsel %vm284_vm0, %v279_v34, 0.0 }
  0x89   : > { %376 = vrot.lane.b32.xlu1 %v5803_v36, %s5707_s23  ;;  %374 = vrot.lane.b32.xlu0 %v5800_v35, %s5707_s23  ;;  %v5817_v39 = vmul.f32 %v5792_v30, %v5800_v35  ;;  %v5821_v40 = vmul.f32 %v5792_v30, %v5806_v37 }
  0x8b   : > { %5610 = vmatprep.subr.mxu1 %v5817_v39  ;;  %v275_v42 = vpop.permute.xlu1 %274  ;;  %v273_v43 = vpop.permute.xlu0 %272 }
  0x8c   : > { %v5829_v44 = vsel %vm284_vm0, %v273_v43, %v275_v42  ;;  %v5832_v45 = vsel %vm284_vm0, 0.0, %v273_v43  ;;  %5614 = vmatpush1.msra.mxu1 %v5825_v41  ;;  %v5875_v56 = vsel %vm284_vm0, %v275_v42, 0.0 }
  0x8d   : > { %5611 = vmatprep.subr.mxu1 %v5821_v40  ;;  %368 = vrot.lane.b32.xlu1 %v5806_v37, %s5707_s23  ;;  %v5844_v47 = vmul.f32 %v5792_v30, %v5829_v44  ;;  %v5848_v48 = vmul.f32 %v5794_v31, %v5832_v45 }
  0x8e   : > { %372 = vrot.lane.b32.xlu0 %v5797_v32, %s5707_s23  ;;  %5615 = vmatpush1.msra.mxu1 %v5837_v46 }
  0x8f   : > { %v271_v49 = vpop.permute.xlu1 %270  ;;  %v269_v50 = vpop.permute.xlu0 %268  ;;  %5612 = vmatprep.subr.mxu1 %v5844_v47 }
  0x90   : > { %v5855_v51 = vsel %vm284_vm0, %v269_v50, %v271_v49  ;;  %v5858_v52 = vsel %vm284_vm0, 0.0, %v269_v50  ;;  %5616 = vmatpush1.msra.mxu1 %v5848_v48  ;;  %v5892_v58 = vsel %vm284_vm0, %v271_v49, 0.0 }
  0x91   : > { %366 = vrot.lane.b32.xlu1 %v5809_v38, %s5707_s23  ;;  %v5868_v54 = vmul.f32 %v5792_v30, %v5855_v51  ;;  %v5872_v55 = vmul.f32 %v5794_v31, %v5858_v52 }
  0x92   : > { %370 = vrot.lane.b32.xlu0 %v5862_v53, %s5707_s23 }
  0x93   : > { %5613 = vmatprep.subr.mxu1 %v5868_v54  ;;  %v5910_v59 = vpop.permute.xlu1 %683  ;;  %v5918_v61 = vpop.permute.xlu0 %681 }
  0x94   : > { %5617 = vmatpush1.msra.mxu1 %v5872_v55  ;;  %8108 = vst [vmem:[#allocation4_spill] sm:$0xff] %v5910_v59  ;;  %v701_v60 = vmul.f32 %v5910_v59, %v5803_v36  ;;  %8109 = vst [vmem:[#allocation5_spill] sm:$0xff] %v5918_v61  ;;  %v696_v62 = vmul.f32 %v5918_v61, %v5809_v38  ;;  %v695_v63 = vmul.f32 %v5910_v59, %v5875_v56 }
  0x95   : > { %364 = vrot.lane.b32.xlu1 %v5875_v56, %s5707_s23  ;;  %v699_v0 = vmul.f32 %v5918_v61, %v5797_v32  ;;  %5286 = vmatmul.mubr.msk.f32.vlgmr.msra.gmra.mxu1 %vm395_vm1, %v331_v1  ;;  %v690_v2 = vmul.f32 %v5918_v61, %v5858_v52  ;;  %v698_v4 = vmul.f32 %v5910_v59, %v5862_v53 }
  0x96   : > { %362 = vrot.lane.b32.xlu0 %v5829_v44, %s5707_s23  ;;  %639 = vmatprep.mubr.f32.mxu1 %v8070_v57  ;;  %v693_v8 = vmul.f32 %v5918_v61, %v5832_v45  ;;  %v692_v11 = vmul.f32 %v5910_v59, %v5892_v58  ;;  %v5993_v18 = vsel %vm685_vm2, %v5918_v61, %v5910_v59 }
  0x97   : > { %v5941_v3 = vpop.permute.xlu1 %930  ;;  %v5954_v7 = vpop.permute.xlu0 %928  ;;  %8112 = vst [vmem:[#allocation8_spill] sm:$0xff] %v5993_v18  ;;  %v697_v20 = vmul.f32 %v5993_v18, %v5806_v37  ;;  %v691_v22 = vmul.f32 %v5993_v18, %v5855_v51  ;;  %v700_v26 = vmul.f32 %v5993_v18, %v5800_v35  ;;  %v694_v28 = vmul.f32 %v5993_v18, %v5829_v44 }
  0x98   : > { %8110 = vst [vmem:[#allocation6_spill] sm:$0xff] %v5941_v3  ;;  %v948_v6 = vmul.f32 %v5941_v3, %v5803_v36  ;;  %8111 = vst [vmem:[#allocation7_spill] sm:$0xff] %v5954_v7  ;;  %v943_v10 = vmul.f32 %v5954_v7, %v5809_v38  ;;  %v940_v13 = vmul.f32 %v5954_v7, %v5832_v45 }
  0x99   : > { %356 = vrot.lane.b32.xlu1 %v5855_v51, %s5707_s23  ;;  %5287 = vmatmul.mubr.msk.f32.gmra.mxu1 %vm395_vm1, %v332_v5  ;;  %v946_v14 = vmul.f32 %v5954_v7, %v5797_v32  ;;  %v937_v16 = vmul.f32 %v5954_v7, %v5858_v52  ;;  %v945_v17 = vmul.f32 %v5941_v3, %v5862_v53 }
  0x9a   : > { %360 = vrot.lane.b32.xlu0 %v5832_v45, %s5707_s23  ;;  %645 = vmatprep.mubr.f32.mxu1 %v8070_v57  ;;  %v942_v21 = vmul.f32 %v5941_v3, %v5875_v56  ;;  %v939_v23 = vmul.f32 %v5941_v3, %v5892_v58  ;;  %v6015_v24 = vsel %vm932_vm3, %v5954_v7, %v5941_v3 }
  0x9b   : > { %8113 = vst [vmem:[#allocation9_spill] sm:$0xff] %v6015_v24  ;;  %v944_v25 = vmul.f32 %v6015_v24, %v5806_v37  ;;  %v941_v27 = vmul.f32 %v6015_v24, %v5829_v44  ;;  %v938_v29 = vmul.f32 %v6015_v24, %v5855_v51  ;;  %v947_v33 = vmul.f32 %v6015_v24, %v5800_v35  ;;  %v6036_v34 = vpop.permute.xlu1 %1378  ;;  %v6038_v42 = vpop.permute.xlu0 %1380 }
  0x9c   : > { %8114 = vst [vmem:[#allocation10_spill] sm:$0xff] %v6036_v34  ;;  %8115 = vst [vmem:[#allocation11_spill] sm:$0xff] %v6038_v42  ;;  %v6045_v43 = vsel %vm1382_vm4, %v6036_v34, %v6038_v42  ;;  %v1398_v49 = vmul.f32 %v6038_v42, %v5803_v36  ;;  %v1393_v5 = vmul.f32 %v6036_v34, %v5809_v38 }
  0x9d   : > { %354 = vrot.lane.b32.xlu1 %v5858_v52, %s5707_s23  ;;  %5288 = vmatmul.mubr.msk.f32.gmra.mxu1 %vm395_vm1, %v333_v9  ;;  %8116 = vst [vmem:[#allocation12_spill] sm:$0xff] %v6045_v43  ;;  %v1397_v50 = vmul.f32 %v6045_v43, %v5800_v35 }
  0x9e   : > { %358 = vrot.lane.b32.xlu0 %v5892_v58, %s5707_s23  ;;  %651 = vmatprep.mubr.f32.mxu1 %v8070_v57 }
  0xa1   : > { %1193 = vrot.lane.b32.xlu1 %v5800_v35, %s5709_s24  ;;  %5289 = vmatmul.mubr.msk.f32.gmra.mxu1 %vm395_vm1, %v334_v12 }
  0xa2   : > { %1195 = vrot.lane.b32.xlu0 %v5803_v36, %s5709_s24  ;;  %657 = vmatprep.mubr.f32.mxu1 %v8070_v57 }
  0xa5   : > { %1187 = vrot.lane.b32.xlu1 %v5806_v37, %s5709_s24  ;;  %5290 = vmatmul.mubr.msk.f32.gmra.mxu1 %vm395_vm1, %v335_v15  ;;  %v1392_v15 = vmul.f32 %v6038_v42, %v5875_v56 }
  0xa6   : > { %1191 = vrot.lane.b32.xlu0 %v5797_v32, %s5709_s24  ;;  %663 = vmatprep.mubr.f32.mxu1 %v8070_v57 }
  0xa9   : > { %1181 = vrot.lane.b32.xlu1 %v5829_v44, %s5709_s24  ;;  %5291 = vmatmul.mubr.msk.f32.gmra.mxu1 %vm395_vm1, %v336_v19  ;;  %v1390_v19 = vmul.f32 %v6036_v34, %v5832_v45 }
  0xaa   : > { %1189 = vrot.lane.b32.xlu0 %v5862_v53, %s5709_s24  ;;  %1099 = vmatprep.mubr.f32.mxu1 %v8070_v57 }
  0xad   : > { %1175 = vrot.lane.b32.xlu1 %v5855_v51, %s5709_s24 }
  0xae   : > { %1185 = vrot.lane.b32.xlu0 %v5809_v38, %s5709_s24 }
  0xb1   : > { %745 = vrot.lane.b32.xlu1 %v701_v60, %s5710_s25  ;;  %v6053_v60 = vpop.permute.xlu1 %1627 }
  0xb2   : > { %1183 = vrot.lane.b32.xlu0 %v5875_v56, %s5709_s24  ;;  %8117 = vst [vmem:[#allocation13_spill] sm:$0xff] %v6053_v60 }
  0xb5   : > { %735 = vrot.lane.b32.xlu1 %v696_v62, %s5710_s25  ;;  %v6055_v62 = vpop.permute.xlu0 %1625 }
  0xb6   : > { %1179 = vrot.lane.b32.xlu0 %v5832_v45, %s5709_s24  ;;  %8118 = vst [vmem:[#allocation14_spill] sm:$0xff] %v6055_v62  ;;  %v6066_v1 = vsel %vm395_vm1, %v6055_v62, %v6053_v60 }
  0xb7   : > { %8119 = vst [vmem:[#allocation15_spill] sm:$0xff] %v6066_v1 }
  0xb9   : > { %733 = vrot.lane.b32.xlu1 %v695_v63, %s5710_s25  ;;  %v1394_v63 = vmul.f32 %v6045_v43, %v5806_v37  ;;  %v6084_v9 = vpop.permute.xlu0 %2076 }
  0xba   : > { %741 = vrot.lane.b32.xlu0 %v699_v0, %s5710_s25  ;;  %v1396_v0 = vmul.f32 %v6036_v34, %v5797_v32  ;;  %8121 = vst [vmem:[#allocation17_spill] sm:$0xff] %v6084_v9 }
  0xbd   : > { %723 = vrot.lane.b32.xlu1 %v690_v2, %s5710_s25  ;;  %v1643_v2 = vmul.f32 %v6066_v1, %v5800_v35 }
  0xbe   : > { %739 = vrot.lane.b32.xlu0 %v698_v4, %s5710_s25  ;;  %v1395_v4 = vmul.f32 %v6038_v42, %v5862_v53 }
  0xc1   : > { %992 = vrot.lane.b32.xlu1 %v948_v6, %s5711_s9  ;;  %v1644_v6 = vmul.f32 %v6053_v60, %v5803_v36 }
  0xc2   : > { %729 = vrot.lane.b32.xlu0 %v693_v8, %s5710_s25  ;;  %v6082_v8 = vpop.permute.xlu1 %2074 }
  0xc3   : > { %8120 = vst [vmem:[#allocation16_spill] sm:$0xff] %v6082_v8 }
  0xc5   : > { %982 = vrot.lane.b32.xlu1 %v943_v10, %s5711_s9  ;;  %v1391_v10 = vmul.f32 %v6045_v43, %v5829_v44 }
  0xc6   : > { %727 = vrot.lane.b32.xlu0 %v692_v11, %s5710_s25  ;;  %v1642_v11 = vmul.f32 %v6055_v62, %v5797_v32 }
  0xc9   : > { %976 = vrot.lane.b32.xlu1 %v940_v13, %s5711_s9 }
  0xca   : > { %988 = vrot.lane.b32.xlu0 %v946_v14, %s5711_s9  ;;  %v1640_v14 = vmul.f32 %v6066_v1, %v5806_v37 }
  0xcd   : > { %970 = vrot.lane.b32.xlu1 %v937_v16, %s5711_s9 }
  0xce   : > { %986 = vrot.lane.b32.xlu0 %v945_v17, %s5711_s9 }
  0xd1   : > { %737 = vrot.lane.b32.xlu1 %v697_v20, %s5710_s25 }
  0xd2   : > { %980 = vrot.lane.b32.xlu0 %v942_v21, %s5711_s9  ;;  %v1641_v21 = vmul.f32 %v6053_v60, %v5862_v53 }
  0xd5   : > { %725 = vrot.lane.b32.xlu1 %v691_v22, %s5710_s25 }
  0xd6   : > { %974 = vrot.lane.b32.xlu0 %v939_v23, %s5711_s9 }
  0xd9   : > { %984 = vrot.lane.b32.xlu1 %v944_v25, %s5711_s9  ;;  %v1388_v25 = vmul.f32 %v6045_v43, %v5855_v51 }
  0xda   : > { %743 = vrot.lane.b32.xlu0 %v700_v26, %s5710_s25 }
  0xdd   : > { %978 = vrot.lane.b32.xlu1 %v941_v27, %s5711_s9  ;;  %v1639_v27 = vmul.f32 %v6055_v62, %v5809_v38 }
  0xde   : > { %731 = vrot.lane.b32.xlu0 %v694_v28, %s5710_s25 }
  0xe1   : > { %972 = vrot.lane.b32.xlu1 %v938_v29, %s5711_s9 }
  0xe2   : > { %990 = vrot.lane.b32.xlu0 %v947_v33, %s5711_s9 }
  0xe5   : > { %1173 = vrot.lane.b32.xlu1 %v5858_v52, %s5709_s24 }
  0xe6   : > { %1177 = vrot.lane.b32.xlu0 %v5892_v58, %s5709_s24 }
  0xe9   : > { %1442 = vrot.lane.b32.xlu1 %v1398_v49, %s5712_s16  ;;  %v1637_v49 = vmul.f32 %v6066_v1, %v5829_v44 }
  0xea   : > { %1440 = vrot.lane.b32.xlu0 %v1397_v50, %s5712_s16 }
  0xed   : > { %1434 = vrot.lane.b32.xlu1 %v1394_v63, %s5712_s16  ;;  %v1389_v63 = vmul.f32 %v6038_v42, %v5892_v58 }
  0xee   : > { %1438 = vrot.lane.b32.xlu0 %v1396_v0, %s5712_s16 }
  0xf1   : > { %1686 = vrot.lane.b32.xlu1 %v1643_v2, %s5713_s17 }
  0xf2   : > { %1436 = vrot.lane.b32.xlu0 %v1395_v4, %s5712_s16  ;;  %v1387_v4 = vmul.f32 %v6036_v34, %v5858_v52 }
  0xf5   : > { %1432 = vrot.lane.b32.xlu1 %v1393_v5, %s5712_s16 }
  0xf6   : > { %1688 = vrot.lane.b32.xlu0 %v1644_v6, %s5713_s17  ;;  %v1638_v6 = vmul.f32 %v6053_v60, %v5875_v56 }
  0xf9   : > { %1428 = vrot.lane.b32.xlu1 %v1391_v10, %s5712_s16 }
  0xfa   : > { %1684 = vrot.lane.b32.xlu0 %v1642_v11, %s5713_s17 }
  0xfb   : > { %v377_v12 = vpop.permute.xlu1 %376  ;;  %v375_v13 = vpop.permute.xlu0 %374 }
  0xfc   : > { %v386_v16 = vsel %vm378_vm5, %v375_v13, %v377_v12  ;;  %v1634_v12 = vmul.f32 %v6066_v1, %v5855_v51 }
  0xfd   : > { %1680 = vrot.lane.b32.xlu1 %v1640_v14, %s5713_s17  ;;  %444 = vmatprep.subr.mxu0 %v386_v16  ;;  %v1636_v14 = vmul.f32 %v6055_v62, %v5832_v45 }
  0xfe   : > { %1430 = vrot.lane.b32.xlu0 %v1392_v15, %s5712_s16 }
  0xff   : > { %v369_v17 = vpop.permute.xlu1 %368 }
 0x100   : > { %v373_v20 = vpop.permute.xlu0 %372 }
 0x101   : > { %1426 = vrot.lane.b32.xlu1 %v1390_v19, %s5712_s16  ;;  %v385_v22 = vsel %vm378_vm5, %v373_v20, %v375_v13  ;;  %v1633_v20 = vmul.f32 %v6055_v62, %v5858_v52 }
 0x102   : > { %1682 = vrot.lane.b32.xlu0 %v1641_v21, %s5713_s17  ;;  %445 = vmatpush1.msra.mxu0 %v385_v22  ;;  %v1635_v22 = vmul.f32 %v6053_v60, %v5892_v58 }
 0x103   : > { %v367_v23 = vpop.permute.xlu1 %366 }
 0x104   : > { %v371_v26 = vpop.permute.xlu0 %370  ;;  %v383_v28 = vsel %vm378_vm5, %v367_v23, %v369_v17  ;;  %v5269_v23 = vld [vmem:[%s8065_s2 + $0x48] sm:$0xff] }
 0x105   : > { %1422 = vrot.lane.b32.xlu1 %v1388_v25, %s5712_s16  ;;  %v384_v29 = vsel %vm378_vm5, %v369_v17, %v371_v26  ;;  %v5268_v17 = vld [vmem:[%s8065_s2 + $0x40] sm:$0xff] }
 0x106   : > { %1678 = vrot.lane.b32.xlu0 %v1639_v27, %s5713_s17  ;;  %446 = vmatprep.subr.mxu0 %v384_v29  ;;  %v5272_v27 = vld [vmem:[%s8065_s2 + $0x60] sm:$0xff]  ;;  %v2094_v29 = vmul.f32 %v6084_v9, %v5803_v36 }
 0x107   : > { %447 = vmatpush1.msra.mxu0 %v383_v28  ;;  %v365_v33 = vpop.permute.xlu1 %364 }
 0x108   : > { %v363_v50 = vpop.permute.xlu0 %362 }
 0x109   : > { %1674 = vrot.lane.b32.xlu1 %v1637_v49, %s5713_s17  ;;  %v382_v0 = vsel %vm378_vm5, %v363_v50, %v365_v33  ;;  %v5273_v33 = vld [vmem:[%s8065_s2 + $0x68] sm:$0xff] }
 0x10a   : > { %1424 = vrot.lane.b32.xlu0 %v1389_v63, %s5712_s16  ;;  %448 = vmatprep.subr.mxu0 %v382_v0  ;;  %v5274_v63 = vld [vmem:[%s8065_s2 + $0x70] sm:$0xff] }
 0x10b   : > { %v357_v2 = vpop.permute.xlu1 %356 }
 0x10c   : > { %v361_v5 = vpop.permute.xlu0 %360 }
 0x10d   : > { %1420 = vrot.lane.b32.xlu1 %v1387_v4, %s5712_s16  ;;  %v381_v10 = vsel %vm378_vm5, %v361_v5, %v363_v50 }
 0x10e   : > { %1676 = vrot.lane.b32.xlu0 %v1638_v6, %s5713_s17  ;;  %449 = vmatpush1.msra.mxu0 %v381_v10  ;;  %v329_v10 = vld [vmem:[%s8065_s2] sm:$0xff] }
 0x10f   : > { %v355_v11 = vpop.permute.xlu1 %354 }
 0x110   : > { %v359_v13 = vpop.permute.xlu0 %358  ;;  %v379_v15 = vsel %vm378_vm5, %v355_v11, %v357_v2 }
 0x111   : > { %1668 = vrot.lane.b32.xlu1 %v1634_v12, %s5713_s17  ;;  %v380_v16 = vsel %vm378_vm5, %v357_v2, %v359_v13  ;;  %v2089_v13 = vmul.f32 %v6082_v8, %v5809_v38 }
 0x112   : > { %1672 = vrot.lane.b32.xlu0 %v1636_v14, %s5713_s17  ;;  %450 = vmatprep.subr.mxu0 %v380_v16 }
 0x113   : > { %451 = vmatpush1.msra.mxu0 %v379_v15  ;;  %v6139_v19 = vpop.permute.xlu1 %1193 }
 0x114   : > { %5276 = vmatmul.mubr.msk.f32.vlgmr.msra.gmra.mxu0 %vm395_vm1, %v5268_v17  ;;  %581 = vmatprep.subr.mxu0 %v5817_v39  ;;  %v6145_v21 = vpop.permute.xlu0 %1195 }
 0x115   : > { %582 = vmatpush1.msra.mxu0 %v5825_v41  ;;  %1666 = vrot.lane.b32.xlu1 %v1633_v20, %s5713_s17  ;;  %v2088_v20 = vmul.f32 %v6084_v9, %v5875_v56 }
 0x116   : > { %1670 = vrot.lane.b32.xlu0 %v1635_v22, %s5713_s17  ;;  %583 = vmatprep.subr.mxu0 %v5821_v40  ;;  %v5270_v40 = vld [vmem:[%s8065_s2 + $0x50] sm:$0xff] }
 0x117   : > { %490 = vmatprep.mubr.f32.mxu0 %v8070_v57  ;;  %584 = vmatpush1.msra.mxu0 %v5837_v46  ;;  %v6158_v39 = vpop.permute.xlu1 %1187 }
 0x118   : > { %5277 = vmatmul.mubr.msk.f32.gmra.mxu0 %vm395_vm1, %v5269_v23  ;;  %585 = vmatprep.subr.mxu0 %v5844_v47  ;;  %v6162_v41 = vpop.permute.xlu0 %1191 }
 0x119   : > { %586 = vmatpush1.msra.mxu0 %v5848_v48  ;;  %1891 = vrot.lane.b32.xlu1 %v5803_v36, %s5714_s28  ;;  %v6182_v48 = vsel %vm2078_vm6, %v6082_v8, %v6084_v9  ;;  %v2092_v36 = vmul.f32 %v6082_v8, %v5797_v32 }
 0x11a   : > { %1889 = vrot.lane.b32.xlu0 %v5800_v35, %s5714_s28  ;;  %587 = vmatprep.subr.mxu0 %v5868_v54  ;;  %8122 = vst [vmem:[#allocation18_spill] sm:$0xff] %v6182_v48  ;;  %v5271_v54 = vld [vmem:[%s8065_s2 + $0x58] sm:$0xff]  ;;  %v2093_v25 = vmul.f32 %v6182_v48, %v5800_v35  ;;  %v2090_v2 = vmul.f32 %v6182_v48, %v5806_v37 }
 0x11b   : > { %496 = vmatprep.mubr.f32.mxu0 %v8070_v57  ;;  %588 = vmatpush1.msra.mxu0 %v5872_v55  ;;  %v6175_v46 = vpop.permute.xlu1 %1181  ;;  %v2087_v15 = vmul.f32 %v6182_v48, %v5829_v44  ;;  %v2084_v22 = vmul.f32 %v6182_v48, %v5855_v51 }
 0x11c   : > { %5278 = vmatmul.mubr.msk.f32.gmra.mxu0 %vm395_vm1, %v5270_v40  ;;  %v6178_v47 = vpop.permute.xlu0 %1189  ;;  %v2086_v40 = vmul.f32 %v6082_v8, %v5832_v45 }
 0x11d   : > { %1883 = vrot.lane.b32.xlu1 %v5806_v37, %s5714_s28  ;;  %502 = vmatprep.mubr.f32.mxu0 %v8070_v57  ;;  %v2091_v37 = vmul.f32 %v6084_v9, %v5862_v53 }
 0x11e   : > { %1887 = vrot.lane.b32.xlu0 %v5797_v32, %s5714_s28  ;;  %v5275_v32 = vld [vmem:[%s8065_s2 + $0x78] sm:$0xff] }
 0x11f   : > { %v6192_v55 = vpop.permute.xlu1 %1175 }
 0x120   : > { %5279 = vmatmul.mubr.msk.f32.gmra.mxu0 %vm395_vm1, %v5271_v54  ;;  %v6197_v26 = vpop.permute.xlu0 %1185 }
 0x121   : > { %2136 = vrot.lane.b32.xlu1 %v2093_v25, %s5715_s10  ;;  %508 = vmatprep.mubr.f32.mxu0 %v8070_v57 }
 0x122   : > { %1885 = vrot.lane.b32.xlu0 %v5862_v53, %s5714_s28  ;;  %v330_v53 = vld [vmem:[%s8065_s2 + $0x8] sm:$0xff] }
 0x123   : > { %v6206_v28 = vpop.permute.xlu1 %745 }
 0x124   : > { %5280 = vmatmul.mubr.msk.f32.gmra.mxu0 %vm395_vm1, %v5272_v27  ;;  %v6209_v35 = vpop.permute.xlu0 %1183  ;;  %v2085_v27 = vmul.f32 %v6084_v9, %v5892_v58 }
 0x125   : > { %1881 = vrot.lane.b32.xlu1 %v5809_v38, %s5714_s28  ;;  %514 = vmatprep.mubr.f32.mxu0 %v8070_v57 }
 0x126   : > { %2138 = vrot.lane.b32.xlu0 %v2094_v29, %s5715_s10 }
 0x127   : > { %v6220_v49 = vpop.permute.xlu1 %735 }
 0x128   : > { %5281 = vmatmul.mubr.msk.f32.gmra.mxu0 %vm395_vm1, %v5273_v33  ;;  %v6223_v50 = vpop.permute.xlu0 %1179 }
 0x129   : > { %1877 = vrot.lane.b32.xlu1 %v5829_v44, %s5714_s28  ;;  %520 = vmatprep.mubr.f32.mxu0 %v8070_v57 }
 0x12a   : > { %2134 = vrot.lane.b32.xlu0 %v2092_v36, %s5715_s10 }
 0x12b   : > { %v6234_v0 = vpop.permute.xlu1 %733 }
 0x12c   : > { %5282 = vmatmul.mubr.msk.f32.gmra.mxu0 %vm395_vm1, %v5274_v63  ;;  %v742_v4 = vpop.permute.xlu0 %741 }
 0x12d   : > { %2130 = vrot.lane.b32.xlu1 %v2090_v2, %s5715_s10  ;;  %526 = vmatprep.mubr.f32.mxu0 %v8070_v57 }
 0x12e   : > { %1879 = vrot.lane.b32.xlu0 %v5875_v56, %s5714_s28  ;;  %v2083_v56 = vmul.f32 %v6082_v8, %v5858_v52 }
 0x12f   : > { %v6246_v5 = vpop.permute.xlu1 %723 }
 0x130   : > { %5283 = vmatmul.mubr.msk.f32.gmra.mxu0 %vm395_vm1, %v5275_v32  ;;  %v740_v6 = vpop.permute.xlu0 %739 }
 0x131   : > { %1875 = vrot.lane.b32.xlu1 %v5832_v45, %s5714_s28  ;;  %621 = vmatprep.mubr.f32.mxu0 %v8070_v57 }
 0x132   : > { %2132 = vrot.lane.b32.xlu0 %v2091_v37, %s5715_s10 }
 0x133   : > { %v993_v11 = vpop.permute.xlu1 %992 }
 0x134   : > { %5284 = vmatmul.mubr.msk.f32.vlgmr.msra.gmra.mxu0 %vm395_vm1, %v329_v10  ;;  %v730_v12 = vpop.permute.xlu0 %729 }
 0x135   : > { %1871 = vrot.lane.b32.xlu1 %v5855_v51, %s5714_s28  ;;  %627 = vmatprep.mubr.f32.mxu0 %v8070_v57 }
 0x136   : > { %2128 = vrot.lane.b32.xlu0 %v2089_v13, %s5715_s10 }
 0x137   : > { %v6268_v14 = vpop.permute.xlu1 %982 }
 0x138   : > { %5285 = vmatmul.mubr.msk.f32.gmra.mxu0 %vm395_vm1, %v330_v53  ;;  %v728_v16 = vpop.permute.xlu0 %727  ;;  %v1205_v53 = vsel %vm1197_vm8, %v6139_v19, %v6145_v21  ;;  %v5294_v21 = vld [vmem:[%s8065_s2 + $0x88] sm:$0xff] }
 0x139   : > { %2124 = vrot.lane.b32.xlu1 %v2087_v15, %s5715_s10  ;;  %852 = vmatprep.mubr.f32.mxu0 %v8070_v57  ;;  %v1204_v15 = vsel %vm1197_vm8, %v6162_v41, %v6139_v19  ;;  %v1202_v19 = vsel %vm1197_vm8, %v6197_v26, %v6158_v39 }
 0x13a   : > { %1873 = vrot.lane.b32.xlu0 %v5892_v58, %s5714_s28 }
 0x13b   : > { %v6277_v38 = vpop.permute.xlu1 %976 }
 0x13c   : > { %v989_v17 = vpop.permute.xlu0 %988 }
 0x13d   : > { %1869 = vrot.lane.b32.xlu1 %v5858_v52, %s5714_s28 }
 0x13e   : > { %2126 = vrot.lane.b32.xlu0 %v2088_v20, %s5715_s10 }
 0x13f   : > { %v6284_v44 = vpop.permute.xlu1 %970 }
 0x140   : > { %v987_v23 = vpop.permute.xlu0 %986 }
 0x141   : > { %2118 = vrot.lane.b32.xlu1 %v2084_v22, %s5715_s10 }
 0x142   : > { %2122 = vrot.lane.b32.xlu0 %v2086_v40, %s5715_s10 }
 0x143   : > { %v738_v54 = vpop.permute.xlu1 %737 }
 0x144   : > { %v981_v25 = vpop.permute.xlu0 %980  ;;  %v753_v2 = vsel %vm747_vm7, %v738_v54, %v740_v6  ;;  %v752_v32 = vsel %vm747_vm7, %v6220_v49, %v738_v54  ;;  %v5293_v6 = vld [vmem:[%s8065_s2 + $0x80] sm:$0xff] }
 0x145   : > { %2116 = vrot.lane.b32.xlu1 %v2083_v56, %s5715_s10 }
 0x146   : > { %2120 = vrot.lane.b32.xlu0 %v2085_v27, %s5715_s10 }
 0x147   : > { %v726_v51 = vpop.permute.xlu1 %725 }
 0x148   : > { %v975_v29 = vpop.permute.xlu0 %974  ;;  %v748_v49 = vsel %vm747_vm7, %v6246_v5, %v726_v51 }
 0x14b   : > { %v985_v33 = vpop.permute.xlu1 %984 }
 0x14c   : > { %v744_v45 = vpop.permute.xlu0 %743  ;;  %v999_v41 = vsel %vm994_vm9, %v6268_v14, %v985_v33  ;;  %v1200_v14 = vsel %vm1197_vm8, %v6223_v50, %v6175_v46 }
 0x14d   : > { %v755_v36 = vsel %vm747_vm7, %v744_v45, %v6206_v28  ;;  %v754_v63 = vsel %vm747_vm7, %v742_v4, %v744_v45  ;;  %v749_v4 = vsel %vm747_vm7, %v726_v51, %v728_v16  ;;  %v1000_v16 = vsel %vm994_vm9, %v985_v33, %v987_v23  ;;  %v5297_v33 = vld [vmem:[%s8065_s2 + $0xa0] sm:$0xff]  ;;  %v5312_v45 = vld [vmem:[%s8065_s2 + $0xd0] sm:$0xff] }
 0x14e   : > { %812 = vmatprep.subr.mxu0 %v755_v36 }
 0x14f   : > { %813 = vmatpush1.msra.mxu0 %v754_v63  ;;  %v979_v52 = vpop.permute.xlu1 %978 }
 0x150   : > { %814 = vmatprep.subr.mxu0 %v753_v2  ;;  %v732_v58 = vpop.permute.xlu0 %731  ;;  %v998_v20 = vsel %vm994_vm9, %v979_v52, %v981_v25 }
 0x151   : > { %815 = vmatpush1.msra.mxu0 %v752_v32  ;;  %v751_v37 = vsel %vm747_vm7, %v732_v58, %v6234_v0  ;;  %v750_v10 = vsel %vm747_vm7, %v730_v12, %v732_v58  ;;  %v5298_v58 = vld [vmem:[%s8065_s2 + $0xa8] sm:$0xff]  ;;  %v5313_v32 = vld [vmem:[%s8065_s2 + $0xd8] sm:$0xff] }
 0x152   : > { %816 = vmatprep.subr.mxu0 %v751_v37 }
 0x153   : > { %817 = vmatpush1.msra.mxu0 %v750_v10  ;;  %v973_v28 = vpop.permute.xlu1 %972 }
 0x154   : > { %818 = vmatprep.subr.mxu0 %v749_v4  ;;  %v991_v13 = vpop.permute.xlu0 %990  ;;  %v996_v22 = vsel %vm994_vm9, %v973_v28, %v975_v29  ;;  %v995_v50 = vsel %vm994_vm9, %v6284_v44, %v973_v28  ;;  %v5311_v44 = vld [vmem:[%s8065_s2 + $0xc8] sm:$0xff]  ;;  %v5299_v4 = vld [vmem:[%s8065_s2 + $0xb0] sm:$0xff] }
 0x155   : > { %819 = vmatpush1.msra.mxu0 %v748_v49  ;;  %v1002_v0 = vsel %vm994_vm9, %v991_v13, %v993_v11  ;;  %v1001_v12 = vsel %vm994_vm9, %v989_v17, %v991_v13  ;;  %v1203_v11 = vsel %vm1197_vm8, %v6158_v39, %v6178_v47  ;;  %v1201_v47 = vsel %vm1197_vm8, %v6175_v46, %v6209_v35  ;;  %v5295_v35 = vld [vmem:[%s8065_s2 + $0x90] sm:$0xff] }
 0x156   : > { %5301 = vmatmul.mubr.msk.f32.vlgmr.msra.gmra.mxu0 %vm395_vm1, %v5293_v6  ;;  %1059 = vmatprep.subr.mxu1 %v1002_v0  ;;  %v997_v39 = vsel %vm994_vm9, %v6277_v38, %v979_v52  ;;  %v5310_v38 = vld [vmem:[%s8065_s2 + $0xc0] sm:$0xff]  ;;  %v5300_v0 = vld [vmem:[%s8065_s2 + $0xb8] sm:$0xff] }
 0x157   : > { %1262 = vmatprep.subr.mxu0 %v1205_v53  ;;  %1060 = vmatpush1.msra.mxu1 %v1001_v12  ;;  %v1174_v5 = vpop.permute.xlu1 %1173  ;;  %v5314_v6 = vld [vmem:[%s8065_s2 + $0xe0] sm:$0xff]  ;;  %v5315_v12 = vld [vmem:[%s8065_s2 + $0xe8] sm:$0xff] }
 0x158   : > { %1263 = vmatpush1.msra.mxu0 %v1204_v15  ;;  %1061 = vmatprep.subr.mxu1 %v1000_v16  ;;  %v1178_v17 = vpop.permute.xlu0 %1177  ;;  %v1198_v46 = vsel %vm1197_vm8, %v1174_v5, %v6192_v55 }
 0x159   : > { %1264 = vmatprep.subr.mxu0 %v1203_v11  ;;  %858 = vmatprep.mubr.f32.mxu0 %v8070_v57  ;;  %v1199_v40 = vsel %vm1197_vm8, %v6192_v55, %v1178_v17  ;;  %v5296_v55 = vld [vmem:[%s8065_s2 + $0x98] sm:$0xff]  ;;  %v5316_v11 = vld [vmem:[%s8065_s2 + $0xf0] sm:$0xff]  ;;  %v5326_v17 = vld [vmem:[%s8065_s2 + $0x100] sm:$0xff] }
 0x15a   : > { %1062 = vmatpush1.msra.mxu1 %v999_v41  ;;  %1265 = vmatpush1.msra.mxu0 %v1202_v19 }
 0x15b   : > { %5302 = vmatmul.mubr.msk.f32.gmra.mxu0 %vm395_vm1, %v5294_v21  ;;  %1063 = vmatprep.subr.mxu1 %v998_v20  ;;  %v1443_v26 = vpop.permute.xlu1 %1442 }
 0x15c   : > { %1266 = vmatprep.subr.mxu0 %v1201_v47  ;;  %1064 = vmatpush1.msra.mxu1 %v997_v39  ;;  %v1441_v23 = vpop.permute.xlu0 %1440  ;;  %v5317_v39 = vld [vmem:[%s8065_s2 + $0xf8] sm:$0xff] }
 0x15d   : > { %1267 = vmatpush1.msra.mxu0 %v1200_v14  ;;  %1065 = vmatprep.subr.mxu1 %v996_v22  ;;  %v1452_v54 = vsel %vm1444_vm10, %v1441_v23, %v1443_v26  ;;  %v5327_v26 = vld [vmem:[%s8065_s2 + $0x108] sm:$0xff] }
 0x15e   : > { %1268 = vmatprep.subr.mxu0 %v1199_v40  ;;  %864 = vmatprep.mubr.f32.mxu0 %v8070_v57  ;;  %v5328_v40 = vld [vmem:[%s8065_s2 + $0x110] sm:$0xff] }
 0x15f   : > { %1066 = vmatpush1.msra.mxu1 %v995_v50  ;;  %1269 = vmatpush1.msra.mxu0 %v1198_v46  ;;  %v1435_v56 = vpop.permute.xlu1 %1434  ;;  %v5716_v46 = vmov 0  }
 0x160   : > { %5303 = vmatmul.mubr.msk.f32.gmra.mxu0 %vm395_vm1, %v5295_v35  ;;  %5318 = vmatmul.mubr.msk.f32.vlgmr.msra.gmra.mxu1 %vm395_vm1, %v5310_v38  ;;  %v1439_v25 = vpop.permute.xlu0 %1438  ;;  %v2315_v38 = vld [vmem:[%s8066_s3 + $0x28] sm:$0xff] }
 0x161   : > { %1509 = vmatprep.subr.mxu1 %v1452_v54  ;;  %v1451_v27 = vsel %vm1444_vm10, %v1439_v25, %v1441_v23  ;;  %870 = vmatprep.mubr.f32.mxu0 %v8070_v57  ;;  %v2314_v23 = vld [vmem:[%s8066_s3 + $0x20] sm:$0xff] }
 0x162   : > { %1105 = vmatprep.mubr.f32.mxu1 %v8070_v57  ;;  %1510 = vmatpush1.msra.mxu1 %v1451_v27  ;;  %v5343_v54 = vld [vmem:[%s8065_s2 + $0x140] sm:$0xff]  ;;  %v2317_v27 = vld [vmem:[%s8066_s3 + $0x38] sm:$0xff] }
 0x163   : > { %v1687_v51 = vpop.permute.xlu1 %1686  ;;  %5644 = vset.pattern.permute.xlu1 %v5716_v46  ;;  %5643 = vset.pattern.permute.xlu0 %v5716_v46  ;;  %v5362_v46 = vld [vmem:[%s8065_s2 + $0x190] sm:$0xff] }
 0x164   : > { %5304 = vmatmul.mubr.msk.f32.gmra.mxu0 %vm395_vm1, %v5296_v55  ;;  %5319 = vmatmul.mubr.msk.f32.gmra.mxu1 %vm395_vm1, %v5311_v44  ;;  %v1437_v29 = vpop.permute.xlu0 %1436  ;;  %v5329_v55 = vld [vmem:[%s8065_s2 + $0x118] sm:$0xff] }
 0x165   : > { %876 = vmatprep.mubr.f32.mxu0 %v8070_v57  ;;  %1111 = vmatprep.mubr.f32.mxu1 %v8070_v57  ;;  %v1450_v36 = vsel %vm1444_vm10, %v1435_v56, %v1437_v29  ;;  %v5344_v29 = vld [vmem:[%s8065_s2 + $0x148] sm:$0xff] }
 0x166   : > { %1511 = vmatprep.subr.mxu1 %v1450_v36  ;;  %2340 = vperm.xlu1 %5644, %v2314_v23  }
 0x167   : > { %v1433_v63 = vpop.permute.xlu1 %1432  ;;  %2345 = vperm.xlu0 %5643, %v2315_v38  }
 0x168   : > { %5305 = vmatmul.mubr.msk.f32.gmra.mxu0 %vm395_vm1, %v5297_v33  ;;  %5320 = vmatmul.mubr.msk.f32.gmra.mxu1 %vm395_vm1, %v5312_v45  ;;  %v1449_v52 = vsel %vm1444_vm10, %v1433_v63, %v1435_v56  ;;  %v1689_v2 = vpop.permute.xlu0 %1688  ;;  %v2313_v45 = vld [vmem:[%s8066_s3 + $0x18] sm:$0xff]  ;;  %v5330_v63 = vld [vmem:[%s8065_s2 + $0x120] sm:$0xff] }
 0x169   : > { %882 = vmatprep.mubr.f32.mxu0 %v8070_v57  ;;  %1117 = vmatprep.mubr.f32.mxu1 %v8070_v57  ;;  %v1698_v37 = vsel %vm1690_vm11, %v1687_v51, %v1689_v2  ;;  %v5345_v2 = vld [vmem:[%s8065_s2 + $0x150] sm:$0xff] }
 0x16a   : > { %1512 = vmatpush1.msra.mxu1 %v1449_v52  ;;  %1755 = vmatprep.subr.mxu0 %v1698_v37  ;;  %v5331_v37 = vld [vmem:[%s8065_s2 + $0x128] sm:$0xff] }
 0x16b   : > { %v1429_v10 = vpop.permute.xlu1 %1428  ;;  %2355 = vperm.xlu1 %5644, %v2317_v27  }
 0x16c   : > { %5306 = vmatmul.mubr.msk.f32.gmra.mxu0 %vm395_vm1, %v5298_v58  ;;  %5321 = vmatmul.mubr.msk.f32.gmra.mxu1 %vm395_vm1, %v5313_v32  ;;  %v1685_v28 = vpop.permute.xlu0 %1684 }
 0x16d   : > { %888 = vmatprep.mubr.f32.mxu0 %v8070_v57  ;;  %1123 = vmatprep.mubr.f32.mxu1 %v8070_v57  ;;  %v1697_v41 = vsel %vm1690_vm11, %v1685_v28, %v1687_v51 }
 0x16f   : > { %v1681_v13 = vpop.permute.xlu1 %1680  ;;  %2335 = vperm.xlu1 %5644, %v2313_v45  }
 0x170   : > { %5307 = vmatmul.mubr.msk.f32.gmra.mxu0 %vm395_vm1, %v5299_v4  ;;  %5322 = vmatmul.mubr.msk.f32.gmra.mxu1 %vm395_vm1, %v5314_v6  ;;  %v1431_v49 = vpop.permute.xlu0 %1430  ;;  %v5346_v4 = vld [vmem:[%s8065_s2 + $0x158] sm:$0xff] }
 0x171   : > { %894 = vmatprep.mubr.f32.mxu0 %v8070_v57  ;;  %1129 = vmatprep.mubr.f32.mxu1 %v8070_v57  ;;  %v1448_v53 = vsel %vm1444_vm10, %v1429_v10, %v1431_v49 }
 0x172   : > { %1513 = vmatprep.subr.mxu1 %v1448_v53  ;;  %v5347_v53 = vld [vmem:[%s8065_s2 + $0x160] sm:$0xff] }
 0x173   : > { %v1427_v15 = vpop.permute.xlu1 %1426 }
 0x174   : > { %5308 = vmatmul.mubr.msk.f32.gmra.mxu0 %vm395_vm1, %v5300_v0  ;;  %5323 = vmatmul.mubr.msk.f32.gmra.mxu1 %vm395_vm1, %v5315_v12  ;;  %v1447_v5 = vsel %vm1444_vm10, %v1427_v15, %v1429_v10  ;;  %v1683_v16 = vpop.permute.xlu0 %1682 }
 0x175   : > { %1135 = vmatprep.mubr.f32.mxu1 %v8070_v57  ;;  %1302 = vmatprep.mubr.f32.mxu0 %v8070_v57  ;;  %v1696_v21 = vsel %vm1690_vm11, %v1681_v13, %v1683_v16 }
 0x176   : > { %1514 = vmatpush1.msra.mxu1 %v1447_v5  ;;  %v5333_v5 = vld [vmem:[%s8065_s2 + $0x138] sm:$0xff] }
 0x177   : > { %v1423_v19 = vpop.permute.xlu1 %1422 }
 0x178   : > { %5324 = vmatmul.mubr.msk.f32.gmra.mxu1 %vm395_vm1, %v5316_v11  ;;  %5334 = vmatmul.mubr.msk.f32.vlgmr.msra.gmra.mxu0 %vm395_vm1, %v5326_v17  ;;  %v1679_v20 = vpop.permute.xlu0 %1678  ;;  %v5348_v17 = vld [vmem:[%s8065_s2 + $0x168] sm:$0xff] }
 0x179   : > { %1756 = vmatpush1.msra.mxu0 %v1697_v41  ;;  %v1695_v47 = vsel %vm1690_vm11, %v1679_v20, %v1681_v13  ;;  %1141 = vmatprep.mubr.f32.mxu1 %v8070_v57  ;;  %v5332_v13 = vld [vmem:[%s8065_s2 + $0x130] sm:$0xff] }
 0x17a   : > { %1757 = vmatprep.subr.mxu0 %v1696_v21  ;;  %1308 = vmatprep.mubr.f32.mxu0 %v8070_v57  ;;  %v5360_v21 = vld [vmem:[%s8065_s2 + $0x180] sm:$0xff]  ;;  %v2316_v20 = vld [vmem:[%s8066_s3 + $0x30] sm:$0xff] }
 0x17b   : > { %1758 = vmatpush1.msra.mxu0 %v1695_v47  ;;  %v1675_v14 = vpop.permute.xlu1 %1674  ;;  %2350 = vperm.xlu0 %5643, %v2316_v20   ;;  %v5380_v20 = vld [vmem:[%s8065_s2 + $0x1e0] sm:$0xff] }
 0x17c   : > { %5325 = vmatmul.mubr.msk.f32.gmra.mxu1 %vm395_vm1, %v5317_v39  ;;  %5335 = vmatmul.mubr.msk.f32.gmra.mxu0 %vm395_vm1, %v5327_v26  ;;  %v1425_v22 = vpop.permute.xlu0 %1424  ;;  %v5349_v26 = vld [vmem:[%s8065_s2 + $0x170] sm:$0xff] }
 0x17d   : > { %1314 = vmatprep.mubr.f32.mxu0 %v8070_v57  ;;  %v1446_v35 = vsel %vm1444_vm10, %v1423_v19, %v1425_v22  ;;  %1549 = vmatprep.mubr.f32.mxu1 %v8070_v57 }
 0x17e   : > { %1515 = vmatprep.subr.mxu1 %v1446_v35  ;;  %v5350_v35 = vld [vmem:[%s8065_s2 + $0x178] sm:$0xff] }
 0x17f   : > { %v1421_v50 = vpop.permute.xlu1 %1420 }
 0x180   : > { %5336 = vmatmul.mubr.msk.f32.gmra.mxu0 %vm395_vm1, %v5328_v40  ;;  %v1445_v56 = vsel %vm1444_vm10, %v1421_v50, %v1423_v19  ;;  %v1677_v25 = vpop.permute.xlu0 %1676 }
 0x181   : > { %1320 = vmatprep.mubr.f32.mxu0 %v8070_v57  ;;  %1516 = vmatpush1.msra.mxu1 %v1445_v56  ;;  %v1694_v44 = vsel %vm1690_vm11, %v1675_v14, %v1677_v25  ;;  %v5363_v56 = vld [vmem:[%s8065_s2 + $0x198] sm:$0xff] }
 0x182   : > { %1759 = vmatprep.subr.mxu0 %v1694_v44  ;;  %5351 = vmatmul.mubr.msk.f32.vlgmr.msra.gmra.mxu1 %vm395_vm1, %v5343_v54 }
 0x183   : > { %v1669_v51 = vpop.permute.xlu1 %1668  ;;  %1555 = vmatprep.mubr.f32.mxu1 %v8070_v57 }
 0x184   : > { %5337 = vmatmul.mubr.msk.f32.gmra.mxu0 %vm395_vm1, %v5329_v55  ;;  %v1673_v33 = vpop.permute.xlu0 %1672 }
 0x185   : > { %v1693_v36 = vsel %vm1690_vm11, %v1673_v33, %v1675_v14  ;;  %1326 = vmatprep.mubr.f32.mxu0 %v8070_v57  ;;  %v5361_v14 = vld [vmem:[%s8065_s2 + $0x188] sm:$0xff] }
 0x186   : > { %1760 = vmatpush1.msra.mxu0 %v1693_v36  ;;  %5352 = vmatmul.mubr.msk.f32.gmra.mxu1 %vm395_vm1, %v5344_v29 }
 0x187   : > { %v1667_v52 = vpop.permute.xlu1 %1666  ;;  %1561 = vmatprep.mubr.f32.mxu1 %v8070_v57 }
 0x188   : > { %5338 = vmatmul.mubr.msk.f32.gmra.mxu0 %vm395_vm1, %v5330_v63  ;;  %v1691_v58 = vsel %vm1690_vm11, %v1667_v52, %v1669_v51  ;;  %v1671_v32 = vpop.permute.xlu0 %1670  ;;  %v5365_v63 = vld [vmem:[%s8065_s2 + $0x1a8] sm:$0xff] }
 0x189   : > { %1332 = vmatprep.mubr.f32.mxu0 %v8070_v57  ;;  %v1692_v10 = vsel %vm1690_vm11, %v1669_v51, %v1671_v32  ;;  %v5364_v51 = vld [vmem:[%s8065_s2 + $0x1a0] sm:$0xff] }
 0x18a   : > { %1761 = vmatprep.subr.mxu0 %v1692_v10  ;;  %5353 = vmatmul.mubr.msk.f32.gmra.mxu1 %vm395_vm1, %v5345_v2  ;;  %v5376_v10 = vld [vmem:[%s8065_s2 + $0x1c0] sm:$0xff] }
 0x18b   : > { %1762 = vmatpush1.msra.mxu0 %v1691_v58  ;;  %v1892_v28 = vpop.permute.xlu1 %1891  ;;  %1567 = vmatprep.mubr.f32.mxu1 %v8070_v57  ;;  %v5366_v58 = vld [vmem:[%s8065_s2 + $0x1b0] sm:$0xff] }
 0x18c   : > { %5339 = vmatmul.mubr.msk.f32.gmra.mxu0 %vm395_vm1, %v5331_v37  ;;  %v1890_v6 = vpop.permute.xlu0 %1889 }
 0x18d   : > { %1338 = vmatprep.mubr.f32.mxu0 %v8070_v57  ;;  %v1901_v49 = vsel %vm1893_vm12, %v1890_v6, %v1892_v28 }
 0x18e   : > { %1958 = vmatprep.subr.mxu1 %v1901_v49  ;;  %5354 = vmatmul.mubr.msk.f32.gmra.mxu1 %vm395_vm1, %v5346_v4 }
 0x18f   : > { %v1884_v0 = vpop.permute.xlu1 %1883  ;;  %1573 = vmatprep.mubr.f32.mxu1 %v8070_v57 }
 0x190   : > { %5340 = vmatmul.mubr.msk.f32.gmra.mxu0 %vm395_vm1, %v5332_v13  ;;  %v1888_v12 = vpop.permute.xlu0 %1887 }
 0x191   : > { %v1900_v15 = vsel %vm1893_vm12, %v1888_v12, %v1890_v6  ;;  %1344 = vmatprep.mubr.f32.mxu0 %v8070_v57  ;;  %v5367_v6 = vld [vmem:[%s8065_s2 + $0x1b8] sm:$0xff] }
 0x192   : > { %1959 = vmatpush1.msra.mxu1 %v1900_v15 }
 0x193   : > { %5355 = vmatmul.mubr.msk.f32.gmra.mxu1 %vm395_vm1, %v5347_v53  ;;  %v2137_v16 = vpop.permute.xlu1 %2136 }
 0x194   : > { %5341 = vmatmul.mubr.msk.f32.gmra.mxu0 %vm395_vm1, %v5333_v5  ;;  %v1886_v11 = vpop.permute.xlu0 %1885  ;;  %1579 = vmatprep.mubr.f32.mxu1 %v8070_v57  ;;  %v5378_v5 = vld [vmem:[%s8065_s2 + $0x1d0] sm:$0xff] }
 0x195   : > { %1795 = vmatprep.mubr.f32.mxu0 %v8070_v57  ;;  %v1899_v19 = vsel %vm1893_vm12, %v1884_v0, %v1886_v11 }
 0x196   : > { %1960 = vmatprep.subr.mxu1 %v1899_v19  ;;  %v5379_v19 = vld [vmem:[%s8065_s2 + $0x1d8] sm:$0xff] }
 0x197   : > { %5356 = vmatmul.mubr.msk.f32.gmra.mxu1 %vm395_vm1, %v5348_v17  ;;  %v1882_v41 = vpop.permute.xlu1 %1881 }
 0x198   : > { %5368 = vmatmul.mubr.msk.f32.vlgmr.msra.gmra.mxu0 %vm395_vm1, %v5360_v21  ;;  %v1898_v47 = vsel %vm1893_vm12, %v1882_v41, %v1884_v0  ;;  %v2139_v39 = vpop.permute.xlu0 %2138  ;;  %1585 = vmatprep.mubr.f32.mxu1 %v8070_v57  ;;  %v5377_v0 = vld [vmem:[%s8065_s2 + $0x1c8] sm:$0xff]  ;;  %v5393_v21 = vld [vmem:[%s8065_s2 + $0x200] sm:$0xff] }
 0x199   : > { %1801 = vmatprep.mubr.f32.mxu0 %v8070_v57  ;;  %1961 = vmatpush1.msra.mxu1 %v1898_v47  ;;  %v2148_v22 = vsel %vm2140_vm13, %v2137_v16, %v2139_v39  ;;  %v5394_v41 = vld [vmem:[%s8065_s2 + $0x208] sm:$0xff]  ;;  %v5395_v47 = vld [vmem:[%s8065_s2 + $0x210] sm:$0xff] }
 0x19a   : > { %2205 = vmatprep.subr.mxu0 %v2148_v22  ;;  %v5381_v39 = vld [vmem:[%s8065_s2 + $0x1e8] sm:$0xff]  ;;  %v5397_v22 = vld [vmem:[%s8065_s2 + $0x220] sm:$0xff] }
 0x19b   : > { %5357 = vmatmul.mubr.msk.f32.gmra.mxu1 %vm395_vm1, %v5349_v26  ;;  %v1878_v23 = vpop.permute.xlu1 %1877  ;;  %v5396_v26 = vld [vmem:[%s8065_s2 + $0x218] sm:$0xff] }
 0x19c   : > { %5369 = vmatmul.mubr.msk.f32.gmra.mxu0 %vm395_vm1, %v5361_v14  ;;  %v2135_v40 = vpop.permute.xlu0 %2134  ;;  %1591 = vmatprep.mubr.f32.mxu1 %v8070_v57  ;;  %v5382_v14 = vld [vmem:[%s8065_s2 + $0x1f0] sm:$0xff] }
 0x19d   : > { %v2147_v38 = vsel %vm2140_vm13, %v2135_v40, %v2137_v16  ;;  %1807 = vmatprep.mubr.f32.mxu0 %v8070_v57  ;;  %v5398_v40 = vld [vmem:[%s8065_s2 + $0x228] sm:$0xff] }
 0x19e   : > { %2206 = vmatpush1.msra.mxu0 %v2147_v38 }
 0x19f   : > { %5358 = vmatmul.mubr.msk.f32.gmra.mxu1 %vm395_vm1, %v5350_v35  ;;  %v2131_v50 = vpop.permute.xlu1 %2130  ;;  %v5399_v35 = vld [vmem:[%s8065_s2 + $0x230] sm:$0xff] }
 0x1a0   : > { %5370 = vmatmul.mubr.msk.f32.gmra.mxu0 %vm395_vm1, %v5362_v46  ;;  %v1880_v54 = vpop.permute.xlu0 %1879  ;;  %1998 = vmatprep.mubr.f32.mxu1 %v8070_v57  ;;  %v5400_v46 = vld [vmem:[%s8065_s2 + $0x238] sm:$0xff] }
 0x1a1   : > { %1813 = vmatprep.mubr.f32.mxu0 %v8070_v57  ;;  %v1897_v25 = vsel %vm1893_vm12, %v1878_v23, %v1880_v54 }
 0x1a2   : > { %1962 = vmatprep.subr.mxu1 %v1897_v25 }
 0x1a3   : > { %v1876_v27 = vpop.permute.xlu1 %1875 }
 0x1a4   : > { %5371 = vmatmul.mubr.msk.f32.gmra.mxu0 %vm395_vm1, %v5363_v56  ;;  %v1896_v55 = vsel %vm1893_vm12, %v1876_v27, %v1878_v23  ;;  %v2133_v44 = vpop.permute.xlu0 %2132  ;;  %v5383_v23 = vld [vmem:[%s8065_s2 + $0x1f8] sm:$0xff] }
 0x1a5   : > { %1819 = vmatprep.mubr.f32.mxu0 %v8070_v57  ;;  %1963 = vmatpush1.msra.mxu1 %v1896_v55  ;;  %v2146_v29 = vsel %vm2140_vm13, %v2131_v50, %v2133_v44 }
 0x1a6   : > { %2207 = vmatprep.subr.mxu0 %v2146_v29 }
 0x1a7   : > { %v1872_v33 = vpop.permute.xlu1 %1871 }
 0x1a8   : > { %5372 = vmatmul.mubr.msk.f32.gmra.mxu0 %vm395_vm1, %v5364_v51  ;;  %v2129_v45 = vpop.permute.xlu0 %2128 }
 0x1a9   : > { %v2145_v36 = vsel %vm2140_vm13, %v2129_v45, %v2131_v50  ;;  %1825 = vmatprep.mubr.f32.mxu0 %v8070_v57 }
 0x1aa   : > { %2208 = vmatpush1.msra.mxu0 %v2145_v36 }
 0x1ab   : > { %v2125_v52 = vpop.permute.xlu1 %2124 }
 0x1ac   : > { %5373 = vmatmul.mubr.msk.f32.gmra.mxu0 %vm395_vm1, %v5365_v63  ;;  %v1874_v2 = vpop.permute.xlu0 %1873 }
 0x1ad   : > { %1831 = vmatprep.mubr.f32.mxu0 %v8070_v57  ;;  %v1895_v32 = vsel %vm1893_vm12, %v1872_v33, %v1874_v2 }
 0x1ae   : > { %1964 = vmatprep.subr.mxu1 %v1895_v32 }
 0x1af   : > { %v1870_v37 = vpop.permute.xlu1 %1869 }
 0x1b0   : > { %5374 = vmatmul.mubr.msk.f32.gmra.mxu0 %vm395_vm1, %v5366_v58  ;;  %v1894_v28 = vsel %vm1893_vm12, %v1870_v37, %v1872_v33  ;;  %v2127_v4 = vpop.permute.xlu0 %2126  ;;  %v635_v58 = vpop.f32.mrf.mxu1 }
 0x1b1   : > { %1837 = vmatprep.mubr.f32.mxu0 %v8070_v57  ;;  %1965 = vmatpush1.msra.mxu1 %v1894_v28  ;;  %v2144_v13 = vsel %vm2140_vm13, %v2125_v52, %v2127_v4 }
 0x1b2   : > { %2209 = vmatprep.subr.mxu0 %v2144_v13  ;;  %5384 = vmatmul.mubr.msk.f32.vlgmr.msra.gmra.mxu1 %vm395_vm1, %v5376_v10  ;;  %v6688_v28 = vpop.f32.mrf.mxu1 }
 0x1b3   : > { %v2119_v49 = vpop.permute.xlu1 %2118  ;;  %2004 = vmatprep.mubr.f32.mxu1 %v8070_v57 }
 0x1b4   : > { %5375 = vmatmul.mubr.msk.f32.gmra.mxu0 %vm395_vm1, %v5367_v6  ;;  %v2123_v12 = vpop.permute.xlu0 %2122  ;;  %v641_v13 = vpop.f32.mrf.mxu1 }
 0x1b5   : > { %v2143_v53 = vsel %vm2140_vm13, %v2123_v12, %v2125_v52  ;;  %2245 = vmatprep.mubr.f32.mxu0 %v8070_v57 }
 0x1b6   : > { %2210 = vmatpush1.msra.mxu0 %v2143_v53  ;;  %5385 = vmatmul.mubr.msk.f32.gmra.mxu1 %vm395_vm1, %v5377_v0 }
 0x1b7   : > { %v2117_v15 = vpop.permute.xlu1 %2116  ;;  %2010 = vmatprep.mubr.f32.mxu1 %v8070_v57 }
 0x1b8   : > { %v2141_v16 = vsel %vm2140_vm13, %v2117_v15, %v2119_v49  ;;  %v2121_v11 = vpop.permute.xlu0 %2120 }
 0x1b9   : > { %v2142_v17 = vsel %vm2140_vm13, %v2119_v49, %v2121_v11  ;;  %v6690_v49 = vpop.f32.mrf.mxu1 }
 0x1ba   : > { %2211 = vmatprep.subr.mxu0 %v2142_v17  ;;  %5386 = vmatmul.mubr.msk.f32.gmra.mxu1 %vm395_vm1, %v5378_v5 }
 0x1bb   : > { %2212 = vmatpush1.msra.mxu0 %v2141_v16  ;;  %2016 = vmatprep.mubr.f32.mxu1 %v8070_v57  ;;  %v647_v0 = vpop.f32.mrf.mxu1 }
 0x1bc   : > { %5401 = vmatmul.mubr.msk.f32.vlgmr.msra.gmra.mxu0 %vm395_vm1, %v5393_v21 }
 0x1bd   : > { %2251 = vmatprep.mubr.f32.mxu0 %v8070_v57  ;;  %v6692_v12 = vpop.f32.mrf.mxu1 }
 0x1be   : > { %5387 = vmatmul.mubr.msk.f32.gmra.mxu1 %vm395_vm1, %v5379_v19 }
 0x1bf   : > { %2022 = vmatprep.mubr.f32.mxu1 %v8070_v57  ;;  %v653_v53 = vpop.f32.mrf.mxu1 }
 0x1c0   : > { %5402 = vmatmul.mubr.msk.f32.gmra.mxu0 %vm395_vm1, %v5394_v41 }
 0x1c1   : > { %2257 = vmatprep.mubr.f32.mxu0 %v8070_v57  ;;  %v6694_v15 = vpop.f32.mrf.mxu1 }
 0x1c2   : > { %5388 = vmatmul.mubr.msk.f32.gmra.mxu1 %vm395_vm1, %v5380_v20 }
 0x1c3   : > { %2028 = vmatprep.mubr.f32.mxu1 %v8070_v57  ;;  %v659_v5 = vpop.f32.mrf.mxu1 }
 0x1c4   : > { %5403 = vmatmul.mubr.msk.f32.gmra.mxu0 %vm395_vm1, %v5395_v47 }
 0x1c5   : > { %2263 = vmatprep.mubr.f32.mxu0 %v8070_v57  ;;  %v6698_v11 = vpop.f32.mrf.mxu1 }
 0x1c6   : > { %5389 = vmatmul.mubr.msk.f32.gmra.mxu1 %vm395_vm1, %v5381_v39 }
 0x1c7   : > { %2034 = vmatprep.mubr.f32.mxu1 %v8070_v57  ;;  %v665_v41 = vpop.f32.mrf.mxu1 }
 0x1c8   : > { %5404 = vmatmul.mubr.msk.f32.gmra.mxu0 %vm395_vm1, %v5396_v26 }
 0x1c9   : > { %2269 = vmatprep.mubr.f32.mxu0 %v8070_v57  ;;  %v6704_v26 = vpop.f32.mrf.mxu1 }
 0x1ca   : > { %5390 = vmatmul.mubr.msk.f32.gmra.mxu1 %vm395_vm1, %v5382_v14 }
 0x1cb   : > { %2040 = vmatprep.mubr.f32.mxu1 %v8070_v57 }
 0x1cc   : > { %5405 = vmatmul.mubr.msk.f32.gmra.mxu0 %vm395_vm1, %v5397_v22 }
 0x1cd   : > { %2275 = vmatprep.mubr.f32.mxu0 %v8070_v57 }
 0x1ce   : > { %5391 = vmatmul.mubr.msk.f32.gmra.mxu1 %vm395_vm1, %v5383_v23 }
 0x1cf   : > { %2609 = vmatprep.mubr.f32.mxu1 %v8070_v57 }
 0x1d0   : > { %5406 = vmatmul.mubr.msk.f32.gmra.mxu0 %vm395_vm1, %v5398_v40 }
 0x1d1   : > { %2281 = vmatprep.mubr.f32.mxu0 %v8070_v57 }
 0x1d4   : > { %v486_v38 = vpop.f32.mrf.mxu0  ;;  %5407 = vmatmul.mubr.msk.f32.gmra.mxu0 %vm395_vm1, %v5399_v35 }
 0x1d5   : > { %2287 = vmatprep.mubr.f32.mxu0 %v8070_v57 }
 0x1d6   : > { %v6668_v50 = vpop.f32.mrf.mxu0 }
 0x1d7   : > { %8123 = vst [vmem:[#allocation19_spill] sm:$0xff] %v6668_v50 }
 0x1d8   : > { %v492_v54 = vpop.f32.mrf.mxu0  ;;  %5408 = vmatmul.mubr.msk.f32.gmra.mxu0 %vm395_vm1, %v5400_v46 }
 0x1d9   : > { %2878 = vmatprep.mubr.f32.mxu0 %v8070_v57 }
 0x1da   : > { %v6672_v56 = vpop.f32.mrf.mxu0 }
 0x1db   : > { %8124 = vst [vmem:[#allocation20_spill] sm:$0xff] %v6672_v56 }
 0x1dc   : > { %v498_v25 = vpop.f32.mrf.mxu0 }
 0x1dd   : > { %v636_v14 = vadd.f32 %v635_v58, %v498_v25 }
 0x1de   : > { %v6674_v27 = vpop.f32.mrf.mxu0 }
 0x1e0   : > { %v504_v55 = vpop.f32.mrf.mxu0 }
 0x1e2   : > { %v6676_v44 = vpop.f32.mrf.mxu0 }
 0x1e4   : > { %v510_v51 = vpop.f32.mrf.mxu0 }
 0x1e6   : > { %v6678_v29 = vpop.f32.mrf.mxu0 }
 0x1e8   : > { %v516_v33 = vpop.f32.mrf.mxu0 }
 0x1ea   : > { %v6680_v45 = vpop.f32.mrf.mxu0 }
 0x1ec   : > { %v522_v36 = vpop.f32.mrf.mxu0 }
 0x1ee   : > { %v6682_v63 = vpop.f32.mrf.mxu0 }
 0x1f0   : > { %v528_v52 = vpop.f32.mrf.mxu0 }
 0x1f2   : > { %v6684_v2 = vpop.f32.mrf.mxu0 }
 0x1f4   : > { %v623_v32 = vpop.f32.mrf.mxu0 }
 0x1f5   : > { %v624_v37 = vadd.f32 %v623_v32, %v486_v38 }
 0x1f6   : > { %v6686_v10 = vpop.f32.mrf.mxu0 }
 0x1f7   : > { %8125 = vst [vmem:[#allocation21_spill] sm:$0xff] %v6686_v10 }
 0x1f8   : > { %v629_v4 = vpop.f32.mrf.mxu0 }
 0x1f9   : > { %v630_v6 = vadd.f32 %v629_v4, %v492_v54  ;;  %v642_v54 = vadd.f32 %v641_v13, %v504_v55 }
 0x1fa   : > { %v6696_v16 = vpop.f32.mrf.mxu0 }
 0x1fb   : > { %8126 = vst [vmem:[#allocation22_spill] sm:$0xff] %v6696_v16 }
 0x216   : > { %v854_v17 = vpop.f32.mrf.mxu0 }
 0x217   : > { %v901_v21 = vadd.f32 %v854_v17, %v624_v37 }
 0x218   : > { %v6700_v19 = vpop.f32.mrf.mxu0 }
 0x219   : > { %8127 = vst [vmem:[#allocation23_spill] sm:$0xff] %v6700_v19 }
 0x21b   : > { %v860_v20 = vpop.f32.mrf.mxu0 }
 0x21c   : > { %v903_v47 = vadd.f32 %v860_v20, %v630_v6  ;;  %v648_v20 = vadd.f32 %v647_v0, %v510_v51  ;;  %v660_v51 = vadd.f32 %v659_v5, %v522_v36 }
 0x21d   : > { %v6702_v39 = vpop.f32.mrf.mxu0 }
 0x21e   : > { %8128 = vst [vmem:[#allocation24_spill] sm:$0xff] %v6702_v39 }
 0x220   : > { %v866_v22 = vpop.f32.mrf.mxu0  ;;  %v1101_v23 = vpop.f32.mrf.mxu1 }
 0x221   : > { %v905_v40 = vadd.f32 %v866_v22, %v636_v14  ;;  %v1148_v35 = vadd.f32 %v1101_v23, %v901_v21  ;;  %v654_v23 = vadd.f32 %v653_v53, %v516_v33 }
 0x222   : > { %v6706_v38 = vpop.f32.mrf.mxu0  ;;  %v6708_v46 = vpop.f32.mrf.mxu1 }
 0x223   : > { %8129 = vst [vmem:[#allocation25_spill] sm:$0xff] %v6708_v46 }
 0x224   : > { %v872_v32 = vpop.f32.mrf.mxu0  ;;  %v1107_v37 = vpop.f32.mrf.mxu1 }
 0x225   : > { %v907_v4 = vadd.f32 %v872_v32, %v642_v54  ;;  %v1150_v17 = vadd.f32 %v1107_v37, %v903_v47 }
 0x226   : > { %v6710_v57 = vpop.f32.mrf.mxu0  ;;  %v6712_v6 = vpop.f32.mrf.mxu1 }
 0x227   : > { %8130 = vst [vmem:[#allocation26_spill] sm:$0xff] %v6712_v6 }
 0x228   : > { %v878_v8 = vpop.f32.mrf.mxu0  ;;  %v1113_v25 = vpop.f32.mrf.mxu1 }
 0x229   : > { %v6714_v58 = vadd.f32 %v878_v8, %v648_v20  ;;  %v1152_v14 = vadd.f32 %v1113_v25, %v905_v40  ;;  %v666_v25 = vadd.f32 %v665_v41, %v528_v52 }
 0x22a   : > { %v6716_v21 = vpop.f32.mrf.mxu0  ;;  %v6718_v22 = vpop.f32.mrf.mxu1 }
 0x22c   : > { %v884_v55 = vpop.f32.mrf.mxu0  ;;  %v1119_v13 = vpop.f32.mrf.mxu1 }
 0x22d   : > { %v6720_v9 = vadd.f32 %v884_v55, %v654_v23  ;;  %v1154_v47 = vadd.f32 %v1119_v13, %v907_v4 }
 0x22e   : > { %v6722_v54 = vpop.f32.mrf.mxu0  ;;  %v6724_v32 = vpop.f32.mrf.mxu1 }
 0x230   : > { %v890_v0 = vpop.f32.mrf.mxu0  ;;  %v6726_v37 = vpop.f32.mrf.mxu1 }
 0x231   : > { %v913_v8 = vadd.f32 %v890_v0, %v660_v51 }
 0x232   : > { %v6728_v40 = vpop.f32.mrf.mxu0  ;;  %v6730_v20 = vpop.f32.mrf.mxu1 }
 0x234   : > { %v896_v33 = vpop.f32.mrf.mxu0  ;;  %v6732_v53 = vpop.f32.mrf.mxu1 }
 0x235   : > { %v915_v23 = vadd.f32 %v896_v33, %v666_v25 }
 0x236   : > { %v6734_v55 = vpop.f32.mrf.mxu0  ;;  %v6736_v4 = vpop.f32.mrf.mxu1 }
 0x238   : > { %v1137_v13 = vpop.f32.mrf.mxu1  ;;  %v1304_v48 = vpop.f32.mrf.mxu0 }
 0x239   : > { %v1160_v36 = vadd.f32 %v1137_v13, %v913_v8  ;;  %v1351_v5 = vadd.f32 %v1304_v48, %v1148_v35 }
 0x23a   : > { %v6738_v62 = vpop.f32.mrf.mxu1  ;;  %v6740_v51 = vpop.f32.mrf.mxu0 }
 0x23b   : > { %8131 = vst [vmem:[#allocation27_spill] sm:$0xff] %v6740_v51 }
 0x23c   : > { %v1143_v0 = vpop.f32.mrf.mxu1  ;;  %v1310_v60 = vpop.f32.mrf.mxu0 }
 0x23d   : > { %v1162_v1 = vadd.f32 %v1143_v0, %v915_v23  ;;  %v1353_v52 = vadd.f32 %v1310_v60, %v1150_v17 }
 0x23e   : > { %v6742_v41 = vpop.f32.mrf.mxu0  ;;  %v6744_v34 = vpop.f32.mrf.mxu1 }
 0x23f   : > { %8132 = vst [vmem:[#allocation28_spill] sm:$0xff] %v6742_v41  ;;  %8133 = vst [vmem:[#allocation29_spill] sm:$0xff] %v6744_v34 }
 0x240   : > { %v1316_v25 = vpop.f32.mrf.mxu0 }
 0x241   : > { %v1355_v33 = vadd.f32 %v1316_v25, %v1152_v14 }
 0x242   : > { %v6746_v42 = vpop.f32.mrf.mxu0  ;;  %v1551_v43 = vpop.f32.mrf.mxu1 }
 0x243   : > { %v1598_v7 = vadd.f32 %v1551_v43, %v1351_v5 }
 0x244   : > { %v1322_v8 = vpop.f32.mrf.mxu0  ;;  %v6748_v48 = vpop.f32.mrf.mxu1 }
 0x245   : > { %8134 = vst [vmem:[#allocation30_spill] sm:$0xff] %v6748_v48  ;;  %v1357_v35 = vadd.f32 %v1322_v8, %v1154_v47 }
 0x246   : > { %v6750_v13 = vpop.f32.mrf.mxu0  ;;  %v1557_v31 = vpop.f32.mrf.mxu1 }
 0x247   : > { %v1600_v24 = vadd.f32 %v1557_v31, %v1353_v52 }
 0x248   : > { %v6752_v23 = vpop.f32.mrf.mxu0  ;;  %v6754_v60 = vpop.f32.mrf.mxu1 }
 0x249   : > { %8135 = vst [vmem:[#allocation31_spill] sm:$0xff] %v6754_v60 }
 0x24a   : > { %v6756_v17 = vpop.f32.mrf.mxu0  ;;  %v1563_v0 = vpop.f32.mrf.mxu1 }
 0x24b   : > { %v1602_v14 = vadd.f32 %v1563_v0, %v1355_v33 }
 0x24c   : > { %v6758_v25 = vpop.f32.mrf.mxu0  ;;  %v1565_v30 = vpop.f32.mrf.mxu1 }
 0x24e   : > { %v6760_v43 = vpop.f32.mrf.mxu0  ;;  %v1569_v5 = vpop.f32.mrf.mxu1 }
 0x24f   : > { %v1604_v3 = vadd.f32 %v1569_v5, %v1357_v35 }
 0x250   : > { %v1340_v47 = vpop.f32.mrf.mxu0  ;;  %v6762_v8 = vpop.f32.mrf.mxu1 }
 0x251   : > { %v6764_v59 = vadd.f32 %v1340_v47, %v1160_v36 }
 0x252   : > { %v6766_v31 = vpop.f32.mrf.mxu0 }
 0x253   : > { %8136 = vst [vmem:[#allocation32_spill] sm:$0xff] %v6764_v59  ;;  %v6768_v61 = vpop.f32.mrf.mxu1 }
 0x254   : > { %v1346_v52 = vpop.f32.mrf.mxu0 }
 0x255   : > { %v6770_v18 = vadd.f32 %v1346_v52, %v1162_v1  ;;  %v6774_v0 = vpop.f32.mrf.mxu1 }
 0x256   : > { %v6772_v33 = vpop.f32.mrf.mxu0 }
 0x257   : > { %8137 = vst [vmem:[#allocation33_spill] sm:$0xff] %v6770_v18  ;;  %8138 = vst [vmem:[#allocation34_spill] sm:$0xff] %v6772_v33  ;;  %v6778_v35 = vpop.f32.mrf.mxu1 }
 0x258   : > { %v1797_v48 = vpop.f32.mrf.mxu0 }
 0x259   : > { %v1844_v51 = vadd.f32 %v1797_v48, %v1598_v7  ;;  %v6782_v46 = vpop.f32.mrf.mxu1 }
 0x25a   : > { %v6776_v60 = vpop.f32.mrf.mxu0 }
 0x25b   : > { %8139 = vst [vmem:[#allocation35_spill] sm:$0xff] %v6776_v60  ;;  %v6784_v52 = vpop.f32.mrf.mxu1 }
 0x25c   : > { %v1803_v5 = vpop.f32.mrf.mxu0  ;;  %8141 = vst [vmem:[#allocation37_spill] sm:$0xff] %v6784_v52 }
 0x25d   : > { %v1846_v36 = vadd.f32 %v1803_v5, %v1600_v24  ;;  %v6786_v39 = vpop.f32.mrf.mxu1 }
 0x25e   : > { %v6780_v47 = vpop.f32.mrf.mxu0  ;;  %8142 = vst [vmem:[#allocation38_spill] sm:$0xff] %v6786_v39 }
 0x25f   : > { %8140 = vst [vmem:[#allocation36_spill] sm:$0xff] %v6780_v47  ;;  %v6790_v60 = vpop.f32.mrf.mxu1 }
 0x260   : > { %v1809_v41 = vpop.f32.mrf.mxu0  ;;  %8143 = vst [vmem:[#allocation39_spill] sm:$0xff] %v6790_v60  ;;  %v638_v60 = vadd.f32 %v6688_v28, %v6674_v27 }
 0x261   : > { %v1848_v19 = vadd.f32 %v1809_v41, %v1602_v14  ;;  %v6796_v47 = vpop.f32.mrf.mxu1 }
 0x262   : > { %v1811_v1 = vpop.f32.mrf.mxu0  ;;  %8144 = vst [vmem:[#allocation40_spill] sm:$0xff] %v6796_v47 }
 0x264   : > { %v1815_v6 = vpop.f32.mrf.mxu0 }
 0x265   : > { %v1850_v10 = vadd.f32 %v1815_v6, %v1604_v3 }
 0x266   : > { %v1817_v50 = vpop.f32.mrf.mxu0 }
 0x268   : > { %v1821_v7 = vpop.f32.mrf.mxu0 }
 0x26a   : > { %v6788_v48 = vpop.f32.mrf.mxu0 }
 0x26c   : > { %v6792_v24 = vpop.f32.mrf.mxu0 }
 0x26e   : > { %v6794_v5 = vpop.f32.mrf.mxu0 }
 0x270   : > { %v6798_v41 = vpop.f32.mrf.mxu0 }
 0x271   : > { %8145 = vst [vmem:[#allocation41_spill] sm:$0xff] %v6798_v41  ;;  %v906_v41 = vadd.f32 %v6706_v38, %v638_v60 }
 0x272   : > { %v6800_v14 = vpop.f32.mrf.mxu0  ;;  %v2000_v16 = vpop.f32.mrf.mxu1 }
 0x273   : > { %8146 = vst [vmem:[#allocation42_spill] sm:$0xff] %v6800_v14  ;;  %v2047_v3 = vadd.f32 %v2000_v16, %v1844_v51  ;;  %v644_v16 = vadd.f32 %v6690_v49, %v6676_v44  ;;  %v1153_v51 = vadd.f32 %v6718_v22, %v906_v41  ;;  %v650_v44 = vadd.f32 %v6692_v12, %v6678_v29 }
 0x274   : > { %v6802_v6 = vpop.f32.mrf.mxu1  ;;  %v6804_v56 = vpop.f32.mrf.mxu0  ;;  %v1156_v41 = vadd.f32 %v6726_v37, %v6714_v58 }
 0x275   : > { %8147 = vst [vmem:[#allocation43_spill] sm:$0xff] %v6802_v6  ;;  %v908_v27 = vadd.f32 %v6710_v57, %v644_v16  ;;  %v1356_v28 = vadd.f32 %v6746_v42, %v1153_v51 }
 0x276   : > { %v2006_v18 = vpop.f32.mrf.mxu1  ;;  %v6810_v34 = vpop.f32.mrf.mxu0 }
 0x277   : > { %v2049_v33 = vadd.f32 %v2006_v18, %v1846_v36  ;;  %8149 = vst [vmem:[#allocation45_spill] sm:$0xff] %v6810_v34  ;;  %v1603_v60 = vadd.f32 %v1565_v30, %v1356_v28 }
 0x278   : > { %v6806_v39 = vpop.f32.mrf.mxu1 }
 0x279   : > { %8148 = vst [vmem:[#allocation44_spill] sm:$0xff] %v6806_v39  ;;  %v1849_v42 = vadd.f32 %v1811_v1, %v1603_v60 }
 0x27a   : > { %v2012_v47 = vpop.f32.mrf.mxu1 }
 0x27b   : > { %v2051_v52 = vadd.f32 %v2012_v47, %v1848_v19  ;;  %v1155_v19 = vadd.f32 %v6724_v32, %v908_v27  ;;  %v910_v32 = vadd.f32 %v6716_v21, %v650_v44 }
 0x27c   : > { %v2247_v14 = vpop.f32.mrf.mxu0  ;;  %v2014_v59 = vpop.f32.mrf.mxu1 }
 0x27d   : > { %v6816_v6 = vadd.f32 %v2247_v14, %v2047_v3  ;;  %v1358_v57 = vadd.f32 %v6750_v13, %v1155_v19  ;;  %v2052_v12 = vadd.f32 %v2014_v59, %v1849_v42  ;;  %v1157_v58 = vadd.f32 %v6730_v20, %v910_v32 }
 0x27e   : > { %v6818_v18 = vpop.f32.mrf.mxu0  ;;  %v2018_v36 = vpop.f32.mrf.mxu1 }
 0x27f   : > { %v2053_v39 = vadd.f32 %v2018_v36, %v1850_v10  ;;  %v656_v10 = vadd.f32 %v6694_v15, %v6680_v45  ;;  %v1605_v29 = vadd.f32 %v6762_v8, %v1358_v57  ;;  %v1158_v45 = vadd.f32 %v6732_v53, %v6720_v9  ;;  %v2346_v57 = vpop.permute.xlu0 %2345 }
 0x280   : > { %v2253_v34 = vpop.f32.mrf.mxu0  ;;  %v2020_v38 = vpop.f32.mrf.mxu1  ;;  %v1360_v59 = vadd.f32 %v6756_v17, %v1157_v58 }
 0x281   : > { %v6823_v47 = vadd.f32 %v2253_v34, %v2049_v33  ;;  %v1359_v33 = vadd.f32 %v6752_v23, %v1156_v41  ;;  %v912_v3 = vadd.f32 %v6722_v54, %v656_v10  ;;  %v1851_v21 = vadd.f32 %v1817_v50, %v1605_v29 }
 0x282   : > { %v6827_v49 = vpop.f32.mrf.mxu0  ;;  %v2024_v22 = vpop.f32.mrf.mxu1 }
 0x283   : > { %v1606_v15 = vadd.f32 %v6768_v61, %v1359_v33  ;;  %v1159_v23 = vadd.f32 %v6736_v4, %v912_v3  ;;  %v2054_v16 = vadd.f32 %v2020_v38, %v1851_v21  ;;  %v1607_v61 = vadd.f32 %v6774_v0, %v1360_v59 }
 0x284   : > { %v2259_v30 = vpop.f32.mrf.mxu0  ;;  %v2026_v34 = vpop.f32.mrf.mxu1  ;;  %v662_v4 = vadd.f32 %v6698_v11, %v6682_v63  ;;  %v668_v63 = vadd.f32 %v6704_v26, %v6684_v2  ;;  %v8153_v26 = vld [vmem:[#allocation38_spill] sm:$0xff] }
 0x285   : > { %v6837_v14 = vadd.f32 %v2259_v30, %v2051_v52  ;;  %v1361_v52 = vadd.f32 %v6758_v25, %v1158_v45  ;;  %v1852_v54 = vadd.f32 %v1821_v7, %v1606_v15  ;;  %v1362_v51 = vadd.f32 %v6760_v43, %v1159_v23  ;;  %v2341_v43 = vpop.permute.xlu1 %2340  ;;  %v8150_v30 = vld [vmem:[#allocation32_spill] sm:$0xff] }
 0x286   : > { %v2261_v37 = vpop.f32.mrf.mxu0  ;;  %v2030_v13 = vpop.f32.mrf.mxu1  ;;  %v914_v38 = vadd.f32 %v6728_v40, %v662_v4  ;;  %v916_v40 = vadd.f32 %v6734_v55, %v668_v63 }
 0x287   : > { %v6844_v1 = vadd.f32 %v2261_v37, %v2052_v12  ;;  %v1608_v50 = vadd.f32 %v6778_v35, %v1361_v52  ;;  %v2055_v53 = vadd.f32 %v2024_v22, %v1852_v54  ;;  %v1609_v25 = vadd.f32 %v6782_v46, %v1362_v51  ;;  %v8154_v37 = vld [vmem:[#allocation41_spill] sm:$0xff]  ;;  %v8157_v52 = vld [vmem:[#allocation39_spill] sm:$0xff] }
 0x288   : > { %v2265_v8 = vpop.f32.mrf.mxu0  ;;  %v2032_v36 = vpop.f32.mrf.mxu1  ;;  %v1161_v11 = vadd.f32 %v6738_v62, %v914_v38  ;;  %v8152_v62 = vld [vmem:[#allocation29_spill] sm:$0xff] }
 0x289   : > { %v6849_v20 = vadd.f32 %v2265_v8, %v2053_v39  ;;  %v1853_v39 = vadd.f32 %v6788_v48, %v1607_v61  ;;  %v1854_v7 = vadd.f32 %v6792_v24, %v1608_v50  ;;  %v1855_v35 = vadd.f32 %v6794_v5, %v1609_v25  ;;  %v8156_v8 = vld [vmem:[#allocation33_spill] sm:$0xff]  ;;  %v8159_v61 = vld [vmem:[#allocation40_spill] sm:$0xff] }
 0x28a   : > { %v2267_v9 = vpop.f32.mrf.mxu0  ;;  %v2036_v0 = vpop.f32.mrf.mxu1  ;;  %v1364_v10 = vadd.f32 %v6766_v31, %v1161_v11  ;;  %v1163_v2 = vadd.f32 %v8152_v62, %v916_v40  ;;  %v8155_v31 = vld [vmem:[#allocation34_spill] sm:$0xff]  ;;  %v1612_v54 = vadd.f32 %v8157_v52, %v8156_v8  ;;  %v8168_v8 = vld [vmem:[#allocation28_spill] sm:$0xff] }
 0x28b   : > { %v6854_v27 = vadd.f32 %v2267_v9, %v2054_v16  ;;  %v2056_v60 = vadd.f32 %v2026_v34, %v1853_v39  ;;  %v2057_v44 = vadd.f32 %v2030_v13, %v1854_v7  ;;  %v2058_v48 = vadd.f32 %v2032_v36, %v1855_v35  ;;  %v8151_v34 = vld [vmem:[#allocation37_spill] sm:$0xff]  ;;  %v8158_v16 = vld [vmem:[#allocation42_spill] sm:$0xff]  ;;  %v2351_v35 = vpop.permute.xlu0 %2350 }
 0x28c   : > { %v2271_v17 = vpop.f32.mrf.mxu0  ;;  %v2038_v32 = vpop.f32.mrf.mxu1  ;;  %v1610_v33 = vadd.f32 %v8151_v34, %v8150_v30  ;;  %v1611_v3 = vadd.f32 %v8153_v26, %v1364_v10  ;;  %v1366_v21 = vadd.f32 %v8155_v31, %v1163_v2  ;;  %v1858_v4 = vadd.f32 %v6804_v56, %v1612_v54  ;;  %v2311_v56 = vld [vmem:[%s8066_s3 + $0x8] sm:$0xff]  ;;  %v2310_v11 = vld [vmem:[%s8066_s3] sm:$0xff]  ;;  %v8163_v2 = vld [vmem:[#allocation24_spill] sm:$0xff] }
 0x28d   : > { %v2302_v28 = vadd.f32 %v2271_v17, %v2055_v53 }
 0x28e   : > { %v2273_v19 = vpop.f32.mrf.mxu0  ;;  %v1856_v13 = vadd.f32 %v8154_v37, %v1610_v33  ;;  %v2042_v23 = vpop.f32.mrf.mxu1  ;;  %v1857_v51 = vadd.f32 %v8158_v16, %v1611_v3  ;;  %v1613_v50 = vadd.f32 %v8159_v61, %v1366_v21  ;;  %v8165_v37 = vld [vmem:[#allocation21_spill] sm:$0xff]  ;;  %v8170_v61 = vld [vmem:[#allocation31_spill] sm:$0xff] }
 0x28f   : > { %v2366_v22 = vadd.f32 %v2341_v43, %v2302_v28  ;;  %v2303_v24 = vadd.f32 %v2273_v19, %v2056_v60  ;;  %v8160_v28 = vld [vmem:[#allocation45_spill] sm:$0xff] }
 0x290   : > { %v2277_v46 = vpop.f32.mrf.mxu0  ;;  %v2059_v36 = vadd.f32 %v2036_v0, %v1856_v13  ;;  %v2060_v17 = vadd.f32 %v2038_v32, %v1857_v51  ;;  %v2044_v7 = vpop.f32.mrf.mxu1  ;;  %v1859_v38 = vadd.f32 %v8160_v28, %v1613_v50  ;;  %v2061_v0 = vadd.f32 %v2042_v23, %v1858_v4  ;;  %v8167_v23 = vld [vmem:[#allocation23_spill] sm:$0xff]  ;;  %v8169_v16 = vld [vmem:[#allocation25_spill] sm:$0xff] }
 0x291   : > { %v2382_v41 = vmax.f32 %v2366_v22, 0.0  ;;  %v2304_v42 = vadd.f32 %v2277_v46, %v2057_v44  ;;  %v2367_v45 = vadd.f32 %v2341_v43, %v2303_v24  ;;  %v2312_v43 = vld [vmem:[%s8066_s3 + $0x10] sm:$0xff] }
 0x292   : > { %v2279_v5 = vpop.f32.mrf.mxu0  ;;  %v2062_v44 = vadd.f32 %v2044_v7, %v1859_v38  ;;  %v8173_v7 = vld [vmem:[#allocation30_spill] sm:$0xff]  ;;  %v8174_v38 = vld [vmem:[#allocation44_spill] sm:$0xff] }
 0x293   : > { %v2368_v29 = vadd.f32 %v2346_v57, %v2304_v42  ;;  %v2305_v12 = vadd.f32 %v2279_v5, %v2058_v48  ;;  %2422 = vrot.lane.b32.xlu0 %v2382_v41, %s5701_s27  ;;  %v2383_v25 = vmax.f32 %v2367_v45, 0.0  ;;  %v2356_v41 = vpop.permute.xlu1 %2355 }
 0x294   : > { %v2283_v58 = vpop.f32.mrf.mxu0 }
 0x295   : > { %v2384_v55 = vmax.f32 %v2368_v29, 0.0  ;;  %v2369_v15 = vadd.f32 %v2346_v57, %v2305_v12  ;;  %v2306_v39 = vadd.f32 %v2283_v58, %v2059_v36  ;;  %v8161_v29 = vld [vmem:[#allocation20_spill] sm:$0xff]  ;;  %v8162_v12 = vld [vmem:[#allocation22_spill] sm:$0xff]  ;;  %v8164_v58 = vld [vmem:[#allocation19_spill] sm:$0xff] }
 0x296   : > { %v2285_v59 = vpop.f32.mrf.mxu0  ;;  %v632_v62 = vadd.f32 %v8162_v12, %v8161_v29  ;;  %v626_v13 = vadd.f32 %v8165_v37, %v8164_v58 }
 0x297   : > { %v2385_v9 = vmax.f32 %v2369_v15, 0.0  ;;  %2426 = vrot.lane.b32.xlu1 %v2384_v55, %s5701_s27  ;;  %v2307_v19 = vadd.f32 %v2285_v59, %v2060_v17  ;;  %v2370_v22 = vadd.f32 %v2351_v35, %v2306_v39  ;;  %v2336_v5 = vpop.permute.xlu1 %2335  ;;  %v8166_v15 = vld [vmem:[#allocation26_spill] sm:$0xff]  ;;  %v8172_v17 = vld [vmem:[#allocation36_spill] sm:$0xff] }
 0x298   : > { %v2289_v53 = vpop.f32.mrf.mxu0  ;;  %v904_v26 = vadd.f32 %v8163_v2, %v632_v62  ;;  %v902_v59 = vadd.f32 %v8167_v23, %v626_v13  ;;  %v2365_v54 = vadd.f32 %v2336_v5, %v6854_v27  ;;  %v8179_v62 = vld [vmem:[#allocation4_spill] sm:$0xff] }
 0x299   : > { %2428 = vrot.lane.b32.xlu0 %v2385_v9, %s5701_s27  ;;  %v2308_v63 = vadd.f32 %v2289_v53, %v2061_v0  ;;  %v2371_v46 = vadd.f32 %v2351_v35, %v2307_v19  ;;  %v2386_v24 = vmax.f32 %v2370_v22, 0.0  ;;  %v8171_v53 = vld [vmem:[#allocation27_spill] sm:$0xff] }
 0x29a   : > { %v2291_v60 = vpop.f32.mrf.mxu0  ;;  %v1151_v31 = vadd.f32 %v8166_v15, %v904_v26  ;;  %v1149_v51 = vadd.f32 %v8169_v16, %v902_v59  ;;  %v2381_v39 = vmax.f32 %v2365_v54, 0.0  ;;  %v8175_v19 = vld [vmem:[#allocation35_spill] sm:$0xff] }
 0x29b   : > { %2424 = vrot.lane.b32.xlu1 %v2383_v25, %s5701_s27  ;;  %v2309_v48 = vadd.f32 %v2291_v60, %v2062_v44  ;;  %v2372_v57 = vadd.f32 %v2356_v41, %v2308_v63  ;;  %v2387_v42 = vmax.f32 %v2371_v46, 0.0  ;;  %v2364_v25 = vadd.f32 %v2336_v5, %v6849_v20 }
 0x29c   : > { %v1354_v52 = vadd.f32 %v8168_v8, %v1151_v31  ;;  %v1352_v4 = vadd.f32 %v8171_v53, %v1149_v51 }
 0x29d   : > { %2330 = vperm.xlu0 %5643, %v2312_v43   ;;  %v2373_v40 = vadd.f32 %v2356_v41, %v2309_v48  ;;  %v2388_v10 = vmax.f32 %v2372_v57, 0.0  ;;  %v2380_v44 = vmax.f32 %v2364_v25, 0.0 }
 0x29e   : > { %v1601_v50 = vadd.f32 %v8170_v61, %v1354_v52  ;;  %v1599_v43 = vadd.f32 %v8173_v7, %v1352_v4  ;;  %v5409_v7 = vld [vmem:[%s8067_s4 + $0x30] sm:$0xff] }
 0x29f   : > { %2325 = vperm.xlu1 %5644, %v2311_v56   ;;  %v2389_v32 = vmax.f32 %v2373_v40, 0.0 }
 0x2a0   : > { %v1847_v27 = vadd.f32 %v8172_v17, %v1601_v50  ;;  %v1845_v35 = vadd.f32 %v8175_v19, %v1599_v43  ;;  %v8181_v19 = vld [vmem:[#allocation2_spill] sm:$0xff] }
 0x2a1   : > { %2320 = vperm.xlu0 %5643, %v2310_v11   ;;  %v8176_v11 = vld [vmem:[#allocation43_spill] sm:$0xff] }
 0x2a2   : > { %v2050_v0 = vadd.f32 %v8174_v38, %v1847_v27  ;;  %v2048_v46 = vadd.f32 %v8176_v11, %v1845_v35  ;;  %v8180_v27 = vld [vmem:[#allocation6_spill] sm:$0xff] }
 0x2a3   : > { %2430 = vrot.lane.b32.xlu1 %v2386_v24, %s5701_s27 }
 0x2a4   : > { %v2297_v56 = vadd.f32 %v6827_v49, %v2050_v0  ;;  %v2295_v57 = vadd.f32 %v6818_v18, %v2048_v46  ;;  %v8177_v18 = vld [vmem:[#allocation8_spill] sm:$0xff]  ;;  %v8184_v46 = vmov 0.0  }
 0x2a5   : > { %2432 = vrot.lane.b32.xlu0 %v2387_v42, %s5701_s27 }
 0x2a7   : > { %2434 = vrot.lane.b32.xlu1 %v2388_v10, %s5701_s27 }
 0x2a9   : > { %2436 = vrot.lane.b32.xlu0 %v2389_v32, %s5701_s27 }
 0x305   : > { %v2423_v30 = vpop.permute.xlu0 %2422 }
 0x306   : > { %v6898_v34 = vsel %vm284_vm0, 0.0, %v2423_v30 }
 0x307   : > { %2507 = vrot.lane.b32.xlu0 %v6898_v34, %s5707_s23 }
 0x309   : > { %v2427_v33 = vpop.permute.xlu1 %2426 }
 0x30a   : > { %v6923_v36 = vsel %vm284_vm0, 0.0, %v2427_v33 }
 0x30b   : > { %v2429_v21 = vpop.permute.xlu0 %2428 }
 0x30c   : > { %v6926_v9 = vsel %vm284_vm0, %v2429_v21, 0.0  ;;  %v6938_v28 = vsel %vm284_vm0, %v2427_v33, %v2429_v21  ;;  %v8178_v33 = vld [vmem:[#allocation5_spill] sm:$0xff] }
 0x30d   : > { %v2425_v3 = vpop.permute.xlu1 %2424  ;;  %v2930_v29 = vmul.f32 %v6923_v36, %v8178_v33  ;;  %v2932_v2 = vmul.f32 %v6926_v9, %v8179_v62  ;;  %v2927_v23 = vmul.f32 %v6898_v34, %v8178_v33 }
 0x30e   : > { %v6908_v45 = vsel %vm284_vm0, %v2425_v3, 0.0  ;;  %v6911_v55 = vsel %vm284_vm0, %v2423_v30, %v2425_v3 }
 0x30f   : > { %2511 = vrot.lane.b32.xlu1 %v6908_v45, %s5707_s23  ;;  %2509 = vrot.lane.b32.xlu0 %v6911_v55, %s5707_s23  ;;  %v2928_v31 = vmul.f32 %v6911_v55, %v8177_v18  ;;  %v2929_v59 = vmul.f32 %v6908_v45, %v8179_v62 }
 0x313   : > { %2513 = vrot.lane.b32.xlu1 %v6923_v36, %s5707_s23  ;;  %2517 = vrot.lane.b32.xlu0 %v6926_v9, %s5707_s23 }
 0x317   : > { %2420 = vrot.lane.b32.xlu0 %v2381_v39, %s5701_s27  ;;  %2515 = vrot.lane.b32.xlu1 %v6938_v28, %s5707_s23 }
 0x318   : > { %v2331_v60 = vpop.permute.xlu0 %2330 }
 0x319   : > { %v2362_v20 = vadd.f32 %v2331_v60, %v6837_v14  ;;  %v2363_v22 = vadd.f32 %v2331_v60, %v6844_v1  ;;  %v8182_v60 = vld [vmem:[#allocation9_spill] sm:$0xff] }
 0x31a   : > { %v2326_v63 = vpop.permute.xlu1 %2325 }
 0x31b   : > { %v2379_v48 = vmax.f32 %v2363_v22, 0.0  ;;  %v2361_v41 = vadd.f32 %v2326_v63, %v2297_v56  ;;  %2418 = vrot.lane.b32.xlu1 %v2380_v44, %s5701_s27  ;;  %v2378_v42 = vmax.f32 %v2362_v20, 0.0  ;;  %v2360_v40 = vadd.f32 %v2326_v63, %v6823_v47  ;;  %v8183_v20 = vld [vmem:[#allocation3_spill] sm:$0xff] }
 0x31c   : > { %v2321_v24 = vpop.permute.xlu0 %2320  ;;  %v2931_v47 = vmul.f32 %v6938_v28, %v8177_v18 }
 0x31d   : > { %2416 = vrot.lane.b32.xlu0 %v2379_v48, %s5701_s27  ;;  %v2377_v49 = vmax.f32 %v2361_v41, 0.0  ;;  %v2359_v10 = vadd.f32 %v2321_v24, %v2295_v57  ;;  %v2376_v14 = vmax.f32 %v2360_v40, 0.0  ;;  %v2358_v1 = vadd.f32 %v2321_v24, %v6816_v6  ;;  %v5410_v24 = vld [vmem:[%s8067_s4 + $0x38] sm:$0xff] }
 0x31e   : > { %v2431_v30 = vpop.permute.xlu1 %2430 }
 0x31f   : > { %2414 = vrot.lane.b32.xlu1 %v2378_v42, %s5701_s27  ;;  %v2375_v32 = vmax.f32 %v2359_v10, 0.0  ;;  %v2374_v5 = vmax.f32 %v2358_v1, 0.0  ;;  %v6966_v12 = vsel %vm284_vm0, 0.0, %v2431_v30  ;;  %v8185_v42 = vld [vmem:[#allocation7_spill] sm:$0xff] }
 0x320   : > { %v2433_v6 = vpop.permute.xlu0 %2432  ;;  %v2486_v41 = vmul.f32 %v6966_v12, %v8183_v20 }
 0x321   : > { %2412 = vrot.lane.b32.xlu0 %v2377_v49, %s5701_s27  ;;  %v6974_v26 = vsel %vm284_vm0, %v2431_v30, %v2433_v6  ;;  %v6979_v58 = vsel %vm284_vm0, %v2433_v6, 0.0 }
 0x322   : > { %v2435_v37 = vpop.permute.xlu1 %2434  ;;  %v2487_v11 = vmul.f32 %v6974_v26, %v8181_v19 }
 0x323   : > { %2410 = vrot.lane.b32.xlu1 %v2376_v14, %s5701_s27  ;;  %v6989_v15 = vsel %vm284_vm0, 0.0, %v2435_v37 }
 0x324   : > { %v2437_v3 = vpop.permute.xlu0 %2436  ;;  %v2488_v22 = vmul.f32 %v6989_v15, %v8183_v20 }
 0x325   : > { %2408 = vrot.lane.b32.xlu0 %v2375_v32, %s5701_s27  ;;  %v6984_v13 = vsel %vm284_vm0, %v2437_v3, 0.0  ;;  %v6997_v21 = vsel %vm284_vm0, %v2435_v37, %v2437_v3  ;;  %v5411_v32 = vld [vmem:[%s8067_s4 + $0x40] sm:$0xff]  ;;  %v5413_v37 = vld [vmem:[%s8067_s4 + $0x50] sm:$0xff] }
 0x326   : > { %v2489_v35 = vmul.f32 %v6997_v21, %v8181_v19  ;;  %v2492_v19 = vld [vmem:[%s8067_s4 + $0x10] sm:$0xff] }
 0x327   : > { %2406 = vrot.lane.b32.xlu1 %v2374_v5, %s5701_s27 }
 0x329   : > { %2954 = vrot.lane.b32.xlu0 %v2931_v47, %s5710_s25 }
 0x32b   : > { %2952 = vrot.lane.b32.xlu1 %v2930_v29, %s5710_s25  ;;  %v5412_v29 = vld [vmem:[%s8067_s4 + $0x48] sm:$0xff] }
 0x32d   : > { %2776 = vrot.lane.b32.xlu0 %v6966_v12, %s5707_s23 }
 0x32f   : > { %2956 = vrot.lane.b32.xlu1 %v2932_v2, %s5710_s25 }
 0x331   : > { %2778 = vrot.lane.b32.xlu0 %v6974_v26, %s5707_s23 }
 0x333   : > { %2780 = vrot.lane.b32.xlu1 %v6979_v58, %s5707_s23 }
 0x335   : > { %2786 = vrot.lane.b32.xlu0 %v6984_v13, %s5707_s23 }
 0x337   : > { %2782 = vrot.lane.b32.xlu1 %v6989_v15, %s5707_s23 }
 0x339   : > { %2948 = vrot.lane.b32.xlu0 %v2928_v31, %s5710_s25 }
 0x33b   : > { %2784 = vrot.lane.b32.xlu1 %v6997_v21, %s5707_s23 }
 0x33d   : > { %2946 = vrot.lane.b32.xlu0 %v2927_v23, %s5710_s25 }
 0x33f   : > { %2950 = vrot.lane.b32.xlu1 %v2929_v59, %s5710_s25 }
 0x379   : > { %v2508_v8 = vpop.permute.xlu0 %2507 }
 0x381   : > { %v2512_v52 = vpop.permute.xlu1 %2511  ;;  %v2510_v54 = vpop.permute.xlu0 %2509 }
 0x382   : > { %v2520_v39 = vsel %vm378_vm5, %v2510_v54, %v2512_v52  ;;  %v2519_v38 = vsel %vm378_vm5, %v2508_v8, %v2510_v54  ;;  %v5414_v52 = vld [vmem:[%s8067_s4 + $0x58] sm:$0xff] }
 0x385   : > { %v2514_v16 = vpop.permute.xlu1 %2513  ;;  %v2518_v51 = vpop.permute.xlu0 %2517 }
 0x389   : > { %v2516_v61 = vpop.permute.xlu1 %2515  ;;  %v2421_v50 = vpop.permute.xlu0 %2420 }
 0x38a   : > { %v7008_v53 = vsel %vm284_vm0, %v2421_v50, 0.0  ;;  %v2522_v4 = vsel %vm378_vm5, %v2516_v61, %v2518_v51  ;;  %v2521_v17 = vsel %vm378_vm5, %v2514_v16, %v2516_v61 }
 0x38b   : > { %v3102_v25 = vmul.f32 %v7008_v53, %v8180_v27  ;;  %2573 = vmatprep.subr.mxu1 %v2522_v4  ;;  %v2490_v4 = vld [vmem:[%s8067_s4] sm:$0xff] }
 0x38c   : > { %2574 = vmatpush1.msra.mxu1 %v2521_v17 }
 0x38d   : > { %v2419_v43 = vpop.permute.xlu1 %2418  ;;  %2575 = vmatprep.subr.mxu1 %v2520_v39  ;;  %3126 = vrot.lane.b32.xlu0 %v3102_v25, %s5711_s9 }
 0x38e   : > { %v7021_v0 = vsel %vm284_vm0, %v2419_v43, %v2421_v50  ;;  %2576 = vmatpush1.msra.mxu1 %v2519_v38  ;;  %v7031_v63 = vsel %vm284_vm0, 0.0, %v2419_v43 }
 0x38f   : > { %v3101_v56 = vmul.f32 %v7021_v0, %v8182_v60  ;;  %5415 = vmatmul.mubr.msk.f32.vlgmr.msra.gmra.mxu1 %vm932_vm3, %v5409_v7  ;;  %v2417_v44 = vpop.permute.xlu0 %2416  ;;  %2692 = vmatprep.subr.mxu1 %v2489_v35  ;;  %v3100_v40 = vmul.f32 %v7031_v63, %v8185_v42  ;;  %v2491_v7 = vld [vmem:[%s8067_s4 + $0x8] sm:$0xff] }
 0x390   : > { %2615 = vmatprep.mubr.f32.mxu1 %v8184_v46  ;;  %2693 = vmatpush1.msra.mxu1 %v2488_v22  ;;  %v7050_v14 = vsel %vm284_vm0, %v2417_v44, 0.0 }
 0x391   : > { %v2415_v48 = vpop.permute.xlu1 %2414  ;;  %3124 = vrot.lane.b32.xlu1 %v3101_v56, %s5711_s9  ;;  %2694 = vmatprep.subr.mxu1 %v2487_v11  ;;  %v3099_v5 = vmul.f32 %v7050_v14, %v8180_v27 }
 0x392   : > { %v7043_v57 = vsel %vm284_vm0, %v2415_v48, %v2417_v44  ;;  %2695 = vmatpush1.msra.mxu1 %v2486_v41  ;;  %v7062_v47 = vsel %vm284_vm0, 0.0, %v2415_v48  ;;  %v8186_v44 = vld [vmem:[#allocation12_spill] sm:$0xff] }
 0x393   : > { %v3098_v49 = vmul.f32 %v7043_v57, %v8182_v60  ;;  %v2413_v10 = vpop.permute.xlu0 %2412  ;;  %5416 = vmatmul.mubr.msk.f32.gmra.mxu1 %vm932_vm3, %v5410_v24  ;;  %v3097_v6 = vmul.f32 %v7062_v47, %v8185_v42  ;;  %v5427_v24 = vld [vmem:[%s8067_s4 + $0x60] sm:$0xff] }
 0x394   : > { %2621 = vmatprep.mubr.f32.mxu1 %v8184_v46  ;;  %v7078_v2 = vsel %vm284_vm0, %v2413_v10, 0.0 }
 0x395   : > { %v2411_v1 = vpop.permute.xlu1 %2410  ;;  %3122 = vrot.lane.b32.xlu1 %v3100_v40, %s5711_s9  ;;  %3118 = vrot.lane.b32.xlu0 %v3098_v49, %s5711_s9  ;;  %v2493_v49 = vld [vmem:[%s8067_s4 + $0x18] sm:$0xff] }
 0x396   : > { %v7065_v30 = vsel %vm284_vm0, %v2411_v1, %v2413_v10  ;;  %v7089_v23 = vsel %vm284_vm0, 0.0, %v2411_v1  ;;  %v8187_v10 = vld [vmem:[#allocation11_spill] sm:$0xff] }
 0x397   : > { %v2409_v18 = vpop.permute.xlu0 %2408  ;;  %5417 = vmatmul.mubr.msk.f32.gmra.mxu1 %vm932_vm3, %v5411_v32  ;;  %v3595_v20 = vmul.f32 %v7065_v30, %v8186_v44  ;;  %v3596_v1 = vmul.f32 %v7078_v2, %v8187_v10 }
 0x398   : > { %2627 = vmatprep.mubr.f32.mxu1 %v8184_v46  ;;  %v7105_v51 = vsel %vm284_vm0, %v2409_v18, 0.0 }
 0x399   : > { %v2407_v33 = vpop.permute.xlu1 %2406  ;;  %3120 = vrot.lane.b32.xlu1 %v3099_v5, %s5711_s9  ;;  %3286 = vrot.lane.b32.xlu0 %v7065_v30, %s5709_s24  ;;  %v5428_v5 = vld [vmem:[%s8067_s4 + $0x68] sm:$0xff] }
 0x39a   : > { %v7092_v59 = vsel %vm284_vm0, %v2407_v33, %v2409_v18  ;;  %v7108_v61 = vsel %vm284_vm0, 0.0, %v2407_v33  ;;  %v2494_v18 = vld [vmem:[%s8067_s4 + $0x20] sm:$0xff] }
 0x39b   : > { %v2955_v62 = vpop.permute.xlu0 %2954  ;;  %5418 = vmatmul.mubr.msk.f32.gmra.mxu1 %vm932_vm3, %v5412_v29  ;;  %v8188_v33 = vld [vmem:[#allocation10_spill] sm:$0xff] }
 0x39c   : > { %2633 = vmatprep.mubr.f32.mxu1 %v8184_v46  ;;  %v3594_v29 = vmul.f32 %v7089_v23, %v8188_v33 }
 0x39d   : > { %v2953_v3 = vpop.permute.xlu1 %2952  ;;  %3288 = vrot.lane.b32.xlu1 %v7078_v2, %s5709_s24  ;;  %3116 = vrot.lane.b32.xlu0 %v3097_v6, %s5711_s9  ;;  %v3592_v6 = vmul.f32 %v7092_v59, %v8186_v44 }
 0x39e   : > { %v2960_v25 = vsel %vm747_vm7, %v2953_v3, %v2955_v62  ;;  %v2495_v3 = vld [vmem:[%s8067_s4 + $0x28] sm:$0xff] }
 0x39f   : > { %v2777_v31 = vpop.permute.xlu0 %2776  ;;  %5419 = vmatmul.mubr.msk.f32.gmra.mxu1 %vm932_vm3, %v5413_v37  ;;  %v3593_v37 = vmul.f32 %v7105_v51, %v8187_v10 }
 0x3a0   : > { %2639 = vmatprep.mubr.f32.mxu1 %v8184_v46 }
 0x3a1   : > { %v2957_v8 = vpop.permute.xlu1 %2956  ;;  %3284 = vrot.lane.b32.xlu1 %v7089_v23, %s5709_s24  ;;  %3280 = vrot.lane.b32.xlu0 %v7092_v59, %s5709_s24 }
 0x3a2   : > { %v2961_v54 = vsel %vm747_vm7, %v2955_v62, %v2957_v8  ;;  %v5429_v62 = vld [vmem:[%s8067_s4 + $0x70] sm:$0xff]  ;;  %v5430_v8 = vld [vmem:[%s8067_s4 + $0x78] sm:$0xff] }
 0x3a3   : > { %3012 = vmatprep.subr.mxu1 %v2961_v54  ;;  %v2779_v16 = vpop.permute.xlu0 %2778  ;;  %5420 = vmatmul.mubr.msk.f32.gmra.mxu1 %vm932_vm3, %v5414_v52  ;;  %v5439_v52 = vld [vmem:[%s8067_s4 + $0x90] sm:$0xff]  ;;  %v3763_v54 = vmul.f32 %v6979_v58, %v8180_v27 }
 0x3a4   : > { %2728 = vmatprep.mubr.f32.mxu1 %v8184_v46  ;;  %v2788_v48 = vsel %vm378_vm5, %v2777_v31, %v2779_v16  ;;  %v3591_v31 = vmul.f32 %v7108_v61, %v8188_v33 }
 0x3a5   : > { %v2781_v50 = vpop.permute.xlu1 %2780  ;;  %3282 = vrot.lane.b32.xlu1 %v7105_v51, %s5709_s24  ;;  %3278 = vrot.lane.b32.xlu0 %v7108_v61, %s5709_s24 }
 0x3a6   : > { %v2789_v11 = vsel %vm378_vm5, %v2779_v16, %v2781_v50  ;;  %v3762_v16 = vmul.f32 %v6974_v26, %v8182_v60  ;;  %v5431_v50 = vld [vmem:[%s8067_s4 + $0x80] sm:$0xff] }
 0x3a7   : > { %v2787_v17 = vpop.permute.xlu0 %2786  ;;  %5421 = vmatmul.mubr.msk.f32.vlgmr.msra.gmra.mxu1 %vm932_vm3, %v2490_v4  ;;  %v5440_v4 = vld [vmem:[%s8067_s4 + $0x98] sm:$0xff] }
 0x3a8   : > { %3013 = vmatpush1.msra.mxu1 %v2960_v25  ;;  %2734 = vmatprep.mubr.f32.mxu1 %v8184_v46  ;;  %v5441_v25 = vld [vmem:[%s8067_s4 + $0xa0] sm:$0xff] }
 0x3a9   : > { %v2783_v39 = vpop.permute.xlu1 %2782  ;;  %3448 = vrot.lane.b32.xlu1 %v7021_v0, %s5709_s24  ;;  %3450 = vrot.lane.b32.xlu0 %v7008_v53, %s5709_s24 }
 0x3ab   : > { %v2949_v43 = vpop.permute.xlu0 %2948  ;;  %5422 = vmatmul.mubr.msk.f32.gmra.mxu1 %vm932_vm3, %v2491_v7  ;;  %v5442_v7 = vld [vmem:[%s8067_s4 + $0xa8] sm:$0xff] }
 0x3ac   : > { %2740 = vmatprep.mubr.f32.mxu1 %v8184_v46 }
 0x3ad   : > { %v2785_v38 = vpop.permute.xlu1 %2784  ;;  %3446 = vrot.lane.b32.xlu1 %v7031_v63, %s5709_s24  ;;  %3442 = vrot.lane.b32.xlu0 %v7043_v57, %s5709_s24 }
 0x3ae   : > { %v2790_v35 = vsel %vm378_vm5, %v2783_v39, %v2785_v38  ;;  %v2791_v56 = vsel %vm378_vm5, %v2785_v38, %v2787_v17  ;;  %v5432_v17 = vld [vmem:[%s8067_s4 + $0x88] sm:$0xff]  ;;  %v3761_v39 = vmul.f32 %v6966_v12, %v8185_v42  ;;  %v3766_v38 = vmul.f32 %v6984_v13, %v8180_v27  ;;  %v5444_v27 = vld [vmem:[%s8067_s4 + $0xb8] sm:$0xff] }
 0x3af   : > { %2842 = vmatprep.subr.mxu0 %v2791_v56  ;;  %v2947_v22 = vpop.permute.xlu0 %2946  ;;  %5423 = vmatmul.mubr.msk.f32.gmra.mxu1 %vm932_vm3, %v2492_v19  ;;  %v5443_v19 = vld [vmem:[%s8067_s4 + $0xb0] sm:$0xff] }
 0x3b0   : > { %2843 = vmatpush1.msra.mxu0 %v2790_v35  ;;  %v2958_v32 = vsel %vm747_vm7, %v2947_v22, %v2949_v43  ;;  %2746 = vmatprep.mubr.f32.mxu1 %v8184_v46 }
 0x3b1   : > { %v2951_v41 = vpop.permute.xlu1 %2950  ;;  %3444 = vrot.lane.b32.xlu1 %v7050_v14, %s5709_s24  ;;  %2844 = vmatprep.subr.mxu0 %v2789_v11 }
 0x3b2   : > { %3618 = vrot.lane.b32.xlu0 %v3595_v20, %s5712_s16  ;;  %2845 = vmatpush1.msra.mxu0 %v2788_v48  ;;  %v2959_v40 = vsel %vm747_vm7, %v2949_v43, %v2951_v41  ;;  %v3764_v43 = vmul.f32 %v6989_v15, %v8185_v42  ;;  %v3765_v42 = vmul.f32 %v6997_v21, %v8182_v60 }
 0x3b3   : > { %3014 = vmatprep.subr.mxu1 %v2959_v40  ;;  %5433 = vmatmul.mubr.msk.f32.vlgmr.msra.gmra.mxu0 %vm932_vm3, %v5427_v24  ;;  %v4251_v60 = vmul.f32 %v6938_v28, %v8186_v44 }
 0x3b4   : > { %3015 = vmatpush1.msra.mxu1 %v2958_v32  ;;  %2884 = vmatprep.mubr.f32.mxu0 %v8184_v46  ;;  %v8192_v32 = vld [vmem:[#allocation18_spill] sm:$0xff] }
 0x3b5   : > { %3620 = vrot.lane.b32.xlu1 %v3596_v1, %s5712_s16  ;;  %5424 = vmatmul.mubr.msk.f32.gmra.mxu1 %vm932_vm3, %v2493_v49 }
 0x3b6   : > { %3440 = vrot.lane.b32.xlu0 %v7062_v47, %s5709_s24  ;;  %2752 = vmatprep.mubr.f32.mxu1 %v8184_v46 }
 0x3b7   : > { %5434 = vmatmul.mubr.msk.f32.gmra.mxu0 %vm932_vm3, %v5428_v5 }
 0x3b8   : > { %2890 = vmatprep.mubr.f32.mxu0 %v8184_v46 }
 0x3b9   : > { %3616 = vrot.lane.b32.xlu1 %v3594_v29, %s5712_s16  ;;  %5425 = vmatmul.mubr.msk.f32.gmra.mxu1 %vm932_vm3, %v2494_v18  ;;  %v5451_v18 = vld [vmem:[%s8067_s4 + $0xc0] sm:$0xff] }
 0x3ba   : > { %3612 = vrot.lane.b32.xlu0 %v3592_v6, %s5712_s16  ;;  %2758 = vmatprep.mubr.f32.mxu1 %v8184_v46  ;;  %v5452_v6 = vld [vmem:[%s8067_s4 + $0xc8] sm:$0xff] }
 0x3bb   : > { %5435 = vmatmul.mubr.msk.f32.gmra.mxu0 %vm932_vm3, %v5429_v62 }
 0x3bc   : > { %2896 = vmatprep.mubr.f32.mxu0 %v8184_v46 }
 0x3bd   : > { %3614 = vrot.lane.b32.xlu1 %v3593_v37, %s5712_s16  ;;  %5426 = vmatmul.mubr.msk.f32.gmra.mxu1 %vm932_vm3, %v2495_v3  ;;  %v4904_v37 = vmul.f32 %v7092_v59, %v8192_v32 }
 0x3be   : > { %3610 = vrot.lane.b32.xlu0 %v3591_v31, %s5712_s16  ;;  %3048 = vmatprep.mubr.f32.mxu1 %v8184_v46 }
 0x3bf   : > { %5436 = vmatmul.mubr.msk.f32.gmra.mxu0 %vm932_vm3, %v5430_v8 }
 0x3c0   : > { %2902 = vmatprep.mubr.f32.mxu0 %v8184_v46 }
 0x3c1   : > { %3784 = vrot.lane.b32.xlu1 %v3763_v54, %s5711_s9  ;;  %5445 = vmatmul.mubr.msk.f32.vlgmr.msra.gmra.mxu1 %vm932_vm3, %v5439_v52 }
 0x3c2   : > { %3782 = vrot.lane.b32.xlu0 %v3762_v16, %s5711_s9  ;;  %3054 = vmatprep.mubr.f32.mxu1 %v8184_v46 }
 0x3c3   : > { %5437 = vmatmul.mubr.msk.f32.gmra.mxu0 %vm932_vm3, %v5431_v50  ;;  %v5454_v50 = vld [vmem:[%s8067_s4 + $0xd8] sm:$0xff] }
 0x3c4   : > { %2908 = vmatprep.mubr.f32.mxu0 %v8184_v46 }
 0x3c5   : > { %3948 = vrot.lane.b32.xlu1 %v6926_v9, %s5709_s24  ;;  %5446 = vmatmul.mubr.msk.f32.gmra.mxu1 %vm932_vm3, %v5440_v4 }
 0x3c6   : > { %3946 = vrot.lane.b32.xlu0 %v6938_v28, %s5709_s24  ;;  %3060 = vmatprep.mubr.f32.mxu1 %v8184_v46  ;;  %v4249_v28 = vmul.f32 %v6908_v45, %v8187_v10 }
 0x3c7   : > { %5438 = vmatmul.mubr.msk.f32.gmra.mxu0 %vm932_vm3, %v5432_v17 }
 0x3c8   : > { %3218 = vmatprep.mubr.f32.mxu0 %v8184_v46 }
 0x3c9   : > { %3944 = vrot.lane.b32.xlu1 %v6923_v36, %s5709_s24  ;;  %5447 = vmatmul.mubr.msk.f32.gmra.mxu1 %vm932_vm3, %v5441_v25  ;;  %v5074_v25 = vld [vmem:[%s8068_s5 + $0x8] sm:$0xff] }
 0x3ca   : > { %3780 = vrot.lane.b32.xlu0 %v3761_v39, %s5711_s9  ;;  %3066 = vmatprep.mubr.f32.mxu1 %v8184_v46 }
 0x3cd   : > { %3786 = vrot.lane.b32.xlu1 %v3764_v43, %s5711_s9  ;;  %5448 = vmatmul.mubr.msk.f32.gmra.mxu1 %vm932_vm3, %v5442_v7  ;;  %v5455_v43 = vld [vmem:[%s8067_s4 + $0xe0] sm:$0xff] }
 0x3ce   : > { %3790 = vrot.lane.b32.xlu0 %v3766_v38, %s5711_s9  ;;  %3072 = vmatprep.mubr.f32.mxu1 %v8184_v46  ;;  %v5465_v38 = vld [vmem:[%s8067_s4 + $0x100] sm:$0xff] }
 0x3d1   : > { %3788 = vrot.lane.b32.xlu1 %v3765_v42, %s5711_s9  ;;  %5449 = vmatmul.mubr.msk.f32.gmra.mxu1 %vm932_vm3, %v5443_v19  ;;  %v5075_v19 = vld [vmem:[%s8068_s5 + $0x10] sm:$0xff] }
 0x3d2   : > { %3940 = vrot.lane.b32.xlu0 %v6911_v55, %s5709_s24  ;;  %3078 = vmatprep.mubr.f32.mxu1 %v8184_v46 }
 0x3d5   : > { %3942 = vrot.lane.b32.xlu1 %v6908_v45, %s5709_s24  ;;  %5450 = vmatmul.mubr.msk.f32.gmra.mxu1 %vm932_vm3, %v5444_v27  ;;  %v5076_v27 = vld [vmem:[%s8068_s5 + $0x18] sm:$0xff] }
 0x3d6   : > { %3938 = vrot.lane.b32.xlu0 %v6898_v34, %s5709_s24  ;;  %3380 = vmatprep.mubr.f32.mxu1 %v8184_v46 }
 0x3d9   : > { %4104 = vrot.lane.b32.xlu1 %v6997_v21, %s5709_s24  ;;  %v4252_v21 = vmul.f32 %v6926_v9, %v8187_v10  ;;  %v4247_v9 = vmul.f32 %v6898_v34, %v8188_v33 }
 0x3da   : > { %4106 = vrot.lane.b32.xlu0 %v6984_v13, %s5709_s24  ;;  %v4250_v13 = vmul.f32 %v6923_v36, %v8188_v33 }
 0x3dd   : > { %4102 = vrot.lane.b32.xlu1 %v6989_v15, %s5709_s24  ;;  %v8191_v15 = vld [vmem:[#allocation14_spill] sm:$0xff] }
 0x3de   : > { %4098 = vrot.lane.b32.xlu0 %v6974_v26, %s5709_s24  ;;  %v4248_v26 = vmul.f32 %v6911_v55, %v8186_v44  ;;  %v4420_v45 = vmul.f32 %v7031_v63, %v8191_v15  ;;  %v4417_v56 = vmul.f32 %v7062_v47, %v8191_v15  ;;  %v5467_v15 = vld [vmem:[%s8067_s4 + $0x110] sm:$0xff] }
 0x3e1   : > { %4100 = vrot.lane.b32.xlu1 %v6979_v58, %s5709_s24  ;;  %v8190_v58 = vld [vmem:[#allocation13_spill] sm:$0xff] }
 0x3e2   : > { %4274 = vrot.lane.b32.xlu0 %v4251_v60, %s5712_s16  ;;  %v4422_v55 = vmul.f32 %v7008_v53, %v8190_v58  ;;  %v4419_v35 = vmul.f32 %v7050_v14, %v8190_v58 }
 0x3e5   : > { %4276 = vrot.lane.b32.xlu1 %v4252_v21, %s5712_s16 }
 0x3e6   : > { %4096 = vrot.lane.b32.xlu0 %v6966_v12, %s5709_s24  ;;  %v8189_v12 = vld [vmem:[#allocation15_spill] sm:$0xff] }
 0x3e7   : > { %v4421_v36 = vmul.f32 %v7021_v0, %v8189_v12  ;;  %v4418_v34 = vmul.f32 %v7043_v57, %v8189_v12  ;;  %v5078_v12 = vld [vmem:[%s8068_s5 + $0x28] sm:$0xff] }
 0x3e9   : > { %4272 = vrot.lane.b32.xlu1 %v4250_v13, %s5712_s16  ;;  %v5456_v13 = vld [vmem:[%s8067_s4 + $0xe8] sm:$0xff] }
 0x3ea   : > { %4268 = vrot.lane.b32.xlu0 %v4248_v26, %s5712_s16  ;;  %v5466_v26 = vld [vmem:[%s8067_s4 + $0x108] sm:$0xff] }
 0x3ed   : > { %4270 = vrot.lane.b32.xlu1 %v4249_v28, %s5712_s16  ;;  %v5077_v28 = vld [vmem:[%s8068_s5 + $0x20] sm:$0xff] }
 0x3ee   : > { %4266 = vrot.lane.b32.xlu0 %v4247_v9, %s5712_s16  ;;  %s5618_s16 = smul.u32 96, %s8230_s22 }
 0x3f0   : > { %s8046_s23 = scalar_lea.vmem %s8069_s6, %s5618_s16 }
 0x3f1   : > { %4444 = vrot.lane.b32.xlu1 %v4421_v36, %s5713_s17 }
 0x3f2   : > { %4446 = vrot.lane.b32.xlu0 %v4422_v55, %s5713_s17  ;;  %v5475_v55 = vld [vmem:[%s8067_s4 + $0x120] sm:$0xff] }
 0x3f5   : > { %4442 = vrot.lane.b32.xlu1 %v4420_v45, %s5713_s17 }
 0x3f6   : > { %4438 = vrot.lane.b32.xlu0 %v4418_v34, %s5713_s17 }
 0x3f9   : > { %4440 = vrot.lane.b32.xlu1 %v4419_v35, %s5713_s17 }
 0x3fa   : > { %4602 = vrot.lane.b32.xlu0 %v7065_v30, %s5714_s28 }
 0x3fd   : > { %4604 = vrot.lane.b32.xlu1 %v7078_v2, %s5714_s28 }
 0x3fe   : > { %4436 = vrot.lane.b32.xlu0 %v4417_v56, %s5713_s17 }
 0x3ff   : > { %v3127_v44 = vpop.permute.xlu0 %3126 }
 0x401   : > { %4600 = vrot.lane.b32.xlu1 %v7089_v23, %s5714_s28 }
 0x402   : > { %4596 = vrot.lane.b32.xlu0 %v7092_v59, %s5714_s28 }
 0x403   : > { %v3125_v20 = vpop.permute.xlu1 %3124 }
 0x404   : > { %v3131_v22 = vsel %vm994_vm9, %v3125_v20, %v3127_v44  ;;  %v5476_v44 = vld [vmem:[%s8067_s4 + $0x128] sm:$0xff] }
 0x405   : > { %4598 = vrot.lane.b32.xlu1 %v7105_v51, %s5714_s28  ;;  %3182 = vmatprep.subr.mxu0 %v3131_v22 }
 0x406   : > { %4594 = vrot.lane.b32.xlu0 %v7108_v61, %s5714_s28 }
 0x407   : > { %v3123_v11 = vpop.permute.xlu1 %3122  ;;  %v3119_v48 = vpop.permute.xlu0 %3118 }
 0x408   : > { %v3130_v41 = vsel %vm994_vm9, %v3123_v11, %v3125_v20  ;;  %v5468_v20 = vld [vmem:[%s8067_s4 + $0x118] sm:$0xff] }
 0x409   : > { %4760 = vrot.lane.b32.xlu1 %v7021_v0, %s5714_s28  ;;  %3183 = vmatpush1.msra.mxu0 %v3130_v41  ;;  %v4907_v0 = vmul.f32 %v7065_v30, %v8192_v32  ;;  %v5477_v41 = vld [vmem:[%s8067_s4 + $0x130] sm:$0xff]  ;;  %v5488_v32 = vld [vmem:[%s8067_s4 + $0x158] sm:$0xff] }
 0x40a   : > { %4762 = vrot.lane.b32.xlu0 %v7008_v53, %s5714_s28 }
 0x40b   : > { %v3121_v24 = vpop.permute.xlu1 %3120  ;;  %v3287_v40 = vpop.permute.xlu0 %3286 }
 0x40c   : > { %v3129_v49 = vsel %vm994_vm9, %v3119_v48, %v3121_v24  ;;  %v5487_v24 = vld [vmem:[%s8067_s4 + $0x150] sm:$0xff] }
 0x40d   : > { %4758 = vrot.lane.b32.xlu1 %v7031_v63, %s5714_s28  ;;  %3184 = vmatprep.subr.mxu0 %v3129_v49  ;;  %v8193_v63 = vld [vmem:[#allocation17_spill] sm:$0xff] }
 0x40e   : > { %4754 = vrot.lane.b32.xlu0 %v7043_v57, %s5714_s28  ;;  %v4908_v57 = vmul.f32 %v7078_v2, %v8193_v63  ;;  %v4905_v59 = vmul.f32 %v7105_v51, %v8193_v63  ;;  %v5464_v51 = vld [vmem:[%s8067_s4 + $0xf8] sm:$0xff] }
 0x40f   : > { %v3289_v10 = vpop.permute.xlu1 %3288  ;;  %v3117_v1 = vpop.permute.xlu0 %3116 }
 0x410   : > { %v3128_v5 = vsel %vm994_vm9, %v3117_v1, %v3119_v48  ;;  %v3293_v53 = vsel %vm1197_vm8, %v3287_v40, %v3289_v10  ;;  %v5478_v1 = vld [vmem:[%s8067_s4 + $0x138] sm:$0xff] }
 0x411   : > { %4756 = vrot.lane.b32.xlu1 %v7050_v14, %s5714_s28  ;;  %3185 = vmatpush1.msra.mxu0 %v3128_v5  ;;  %v8194_v14 = vld [vmem:[#allocation16_spill] sm:$0xff] }
 0x412   : > { %4930 = vrot.lane.b32.xlu0 %v4907_v0, %s5715_s10  ;;  %3344 = vmatprep.subr.mxu1 %v3293_v53  ;;  %v4906_v2 = vmul.f32 %v7089_v23, %v8194_v14  ;;  %v5463_v23 = vld [vmem:[%s8067_s4 + $0xf0] sm:$0xff]  ;;  %v4903_v54 = vmul.f32 %v7108_v61, %v8194_v14  ;;  %v5073_v61 = vld [vmem:[%s8068_s5] sm:$0xff] }
 0x413   : > { %5457 = vmatmul.mubr.msk.f32.vlgmr.msra.gmra.mxu0 %vm932_vm3, %v5451_v18  ;;  %v3285_v30 = vpop.permute.xlu1 %3284  ;;  %v3281_v33 = vpop.permute.xlu0 %3280  ;;  %v5479_v53 = vld [vmem:[%s8067_s4 + $0x140] sm:$0xff] }
 0x414   : > { %v3292_v29 = vsel %vm1197_vm8, %v3285_v30, %v3287_v40  ;;  %3224 = vmatprep.mubr.f32.mxu0 %v8184_v46  ;;  %v5489_v18 = vld [vmem:[%s8067_s4 + $0x160] sm:$0xff] }
 0x415   : > { %4932 = vrot.lane.b32.xlu1 %v4908_v57, %s5715_s10  ;;  %3345 = vmatpush1.msra.mxu1 %v3292_v29  ;;  %v5480_v29 = vld [vmem:[%s8067_s4 + $0x148] sm:$0xff] }
 0x416   : > { %4752 = vrot.lane.b32.xlu0 %v7062_v47, %s5714_s28  ;;  %v5453_v47 = vld [vmem:[%s8067_s4 + $0xd0] sm:$0xff] }
 0x417   : > { %5458 = vmatmul.mubr.msk.f32.gmra.mxu0 %vm932_vm3, %v5452_v6  ;;  %v3283_v62 = vpop.permute.xlu1 %3282  ;;  %v3279_v3 = vpop.permute.xlu0 %3278  ;;  %v5490_v6 = vld [vmem:[%s8067_s4 + $0x168] sm:$0xff] }
 0x418   : > { %v3290_v31 = vsel %vm1197_vm8, %v3279_v3, %v3281_v33  ;;  %3230 = vmatprep.mubr.f32.mxu0 %v8184_v46  ;;  %v3291_v8 = vsel %vm1197_vm8, %v3281_v33, %v3283_v62  ;;  %v5491_v62 = vld [vmem:[%s8067_s4 + $0x170] sm:$0xff] }
 0x419   : > { %4928 = vrot.lane.b32.xlu1 %v4906_v2, %s5715_s10  ;;  %3346 = vmatprep.subr.mxu1 %v3291_v8 }
 0x41a   : > { %4924 = vrot.lane.b32.xlu0 %v4904_v37, %s5715_s10  ;;  %3347 = vmatpush1.msra.mxu1 %v3290_v31 }
 0x41b   : > { %5459 = vmatmul.mubr.msk.f32.gmra.mxu0 %vm932_vm3, %v5453_v47  ;;  %v3449_v52 = vpop.permute.xlu1 %3448  ;;  %5469 = vmatmul.mubr.msk.f32.vlgmr.msra.gmra.mxu1 %vm932_vm3, %v5463_v23  ;;  %v3451_v16 = vpop.permute.xlu0 %3450  ;;  %v5492_v47 = vld [vmem:[%s8067_s4 + $0x178] sm:$0xff] }
 0x41c   : > { %3236 = vmatprep.mubr.f32.mxu0 %v8184_v46  ;;  %3386 = vmatprep.mubr.f32.mxu1 %v8184_v46  ;;  %v3455_v4 = vsel %vm1197_vm8, %v3449_v52, %v3451_v16 }
 0x41d   : > { %4926 = vrot.lane.b32.xlu1 %v4905_v59, %s5715_s10  ;;  %3506 = vmatprep.subr.mxu0 %v3455_v4  ;;  %v5499_v59 = vld [vmem:[%s8067_s4 + $0x180] sm:$0xff] }
 0x41e   : > { %4922 = vrot.lane.b32.xlu0 %v4903_v54, %s5715_s10 }
 0x41f   : > { %5460 = vmatmul.mubr.msk.f32.gmra.mxu0 %vm932_vm3, %v5454_v50  ;;  %v3447_v17 = vpop.permute.xlu1 %3446  ;;  %5470 = vmatmul.mubr.msk.f32.gmra.mxu1 %vm932_vm3, %v5464_v51  ;;  %v3443_v7 = vpop.permute.xlu0 %3442  ;;  %v5511_v51 = vld [vmem:[%s8067_s4 + $0x1b0] sm:$0xff] }
 0x420   : > { %v3454_v39 = vsel %vm1197_vm8, %v3447_v17, %v3449_v52  ;;  %3242 = vmatprep.mubr.f32.mxu0 %v8184_v46  ;;  %3392 = vmatprep.mubr.f32.mxu1 %v8184_v46 }
 0x421   : > { %5081 = vperm.xlu1 %5644, %v5073_v61   ;;  %3507 = vmatpush1.msra.mxu0 %v3454_v39  ;;  %v5500_v61 = vld [vmem:[%s8067_s4 + $0x188] sm:$0xff]  ;;  %v5512_v39 = vld [vmem:[%s8067_s4 + $0x1b8] sm:$0xff] }
 0x422   : > { %5086 = vperm.xlu0 %5643, %v5074_v25  }
 0x423   : > { %5461 = vmatmul.mubr.msk.f32.gmra.mxu0 %vm932_vm3, %v5455_v43  ;;  %v3445_v42 = vpop.permute.xlu1 %3444  ;;  %5471 = vmatmul.mubr.msk.f32.gmra.mxu1 %vm932_vm3, %v5465_v38  ;;  %v5501_v43 = vld [vmem:[%s8067_s4 + $0x190] sm:$0xff] }
 0x424   : > { %v3619_v60 = vpop.permute.xlu0 %3618  ;;  %3248 = vmatprep.mubr.f32.mxu0 %v8184_v46  ;;  %v3453_v21 = vsel %vm1197_vm8, %v3443_v7, %v3445_v42  ;;  %3398 = vmatprep.mubr.f32.mxu1 %v8184_v46 }
 0x425   : > { %5091 = vperm.xlu1 %5644, %v5075_v19   ;;  %3508 = vmatprep.subr.mxu0 %v3453_v21 }
 0x426   : > { %5096 = vperm.xlu0 %5643, %v5076_v27  }
 0x427   : > { %5462 = vmatmul.mubr.msk.f32.gmra.mxu0 %vm932_vm3, %v5456_v13  ;;  %v3621_v9 = vpop.permute.xlu1 %3620  ;;  %5472 = vmatmul.mubr.msk.f32.gmra.mxu1 %vm932_vm3, %v5466_v26  ;;  %v5502_v13 = vld [vmem:[%s8067_s4 + $0x198] sm:$0xff] }
 0x428   : > { %v3441_v36 = vpop.permute.xlu0 %3440  ;;  %3542 = vmatprep.mubr.f32.mxu0 %v8184_v46  ;;  %v3625_v58 = vsel %vm1444_vm10, %v3619_v60, %v3621_v9  ;;  %3404 = vmatprep.mubr.f32.mxu1 %v8184_v46 }
 0x429   : > { %v3452_v45 = vsel %vm1197_vm8, %v3441_v36, %v3443_v7  ;;  %5101 = vperm.xlu1 %5644, %v5077_v28   ;;  %3676 = vmatprep.subr.mxu1 %v3625_v58  ;;  %v5503_v58 = vld [vmem:[%s8067_s4 + $0x1a0] sm:$0xff] }
 0x42a   : > { %5106 = vperm.xlu0 %5643, %v5078_v12   ;;  %3509 = vmatpush1.msra.mxu0 %v3452_v45  ;;  %v5514_v12 = vld [vmem:[%s8067_s4 + $0x1c8] sm:$0xff] }
 0x42b   : > { %5481 = vmatmul.mubr.msk.f32.vlgmr.msra.gmra.mxu0 %vm932_vm3, %v5475_v55  ;;  %v3617_v34 = vpop.permute.xlu1 %3616  ;;  %5473 = vmatmul.mubr.msk.f32.gmra.mxu1 %vm932_vm3, %v5467_v15 }
 0x42c   : > { %v3624_v35 = vsel %vm1444_vm10, %v3617_v34, %v3619_v60  ;;  %v3613_v56 = vpop.permute.xlu0 %3612  ;;  %3548 = vmatprep.mubr.f32.mxu0 %v8184_v46  ;;  %3410 = vmatprep.mubr.f32.mxu1 %v8184_v46  ;;  %v5513_v60 = vld [vmem:[%s8067_s4 + $0x1c0] sm:$0xff] }
 0x42d   : > { %3677 = vmatpush1.msra.mxu1 %v3624_v35  ;;  %v5515_v35 = vld [vmem:[%s8067_s4 + $0x1d0] sm:$0xff] }
 0x42f   : > { %5482 = vmatmul.mubr.msk.f32.gmra.mxu0 %vm932_vm3, %v5476_v44  ;;  %v3615_v22 = vpop.permute.xlu1 %3614  ;;  %5474 = vmatmul.mubr.msk.f32.gmra.mxu1 %vm932_vm3, %v5468_v20  ;;  %v5504_v20 = vld [vmem:[%s8067_s4 + $0x1a8] sm:$0xff] }
 0x430   : > { %v3611_v11 = vpop.permute.xlu0 %3610  ;;  %3554 = vmatprep.mubr.f32.mxu0 %v8184_v46  ;;  %v3623_v48 = vsel %vm1444_vm10, %v3613_v56, %v3615_v22  ;;  %3712 = vmatprep.mubr.f32.mxu1 %v8184_v46 }
 0x431   : > { %v3622_v40 = vsel %vm1444_vm10, %v3611_v11, %v3613_v56  ;;  %3678 = vmatprep.subr.mxu1 %v3623_v48 }
 0x432   : > { %3679 = vmatpush1.msra.mxu1 %v3622_v40 }
 0x433   : > { %5483 = vmatmul.mubr.msk.f32.gmra.mxu0 %vm932_vm3, %v5477_v41  ;;  %v3785_v49 = vpop.permute.xlu1 %3784  ;;  %5493 = vmatmul.mubr.msk.f32.vlgmr.msra.gmra.mxu1 %vm932_vm3, %v5487_v24  ;;  %v5516_v24 = vld [vmem:[%s8067_s4 + $0x1d8] sm:$0xff] }
 0x434   : > { %v3783_v10 = vpop.permute.xlu0 %3782  ;;  %3560 = vmatprep.mubr.f32.mxu0 %v8184_v46  ;;  %3718 = vmatprep.mubr.f32.mxu1 %v8184_v46 }
 0x435   : > { %v3793_v23 = vsel %vm994_vm9, %v3783_v10, %v3785_v49  ;;  %v5523_v49 = vld [vmem:[%s8067_s4 + $0x1e0] sm:$0xff] }
 0x437   : > { %5484 = vmatmul.mubr.msk.f32.gmra.mxu0 %vm932_vm3, %v5478_v1  ;;  %v3949_v0 = vpop.permute.xlu1 %3948  ;;  %5494 = vmatmul.mubr.msk.f32.gmra.mxu1 %vm932_vm3, %v5488_v32 }
 0x438   : > { %v3947_v5 = vpop.permute.xlu0 %3946  ;;  %3566 = vmatprep.mubr.f32.mxu0 %v8184_v46  ;;  %3724 = vmatprep.mubr.f32.mxu1 %v8184_v46 }
 0x439   : > { %v3953_v63 = vsel %vm1197_vm8, %v3947_v5, %v3949_v0 }
 0x43a   : > { %4004 = vmatprep.subr.mxu1 %v3953_v63  ;;  %v5524_v63 = vld [vmem:[%s8067_s4 + $0x1e8] sm:$0xff] }
 0x43b   : > { %5485 = vmatmul.mubr.msk.f32.gmra.mxu0 %vm932_vm3, %v5479_v53  ;;  %v3945_v57 = vpop.permute.xlu1 %3944  ;;  %5495 = vmatmul.mubr.msk.f32.gmra.mxu1 %vm932_vm3, %v5489_v18 }
 0x43c   : > { %v3952_v30 = vsel %vm1197_vm8, %v3945_v57, %v3947_v5  ;;  %v3781_v33 = vpop.permute.xlu0 %3780  ;;  %3572 = vmatprep.mubr.f32.mxu0 %v8184_v46  ;;  %3730 = vmatprep.mubr.f32.mxu1 %v8184_v46  ;;  %v5535_v5 = vld [vmem:[%s8067_s4 + $0x210] sm:$0xff] }
 0x43d   : > { %4005 = vmatpush1.msra.mxu1 %v3952_v30  ;;  %v3792_v52 = vsel %vm994_vm9, %v3781_v33, %v3783_v10 }
 0x43f   : > { %5486 = vmatmul.mubr.msk.f32.gmra.mxu0 %vm932_vm3, %v5480_v29  ;;  %v3787_v14 = vpop.permute.xlu1 %3786  ;;  %5496 = vmatmul.mubr.msk.f32.gmra.mxu1 %vm932_vm3, %v5490_v6  ;;  %v5536_v29 = vld [vmem:[%s8067_s4 + $0x218] sm:$0xff] }
 0x440   : > { %v3791_v2 = vpop.permute.xlu0 %3790  ;;  %3736 = vmatprep.mubr.f32.mxu1 %v8184_v46  ;;  %3882 = vmatprep.mubr.f32.mxu0 %v8184_v46 }
 0x443   : > { %v3789_v3 = vpop.permute.xlu1 %3788  ;;  %5497 = vmatmul.mubr.msk.f32.gmra.mxu1 %vm932_vm3, %v5491_v62 }
 0x444   : > { %v3794_v37 = vsel %vm994_vm9, %v3787_v14, %v3789_v3  ;;  %v3941_v31 = vpop.permute.xlu0 %3940  ;;  %v3795_v8 = vsel %vm994_vm9, %v3789_v3, %v3791_v2  ;;  %3742 = vmatprep.mubr.f32.mxu1 %v8184_v46  ;;  %v5525_v2 = vld [vmem:[%s8067_s4 + $0x1f0] sm:$0xff] }
 0x445   : > { %3846 = vmatprep.subr.mxu0 %v3795_v8  ;;  %v5537_v8 = vld [vmem:[%s8067_s4 + $0x220] sm:$0xff] }
 0x446   : > { %3847 = vmatpush1.msra.mxu0 %v3794_v37 }
 0x447   : > { %v3943_v54 = vpop.permute.xlu1 %3942  ;;  %5498 = vmatmul.mubr.msk.f32.gmra.mxu1 %vm932_vm3, %v5492_v47  ;;  %3848 = vmatprep.subr.mxu0 %v3793_v23 }
 0x448   : > { %v3939_v16 = vpop.permute.xlu0 %3938  ;;  %3849 = vmatpush1.msra.mxu0 %v3792_v52  ;;  %v3951_v50 = vsel %vm1197_vm8, %v3941_v31, %v3943_v54  ;;  %4040 = vmatprep.mubr.f32.mxu1 %v8184_v46 }
 0x449   : > { %v3950_v4 = vsel %vm1197_vm8, %v3939_v16, %v3941_v31  ;;  %5505 = vmatmul.mubr.msk.f32.vlgmr.msra.gmra.mxu0 %vm932_vm3, %v5499_v59  ;;  %4006 = vmatprep.subr.mxu1 %v3951_v50  ;;  %v5526_v59 = vld [vmem:[%s8067_s4 + $0x1f8] sm:$0xff] }
 0x44a   : > { %4007 = vmatpush1.msra.mxu1 %v3950_v4  ;;  %3888 = vmatprep.mubr.f32.mxu0 %v8184_v46  ;;  %v5538_v4 = vld [vmem:[%s8067_s4 + $0x228] sm:$0xff] }
 0x44b   : > { %v4105_v17 = vpop.permute.xlu1 %4104  ;;  %5517 = vmatmul.mubr.msk.f32.vlgmr.msra.gmra.mxu1 %vm932_vm3, %v5511_v51 }
 0x44c   : > { %v4107_v25 = vpop.permute.xlu0 %4106  ;;  %4046 = vmatprep.mubr.f32.mxu1 %v8184_v46 }
 0x44d   : > { %5506 = vmatmul.mubr.msk.f32.gmra.mxu0 %vm932_vm3, %v5500_v61  ;;  %v4111_v7 = vsel %vm1197_vm8, %v4105_v17, %v4107_v25  ;;  %v5527_v25 = vld [vmem:[%s8067_s4 + $0x200] sm:$0xff] }
 0x44e   : > { %4162 = vmatprep.subr.mxu0 %v4111_v7  ;;  %3894 = vmatprep.mubr.f32.mxu0 %v8184_v46 }
 0x44f   : > { %v4103_v38 = vpop.permute.xlu1 %4102  ;;  %5518 = vmatmul.mubr.msk.f32.gmra.mxu1 %vm932_vm3, %v5512_v39  ;;  %v7548_v19 = vpop.f32.mrf.mxu1 }
 0x450   : > { %v4110_v42 = vsel %vm1197_vm8, %v4103_v38, %v4105_v17  ;;  %v4099_v27 = vpop.permute.xlu0 %4098  ;;  %4052 = vmatprep.mubr.f32.mxu1 %v8184_v46 }
 0x451   : > { %5507 = vmatmul.mubr.msk.f32.gmra.mxu0 %vm932_vm3, %v5501_v43  ;;  %v7556_v21 = vpop.f32.mrf.mxu1 }
 0x452   : > { %4163 = vmatpush1.msra.mxu0 %v4110_v42  ;;  %3900 = vmatprep.mubr.f32.mxu0 %v8184_v46  ;;  %v5539_v42 = vld [vmem:[%s8067_s4 + $0x230] sm:$0xff] }
 0x453   : > { %v4101_v26 = vpop.permute.xlu1 %4100  ;;  %5519 = vmatmul.mubr.msk.f32.gmra.mxu1 %vm932_vm3, %v5513_v60  ;;  %v7568_v36 = vpop.f32.mrf.mxu1 }
 0x454   : > { %v4275_v28 = vpop.permute.xlu0 %4274  ;;  %v4109_v9 = vsel %vm1197_vm8, %v4099_v27, %v4101_v26  ;;  %4058 = vmatprep.mubr.f32.mxu1 %v8184_v46 }
 0x455   : > { %5508 = vmatmul.mubr.msk.f32.gmra.mxu0 %vm932_vm3, %v5502_v13  ;;  %4164 = vmatprep.subr.mxu0 %v4109_v9  ;;  %v7575_v55 = vpop.f32.mrf.mxu1  ;;  %v5528_v13 = vld [vmem:[%s8067_s4 + $0x208] sm:$0xff] }
 0x456   : > { %3906 = vmatprep.mubr.f32.mxu0 %v8184_v46 }
 0x457   : > { %v4277_v15 = vpop.permute.xlu1 %4276  ;;  %5520 = vmatmul.mubr.msk.f32.gmra.mxu1 %vm932_vm3, %v5514_v12  ;;  %v7583_v56 = vpop.f32.mrf.mxu1 }
 0x458   : > { %v4097_v45 = vpop.permute.xlu0 %4096  ;;  %v4281_v34 = vsel %vm1444_vm10, %v4275_v28, %v4277_v15  ;;  %4064 = vmatprep.mubr.f32.mxu1 %v8184_v46 }
 0x459   : > { %v4108_v44 = vsel %vm1197_vm8, %v4097_v45, %v4099_v27  ;;  %5509 = vmatmul.mubr.msk.f32.gmra.mxu0 %vm932_vm3, %v5503_v58  ;;  %4332 = vmatprep.subr.mxu1 %v4281_v34  ;;  %v7591_v22 = vpop.f32.mrf.mxu1  ;;  %v5540_v58 = vld [vmem:[%s8067_s4 + $0x238] sm:$0xff]  ;;  %v5547_v34 = vld [vmem:[%s8067_s4 + $0x240] sm:$0xff] }
 0x45a   : > { %4165 = vmatpush1.msra.mxu0 %v4108_v44  ;;  %3912 = vmatprep.mubr.f32.mxu0 %v8184_v46 }
 0x45b   : > { %v4273_v11 = vpop.permute.xlu1 %4272  ;;  %5521 = vmatmul.mubr.msk.f32.gmra.mxu1 %vm932_vm3, %v5515_v35  ;;  %v7599_v40 = vpop.f32.mrf.mxu1 }
 0x45c   : > { %v4280_v48 = vsel %vm1444_vm10, %v4273_v11, %v4275_v28  ;;  %v4269_v41 = vpop.permute.xlu0 %4268  ;;  %4070 = vmatprep.mubr.f32.mxu1 %v8184_v46 }
 0x45d   : > { %5510 = vmatmul.mubr.msk.f32.gmra.mxu0 %vm932_vm3, %v5504_v20  ;;  %4333 = vmatpush1.msra.mxu1 %v4280_v48  ;;  %v7606_v10 = vpop.f32.mrf.mxu1 }
 0x45e   : > { %4198 = vmatprep.mubr.f32.mxu0 %v8184_v46 }
 0x45f   : > { %v4271_v1 = vpop.permute.xlu1 %4270  ;;  %5522 = vmatmul.mubr.msk.f32.gmra.mxu1 %vm932_vm3, %v5516_v24  ;;  %v7614_v53 = vpop.f32.mrf.mxu1 }
 0x460   : > { %v4267_v32 = vpop.permute.xlu0 %4266  ;;  %v4279_v0 = vsel %vm1444_vm10, %v4269_v41, %v4271_v1  ;;  %4368 = vmatprep.mubr.f32.mxu1 %v8184_v46 }
 0x461   : > { %v4278_v18 = vsel %vm1444_vm10, %v4267_v32, %v4269_v41  ;;  %5529 = vmatmul.mubr.msk.f32.vlgmr.msra.gmra.mxu0 %vm932_vm3, %v5523_v49  ;;  %4334 = vmatprep.subr.mxu1 %v4279_v0  ;;  %v7622_v57 = vpop.f32.mrf.mxu1  ;;  %v5559_v41 = vld [vmem:[%s8067_s4 + $0x270] sm:$0xff]  ;;  %v5548_v0 = vld [vmem:[%s8067_s4 + $0x248] sm:$0xff] }
 0x462   : > { %4335 = vmatpush1.msra.mxu1 %v4278_v18  ;;  %4204 = vmatprep.mubr.f32.mxu0 %v8184_v46 }
 0x463   : > { %v4445_v30 = vpop.permute.xlu1 %4444  ;;  %5541 = vmatmul.mubr.msk.f32.vlgmr.msra.gmra.mxu1 %vm932_vm3, %v5535_v5  ;;  %v7629_v6 = vpop.f32.mrf.mxu1 }
 0x464   : > { %v4447_v33 = vpop.permute.xlu0 %4446  ;;  %4374 = vmatprep.mubr.f32.mxu1 %v8184_v46 }
 0x465   : > { %5530 = vmatmul.mubr.msk.f32.gmra.mxu0 %vm932_vm3, %v5524_v63  ;;  %v4451_v14 = vsel %vm1690_vm11, %v4445_v30, %v4447_v33  ;;  %v7637_v62 = vpop.f32.mrf.mxu1 }
 0x466   : > { %4502 = vmatprep.subr.mxu0 %v4451_v14  ;;  %4210 = vmatprep.mubr.f32.mxu0 %v8184_v46 }
 0x467   : > { %v4443_v3 = vpop.permute.xlu1 %4442  ;;  %5542 = vmatmul.mubr.msk.f32.gmra.mxu1 %vm932_vm3, %v5536_v29  ;;  %v2730_v47 = vpop.f32.mrf.mxu1  ;;  %v5560_v29 = vld [vmem:[%s8067_s4 + $0x278] sm:$0xff] }
 0x468   : > { %v4450_v37 = vsel %vm1690_vm11, %v4443_v3, %v4445_v30  ;;  %v4439_v31 = vpop.permute.xlu0 %4438  ;;  %4380 = vmatprep.mubr.f32.mxu1 %v8184_v46  ;;  %v2731_v23 = vadd.f32 %v2730_v47, %v7548_v19 }
 0x469   : > { %5531 = vmatmul.mubr.msk.f32.gmra.mxu0 %vm932_vm3, %v5525_v2  ;;  %v2732_v52 = vpop.f32.mrf.mxu1 }
 0x46a   : > { %4503 = vmatpush1.msra.mxu0 %v4450_v37  ;;  %4216 = vmatprep.mubr.f32.mxu0 %v8184_v46  ;;  %v2733_v16 = vadd.f32 %v2732_v52, %v7556_v21 }
 0x46b   : > { %v4441_v54 = vpop.permute.xlu1 %4440  ;;  %5543 = vmatmul.mubr.msk.f32.gmra.mxu1 %vm932_vm3, %v5537_v8  ;;  %v2736_v61 = vpop.f32.mrf.mxu1 }
 0x46c   : > { %v4603_v50 = vpop.permute.xlu0 %4602  ;;  %v4449_v51 = vsel %vm1690_vm11, %v4439_v31, %v4441_v54  ;;  %4386 = vmatprep.mubr.f32.mxu1 %v8184_v46  ;;  %v2737_v17 = vadd.f32 %v2736_v61, %v7568_v36  ;;  %v5550_v61 = vld [vmem:[%s8067_s4 + $0x258] sm:$0xff] }
 0x46d   : > { %5532 = vmatmul.mubr.msk.f32.gmra.mxu0 %vm932_vm3, %v5526_v59  ;;  %4504 = vmatprep.subr.mxu0 %v4449_v51  ;;  %v2738_v39 = vpop.f32.mrf.mxu1 }
 0x46e   : > { %4222 = vmatprep.mubr.f32.mxu0 %v8184_v46  ;;  %v2739_v43 = vadd.f32 %v2738_v39, %v7575_v55 }
 0x46f   : > { %v4605_v7 = vpop.permute.xlu1 %4604  ;;  %5544 = vmatmul.mubr.msk.f32.gmra.mxu1 %vm932_vm3, %v5538_v4  ;;  %v2742_v27 = vpop.f32.mrf.mxu1 }
 0x470   : > { %v4437_v38 = vpop.permute.xlu0 %4436  ;;  %v4609_v19 = vsel %vm1893_vm12, %v4603_v50, %v4605_v7  ;;  %4392 = vmatprep.mubr.f32.mxu1 %v8184_v46  ;;  %v2743_v21 = vadd.f32 %v2742_v27, %v7583_v56 }
 0x471   : > { %v4448_v60 = vsel %vm1690_vm11, %v4437_v38, %v4439_v31  ;;  %5533 = vmatmul.mubr.msk.f32.gmra.mxu0 %vm932_vm3, %v5527_v25  ;;  %4660 = vmatprep.subr.mxu1 %v4609_v19  ;;  %v2744_v26 = vpop.f32.mrf.mxu1  ;;  %v5549_v31 = vld [vmem:[%s8067_s4 + $0x250] sm:$0xff]  ;;  %v5562_v19 = vld [vmem:[%s8067_s4 + $0x288] sm:$0xff] }
 0x472   : > { %4505 = vmatpush1.msra.mxu0 %v4448_v60  ;;  %4228 = vmatprep.mubr.f32.mxu0 %v8184_v46  ;;  %v2745_v9 = vadd.f32 %v2744_v26, %v7591_v22 }
 0x473   : > { %v4601_v28 = vpop.permute.xlu1 %4600  ;;  %5545 = vmatmul.mubr.msk.f32.gmra.mxu1 %vm932_vm3, %v5539_v42  ;;  %v2880_v55 = vpop.f32.mrf.mxu0 }
 0x474   : > { %v4608_v12 = vsel %vm1893_vm12, %v4601_v28, %v4603_v50  ;;  %v4597_v36 = vpop.permute.xlu0 %4596  ;;  %4398 = vmatprep.mubr.f32.mxu1 %v8184_v46  ;;  %v2915_v45 = vadd.f32 %v2880_v55, %v2731_v23 }
 0x475   : > { %5534 = vmatmul.mubr.msk.f32.gmra.mxu0 %vm932_vm3, %v5528_v13  ;;  %4661 = vmatpush1.msra.mxu1 %v4608_v12  ;;  %v2748_v15 = vpop.f32.mrf.mxu1  ;;  %v2882_v56 = vpop.f32.mrf.mxu0  ;;  %v5551_v13 = vld [vmem:[%s8067_s4 + $0x260] sm:$0xff] }
 0x476   : > { %4538 = vmatprep.mubr.f32.mxu0 %v8184_v46  ;;  %v2749_v35 = vadd.f32 %v2748_v15, %v7599_v40  ;;  %v2916_v22 = vadd.f32 %v2882_v56, %v2733_v16  ;;  %v5561_v16 = vld [vmem:[%s8067_s4 + $0x280] sm:$0xff]  ;;  %v5563_v15 = vld [vmem:[%s8067_s4 + $0x290] sm:$0xff] }
 0x477   : > { %v4599_v44 = vpop.permute.xlu1 %4598  ;;  %5546 = vmatmul.mubr.msk.f32.gmra.mxu1 %vm932_vm3, %v5540_v58  ;;  %v2750_v20 = vpop.f32.mrf.mxu1 }
 0x478   : > { %v4595_v11 = vpop.permute.xlu0 %4594  ;;  %v4607_v48 = vsel %vm1893_vm12, %v4597_v36, %v4599_v44  ;;  %4696 = vmatprep.mubr.f32.mxu1 %v8184_v46  ;;  %v2751_v24 = vadd.f32 %v2750_v20, %v7606_v10  ;;  %v2886_v49 = vpop.f32.mrf.mxu0  ;;  %v5552_v20 = vld [vmem:[%s8067_s4 + $0x268] sm:$0xff] }
 0x479   : > { %v4606_v40 = vsel %vm1893_vm12, %v4595_v11, %v4597_v36  ;;  %5553 = vmatmul.mubr.msk.f32.vlgmr.msra.gmra.mxu0 %vm932_vm3, %v5547_v34  ;;  %4662 = vmatprep.subr.mxu1 %v4607_v48  ;;  %v2754_v1 = vpop.f32.mrf.mxu1  ;;  %v2917_v32 = vadd.f32 %v2886_v49, %v2737_v17  ;;  %v5564_v49 = vld [vmem:[%s8067_s4 + $0x298] sm:$0xff] }
 0x47a   : > { %4663 = vmatpush1.msra.mxu1 %v4606_v40  ;;  %4544 = vmatprep.mubr.f32.mxu0 %v8184_v46  ;;  %v2755_v5 = vadd.f32 %v2754_v1, %v7614_v53  ;;  %v2888_v18 = vpop.f32.mrf.mxu0 }
 0x47b   : > { %v4761_v63 = vpop.permute.xlu1 %4760  ;;  %5565 = vmatmul.mubr.msk.f32.vlgmr.msra.gmra.mxu1 %vm932_vm3, %v5559_v41  ;;  %v2756_v10 = vpop.f32.mrf.mxu1  ;;  %v2918_v30 = vadd.f32 %v2888_v18, %v2739_v43 }
 0x47c   : > { %v4763_v33 = vpop.permute.xlu0 %4762  ;;  %4702 = vmatprep.mubr.f32.mxu1 %v8184_v46  ;;  %v2757_v14 = vadd.f32 %v2756_v10, %v7622_v57  ;;  %v2892_v2 = vpop.f32.mrf.mxu0 }
 0x47d   : > { %5554 = vmatmul.mubr.msk.f32.gmra.mxu0 %vm932_vm3, %v5548_v0  ;;  %v4767_v53 = vsel %vm1893_vm12, %v4761_v63, %v4763_v33  ;;  %v2760_v3 = vpop.f32.mrf.mxu1  ;;  %v2919_v37 = vadd.f32 %v2892_v2, %v2743_v21  ;;  %v5572_v2 = vld [vmem:[%s8067_s4 + $0x2a8] sm:$0xff] }
 0x47e   : > { %4818 = vmatprep.subr.mxu0 %v4767_v53  ;;  %4550 = vmatprep.mubr.f32.mxu0 %v8184_v46  ;;  %v2761_v8 = vadd.f32 %v2760_v3, %v7629_v6  ;;  %v2894_v47 = vpop.f32.mrf.mxu0 }
 0x47f   : > { %v4759_v23 = vpop.permute.xlu1 %4758  ;;  %5566 = vmatmul.mubr.msk.f32.gmra.mxu1 %vm932_vm3, %v5560_v29  ;;  %v2762_v57 = vpop.f32.mrf.mxu1  ;;  %v2920_v59 = vadd.f32 %v2894_v47, %v2745_v9  ;;  %v5573_v47 = vld [vmem:[%s8067_s4 + $0x2b0] sm:$0xff] }
 0x480   : > { %v4766_v52 = vsel %vm1893_vm12, %v4759_v23, %v4761_v63  ;;  %v4755_v54 = vpop.permute.xlu0 %4754  ;;  %4708 = vmatprep.mubr.f32.mxu1 %v8184_v46  ;;  %v7725_v50 = vadd.f32 %v2762_v57, %v7637_v62  ;;  %v2898_v51 = vpop.f32.mrf.mxu0  ;;  %v5585_v57 = vld [vmem:[%s8067_s4 + $0x2e0] sm:$0xff] }
 0x481   : > { %5555 = vmatmul.mubr.msk.f32.gmra.mxu0 %vm932_vm3, %v5549_v31  ;;  %v3050_v6 = vpop.f32.mrf.mxu1  ;;  %v2921_v4 = vadd.f32 %v2898_v51, %v2749_v35  ;;  %v5576_v51 = vld [vmem:[%s8067_s4 + $0x2c8] sm:$0xff] }
 0x482   : > { %4819 = vmatpush1.msra.mxu0 %v4766_v52  ;;  %4556 = vmatprep.mubr.f32.mxu0 %v8184_v46  ;;  %v7732_v17 = vadd.f32 %v3050_v6, %v2915_v45  ;;  %v2900_v25 = vpop.f32.mrf.mxu0  ;;  %v5586_v52 = vld [vmem:[%s8067_s4 + $0x2e8] sm:$0xff]  ;;  %v5588_v6 = vld [vmem:[%s8067_s4 + $0x2f8] sm:$0xff] }
 0x483   : > { %v4757_v39 = vpop.permute.xlu1 %4756  ;;  %5567 = vmatmul.mubr.msk.f32.gmra.mxu1 %vm932_vm3, %v5561_v16  ;;  %v3052_v62 = vpop.f32.mrf.mxu1  ;;  %v2922_v7 = vadd.f32 %v2900_v25, %v2751_v24  ;;  %v5587_v16 = vld [vmem:[%s8067_s4 + $0x2f0] sm:$0xff] }
 0x484   : > { %v4931_v43 = vpop.permute.xlu0 %4930  ;;  %v4765_v38 = vsel %vm1893_vm12, %v4755_v54, %v4757_v39  ;;  %4714 = vmatprep.mubr.f32.mxu1 %v8184_v46  ;;  %v7740_v42 = vadd.f32 %v3052_v62, %v2916_v22  ;;  %v2904_v27 = vpop.f32.mrf.mxu0 }
 0x485   : > { %5556 = vmatmul.mubr.msk.f32.gmra.mxu0 %vm932_vm3, %v5550_v61  ;;  %4820 = vmatprep.subr.mxu0 %v4765_v38  ;;  %v3056_v60 = vpop.f32.mrf.mxu1  ;;  %v2923_v21 = vadd.f32 %v2904_v27, %v2755_v5 }
 0x486   : > { %4562 = vmatprep.mubr.f32.mxu0 %v8184_v46  ;;  %v7747_v26 = vadd.f32 %v3056_v60, %v2917_v32  ;;  %v2906_v28 = vpop.f32.mrf.mxu0  ;;  %v5571_v32 = vld [vmem:[%s8067_s4 + $0x2a0] sm:$0xff] }
 0x487   : > { %v4933_v9 = vpop.permute.xlu1 %4932  ;;  %5568 = vmatmul.mubr.msk.f32.gmra.mxu1 %vm932_vm3, %v5562_v19  ;;  %v3058_v12 = vpop.f32.mrf.mxu1  ;;  %v2924_v36 = vadd.f32 %v2906_v28, %v2757_v14 }
 0x488   : > { %v4753_v58 = vpop.permute.xlu0 %4752  ;;  %v4937_v55 = vsel %vm2140_vm13, %v4931_v43, %v4933_v9  ;;  %4720 = vmatprep.mubr.f32.mxu1 %v8184_v46  ;;  %v7755_v45 = vadd.f32 %v3058_v12, %v2918_v30  ;;  %v2910_v34 = vpop.f32.mrf.mxu0  ;;  %v5583_v30 = vld [vmem:[%s8067_s4 + $0x2d0] sm:$0xff] }
 0x489   : > { %v4764_v35 = vsel %vm1893_vm12, %v4753_v58, %v4755_v54  ;;  %5557 = vmatmul.mubr.msk.f32.gmra.mxu0 %vm932_vm3, %v5551_v13  ;;  %4988 = vmatprep.subr.mxu1 %v4937_v55  ;;  %v3062_v56 = vpop.f32.mrf.mxu1  ;;  %v2925_v44 = vadd.f32 %v2910_v34, %v2761_v8  ;;  %v5575_v54 = vld [vmem:[%s8067_s4 + $0x2c0] sm:$0xff] }
 0x48a   : > { %4821 = vmatpush1.msra.mxu0 %v4764_v35  ;;  %4568 = vmatprep.mubr.f32.mxu0 %v8184_v46  ;;  %v7763_v22 = vadd.f32 %v3062_v56, %v2919_v37  ;;  %v5584_v37 = vld [vmem:[%s8067_s4 + $0x2d8] sm:$0xff] }
 0x48b   : > { %v4929_v11 = vpop.permute.xlu1 %4928  ;;  %5569 = vmatmul.mubr.msk.f32.gmra.mxu1 %vm932_vm3, %v5563_v15  ;;  %v3064_v48 = vpop.f32.mrf.mxu1 }
 0x48c   : > { %v4936_v41 = vsel %vm2140_vm13, %v4929_v11, %v4931_v43  ;;  %v4925_v24 = vpop.permute.xlu0 %4924  ;;  %4726 = vmatprep.mubr.f32.mxu1 %v8184_v46  ;;  %v7771_v40 = vadd.f32 %v3064_v48, %v2920_v59  ;;  %v5574_v59 = vld [vmem:[%s8067_s4 + $0x2b8] sm:$0xff] }
 0x48d   : > { %5558 = vmatmul.mubr.msk.f32.gmra.mxu0 %vm932_vm3, %v5552_v20  ;;  %4989 = vmatpush1.msra.mxu1 %v4936_v41  ;;  %v3068_v1 = vpop.f32.mrf.mxu1 }
 0x48e   : > { %4854 = vmatprep.mubr.f32.mxu0 %v8184_v46  ;;  %v7778_v0 = vadd.f32 %v3068_v1, %v2921_v4  ;;  %v2912_v4 = vpop.f32.mrf.mxu0 }
 0x48f   : > { %v4927_v5 = vpop.permute.xlu1 %4926  ;;  %5570 = vmatmul.mubr.msk.f32.gmra.mxu1 %vm932_vm3, %v5564_v49  ;;  %v3070_v18 = vpop.f32.mrf.mxu1 }
 0x490   : > { %v4923_v63 = vpop.permute.xlu0 %4922  ;;  %v4935_v10 = vsel %vm2140_vm13, %v4925_v24, %v4927_v5  ;;  %5024 = vmatprep.mubr.f32.mxu1 %v8184_v46  ;;  %v7786_v33 = vadd.f32 %v3070_v18, %v2922_v7 }
 0x491   : > { %v4934_v29 = vsel %vm2140_vm13, %v4923_v63, %v4925_v24  ;;  %5577 = vmatmul.mubr.msk.f32.vlgmr.msra.gmra.mxu0 %vm932_vm3, %v5571_v32  ;;  %4990 = vmatprep.subr.mxu1 %v4935_v10  ;;  %v3074_v14 = vpop.f32.mrf.mxu1 }
 0x492   : > { %4991 = vmatpush1.msra.mxu1 %v4934_v29  ;;  %4860 = vmatprep.mubr.f32.mxu0 %v8184_v46  ;;  %v7794_v53 = vadd.f32 %v3074_v14, %v2923_v21 }
 0x493   : > { %5589 = vmatmul.mubr.msk.f32.vlgmr.msra.gmra.mxu1 %vm932_vm3, %v5583_v30  ;;  %v3076_v3 = vpop.f32.mrf.mxu1 }
 0x494   : > { %5030 = vmatprep.mubr.f32.mxu1 %v8184_v46  ;;  %v3094_v31 = vadd.f32 %v3076_v3, %v2924_v36 }
 0x495   : > { %5578 = vmatmul.mubr.msk.f32.gmra.mxu0 %vm932_vm3, %v5572_v2  ;;  %v3080_v8 = vpop.f32.mrf.mxu1 }
 0x496   : > { %4866 = vmatprep.mubr.f32.mxu0 %v8184_v46  ;;  %v3095_v23 = vadd.f32 %v3080_v8, %v2925_v44  ;;  %v2926_v44 = vadd.f32 %v2912_v4, %v7725_v50 }
 0x497   : > { %5590 = vmatmul.mubr.msk.f32.gmra.mxu1 %vm932_vm3, %v5584_v37  ;;  %v3082_v38 = vpop.f32.mrf.mxu1 }
 0x498   : > { %5036 = vmatprep.mubr.f32.mxu1 %v8184_v46  ;;  %v3096_v1 = vadd.f32 %v3082_v38, %v2926_v44 }
 0x499   : > { %5579 = vmatmul.mubr.msk.f32.gmra.mxu0 %vm932_vm3, %v5573_v47 }
 0x49a   : > { %4872 = vmatprep.mubr.f32.mxu0 %v8184_v46 }
 0x49b   : > { %5591 = vmatmul.mubr.msk.f32.gmra.mxu1 %vm932_vm3, %v5585_v57 }
 0x49c   : > { %5042 = vmatprep.mubr.f32.mxu1 %v8184_v46 }
 0x49d   : > { %5580 = vmatmul.mubr.msk.f32.gmra.mxu0 %vm932_vm3, %v5574_v59 }
 0x49e   : > { %4878 = vmatprep.mubr.f32.mxu0 %v8184_v46 }
 0x49f   : > { %5592 = vmatmul.mubr.msk.f32.gmra.mxu1 %vm932_vm3, %v5586_v52 }
 0x4a0   : > { %5048 = vmatprep.mubr.f32.mxu1 %v8184_v46 }
 0x4a1   : > { %5581 = vmatmul.mubr.msk.f32.gmra.mxu0 %vm932_vm3, %v5575_v54 }
 0x4a2   : > { %4884 = vmatprep.mubr.f32.mxu0 %v8184_v46 }
 0x4a3   : > { %5593 = vmatmul.mubr.msk.f32.gmra.mxu1 %vm932_vm3, %v5587_v16 }
 0x4a4   : > { %5054 = vmatprep.mubr.f32.mxu1 %v8184_v46 }
 0x4a5   : > { %5582 = vmatmul.mubr.msk.f32.gmra.mxu0 %vm932_vm3, %v5576_v51 }
 0x4a7   : > { %5594 = vmatmul.mubr.msk.f32.gmra.mxu1 %vm932_vm3, %v5588_v6 }
 0x4d3   : > { %v3220_v61 = vpop.f32.mrf.mxu0 }
 0x4d4   : > { %v3255_v25 = vadd.f32 %v3220_v61, %v7732_v17 }
 0x4d5   : > { %v3222_v39 = vpop.f32.mrf.mxu0 }
 0x4d6   : > { %v3256_v62 = vadd.f32 %v3222_v39, %v7740_v42 }
 0x4d7   : > { %v3226_v7 = vpop.f32.mrf.mxu0 }
 0x4d8   : > { %v3257_v43 = vadd.f32 %v3226_v7, %v7747_v26 }
 0x4d9   : > { %v3228_v46 = vpop.f32.mrf.mxu0 }
 0x4da   : > { %v3258_v19 = vadd.f32 %v3228_v46, %v7755_v45 }
 0x4db   : > { %v3232_v27 = vpop.f32.mrf.mxu0  ;;  %v3382_v60 = vpop.f32.mrf.mxu1 }
 0x4dc   : > { %v3259_v21 = vadd.f32 %v3232_v27, %v7763_v22  ;;  %v3417_v13 = vadd.f32 %v3382_v60, %v3255_v25 }
 0x4dd   : > { %v3234_v28 = vpop.f32.mrf.mxu0  ;;  %v3384_v9 = vpop.f32.mrf.mxu1 }
 0x4de   : > { %v3260_v12 = vadd.f32 %v3234_v28, %v7771_v40  ;;  %v3418_v17 = vadd.f32 %v3384_v9, %v3256_v62 }
 0x4df   : > { %v3238_v36 = vpop.f32.mrf.mxu0  ;;  %v3388_v58 = vpop.f32.mrf.mxu1 }
 0x4e0   : > { %v3261_v42 = vadd.f32 %v3238_v36, %v7778_v0  ;;  %v3419_v55 = vadd.f32 %v3388_v58, %v3257_v43 }
 0x4e1   : > { %v3240_v26 = vpop.f32.mrf.mxu0  ;;  %v3390_v15 = vpop.f32.mrf.mxu1 }
 0x4e2   : > { %v3262_v34 = vadd.f32 %v3240_v26, %v7786_v33  ;;  %v3420_v45 = vadd.f32 %v3390_v15, %v3258_v19 }
 0x4e3   : > { %v3244_v35 = vpop.f32.mrf.mxu0  ;;  %v3394_v56 = vpop.f32.mrf.mxu1 }
 0x4e4   : > { %v3263_v20 = vadd.f32 %v3244_v35, %v7794_v53  ;;  %v3421_v22 = vadd.f32 %v3394_v56, %v3259_v21 }
 0x4e5   : > { %v3246_v11 = vpop.f32.mrf.mxu0  ;;  %v3396_v48 = vpop.f32.mrf.mxu1 }
 0x4e6   : > { %v3264_v41 = vadd.f32 %v3246_v11, %v3094_v31  ;;  %v3422_v24 = vadd.f32 %v3396_v48, %v3260_v12 }
 0x4e7   : > { %v3250_v49 = vpop.f32.mrf.mxu0  ;;  %v3400_v40 = vpop.f32.mrf.mxu1 }
 0x4e8   : > { %v3265_v32 = vadd.f32 %v3250_v49, %v3095_v23  ;;  %v3423_v0 = vadd.f32 %v3400_v40, %v3261_v42 }
 0x4e9   : > { %v3252_v5 = vpop.f32.mrf.mxu0  ;;  %v3402_v18 = vpop.f32.mrf.mxu1 }
 0x4ea   : > { %v3266_v63 = vadd.f32 %v3252_v5, %v3096_v1  ;;  %v3424_v10 = vadd.f32 %v3402_v18, %v3262_v34 }
 0x4eb   : > { %v3544_v30 = vpop.f32.mrf.mxu0  ;;  %v3406_v33 = vpop.f32.mrf.mxu1 }
 0x4ec   : > { %v3579_v29 = vadd.f32 %v3544_v30, %v3417_v13  ;;  %v3425_v50 = vadd.f32 %v3406_v33, %v3263_v20 }
 0x4ed   : > { %v3546_v14 = vpop.f32.mrf.mxu0  ;;  %v3408_v2 = vpop.f32.mrf.mxu1 }
 0x4ee   : > { %v3580_v53 = vadd.f32 %v3546_v14, %v3418_v17  ;;  %v3426_v3 = vadd.f32 %v3408_v2, %v3264_v41 }
 0x4ef   : > { %v3550_v37 = vpop.f32.mrf.mxu0  ;;  %v3412_v31 = vpop.f32.mrf.mxu1 }
 0x4f0   : > { %v3581_v8 = vadd.f32 %v3550_v37, %v3419_v55  ;;  %v3427_v47 = vadd.f32 %v3412_v31, %v3265_v32 }
 0x4f1   : > { %v3552_v57 = vpop.f32.mrf.mxu0  ;;  %v3414_v59 = vpop.f32.mrf.mxu1 }
 0x4f2   : > { %v3582_v23 = vadd.f32 %v3552_v57, %v3420_v45  ;;  %v3428_v52 = vadd.f32 %v3414_v59, %v3266_v63 }
 0x4f3   : > { %v3556_v54 = vpop.f32.mrf.mxu0  ;;  %v3714_v16 = vpop.f32.mrf.mxu1 }
 0x4f4   : > { %v3583_v51 = vadd.f32 %v3556_v54, %v3421_v22  ;;  %v7853_v6 = vadd.f32 %v3714_v16, %v3579_v29 }
 0x4f5   : > { %v3558_v4 = vpop.f32.mrf.mxu0  ;;  %v3716_v61 = vpop.f32.mrf.mxu1 }
 0x4f6   : > { %v3584_v25 = vadd.f32 %v3558_v4, %v3422_v24  ;;  %v7855_v39 = vadd.f32 %v3716_v61, %v3580_v53 }
 0x4f7   : > { %v3562_v62 = vpop.f32.mrf.mxu0  ;;  %v3720_v7 = vpop.f32.mrf.mxu1 }
 0x4f8   : > { %v3585_v43 = vadd.f32 %v3562_v62, %v3423_v0  ;;  %v7857_v38 = vadd.f32 %v3720_v7, %v3581_v8 }
 0x4f9   : > { %v3564_v46 = vpop.f32.mrf.mxu0  ;;  %v3722_v19 = vpop.f32.mrf.mxu1 }
 0x4fa   : > { %v3586_v27 = vadd.f32 %v3564_v46, %v3424_v10  ;;  %v7859_v60 = vadd.f32 %v3722_v19, %v3582_v23 }
 0x4fb   : > { %v3568_v21 = vpop.f32.mrf.mxu0  ;;  %v3726_v13 = vpop.f32.mrf.mxu1 }
 0x4fc   : > { %v3587_v28 = vadd.f32 %v3568_v21, %v3425_v50  ;;  %v7861_v9 = vadd.f32 %v3726_v13, %v3583_v51 }
 0x4fd   : > { %v3570_v12 = vpop.f32.mrf.mxu0  ;;  %v3728_v17 = vpop.f32.mrf.mxu1 }
 0x4fe   : > { %v3588_v36 = vadd.f32 %v3570_v12, %v3426_v3  ;;  %v7863_v58 = vadd.f32 %v3728_v17, %v3584_v25 }
 0x4ff   : > { %v3574_v42 = vpop.f32.mrf.mxu0  ;;  %v3732_v55 = vpop.f32.mrf.mxu1 }
 0x500   : > { %v3589_v26 = vadd.f32 %v3574_v42, %v3427_v47  ;;  %v7865_v15 = vadd.f32 %v3732_v55, %v3585_v43 }
 0x501   : > { %v3576_v34 = vpop.f32.mrf.mxu0  ;;  %v3734_v45 = vpop.f32.mrf.mxu1 }
 0x502   : > { %v3590_v35 = vadd.f32 %v3576_v34, %v3428_v52  ;;  %v7867_v56 = vadd.f32 %v3734_v45, %v3586_v27 }
 0x503   : > { %v3738_v44 = vpop.f32.mrf.mxu1 }
 0x504   : > { %v7869_v20 = vadd.f32 %v3738_v44, %v3587_v28 }
 0x505   : > { %v3740_v22 = vpop.f32.mrf.mxu1 }
 0x506   : > { %v7871_v11 = vadd.f32 %v3740_v22, %v3588_v36 }
 0x507   : > { %v3744_v48 = vpop.f32.mrf.mxu1 }
 0x508   : > { %v7873_v41 = vadd.f32 %v3744_v48, %v3589_v26 }
 0x509   : > { %v3746_v24 = vpop.f32.mrf.mxu1  ;;  %v3884_v49 = vpop.f32.mrf.mxu0 }
 0x50a   : > { %v7875_v40 = vadd.f32 %v3746_v24, %v3590_v35 }
 0x50b   : > { %v3886_v1 = vpop.f32.mrf.mxu0  ;;  %v4042_v32 = vpop.f32.mrf.mxu1 }
 0x50d   : > { %v3890_v0 = vpop.f32.mrf.mxu0  ;;  %v4044_v5 = vpop.f32.mrf.mxu1 }
 0x50f   : > { %v3892_v18 = vpop.f32.mrf.mxu0  ;;  %v7877_v63 = vpop.f32.mrf.mxu1 }
 0x511   : > { %v3896_v10 = vpop.f32.mrf.mxu0  ;;  %v7879_v30 = vpop.f32.mrf.mxu1 }
 0x513   : > { %v7881_v33 = vpop.f32.mrf.mxu0  ;;  %v7883_v29 = vpop.f32.mrf.mxu1 }
 0x515   : > { %v7885_v50 = vpop.f32.mrf.mxu0  ;;  %v7887_v14 = vpop.f32.mrf.mxu1 }
 0x517   : > { %v7889_v2 = vpop.f32.mrf.mxu0  ;;  %v7891_v53 = vpop.f32.mrf.mxu1 }
 0x519   : > { %v7893_v3 = vpop.f32.mrf.mxu0  ;;  %v7895_v37 = vpop.f32.mrf.mxu1 }
 0x51b   : > { %v7897_v31 = vpop.f32.mrf.mxu0  ;;  %v7899_v8 = vpop.f32.mrf.mxu1 }
 0x51d   : > { %v7901_v47 = vpop.f32.mrf.mxu0  ;;  %v7903_v57 = vpop.f32.mrf.mxu1 }
 0x51f   : > { %v7905_v59 = vpop.f32.mrf.mxu0  ;;  %v7907_v23 = vpop.f32.mrf.mxu1 }
 0x520   : > { %8195 = vst [vmem:[#allocation32_spill] sm:$0xff] %v7907_v23  ;;  %v3921_v23 = vadd.f32 %v3890_v0, %v7857_v38  ;;  %v3924_v38 = vadd.f32 %v7881_v33, %v7863_v58 }
 0x521   : > { %v7909_v52 = vpop.f32.mrf.mxu1  ;;  %v4200_v54 = vpop.f32.mrf.mxu0 }
 0x522   : > { %8196 = vst [vmem:[#allocation37_spill] sm:$0xff] %v7909_v52 }
 0x523   : > { %v4202_v16 = vpop.f32.mrf.mxu0  ;;  %v4370_v51 = vpop.f32.mrf.mxu1 }
 0x525   : > { %v4206_v4 = vpop.f32.mrf.mxu0  ;;  %v4372_v61 = vpop.f32.mrf.mxu1 }
 0x527   : > { %v4208_v25 = vpop.f32.mrf.mxu0  ;;  %v7911_v62 = vpop.f32.mrf.mxu1 }
 0x529   : > { %v4212_v7 = vpop.f32.mrf.mxu0  ;;  %v7913_v43 = vpop.f32.mrf.mxu1 }
 0x52b   : > { %v7915_v46 = vpop.f32.mrf.mxu0  ;;  %v7917_v19 = vpop.f32.mrf.mxu1 }
 0x52d   : > { %v7919_v27 = vpop.f32.mrf.mxu0  ;;  %v7921_v21 = vpop.f32.mrf.mxu1 }
 0x52e   : > { %8197 = vst [vmem:[#allocation29_spill] sm:$0xff] %v7921_v21 }
 0x52f   : > { %v7923_v13 = vpop.f32.mrf.mxu0  ;;  %v7925_v28 = vpop.f32.mrf.mxu1 }
 0x530   : > { %8198 = vst [vmem:[#allocation38_spill] sm:$0xff] %v7923_v13  ;;  %8199 = vst [vmem:[#allocation41_spill] sm:$0xff] %v7925_v28 }
 0x531   : > { %v7927_v12 = vpop.f32.mrf.mxu0  ;;  %v7929_v17 = vpop.f32.mrf.mxu1 }
 0x532   : > { %8200 = vst [vmem:[#allocation34_spill] sm:$0xff] %v7927_v12  ;;  %8201 = vst [vmem:[#allocation33_spill] sm:$0xff] %v7929_v17 }
 0x533   : > { %v7931_v36 = vpop.f32.mrf.mxu0  ;;  %v7933_v42 = vpop.f32.mrf.mxu1 }
 0x534   : > { %8202 = vst [vmem:[#allocation39_spill] sm:$0xff] %v7931_v36  ;;  %8203 = vst [vmem:[#allocation42_spill] sm:$0xff] %v7933_v42  ;;  %v3919_v42 = vadd.f32 %v3884_v49, %v7853_v6  ;;  %v3923_v49 = vadd.f32 %v3896_v10, %v7861_v9  ;;  %v3925_v10 = vadd.f32 %v7885_v50, %v7865_v15 }
 0x535   : > { %v7935_v55 = vpop.f32.mrf.mxu0  ;;  %v7937_v26 = vpop.f32.mrf.mxu1  ;;  %v3928_v15 = vadd.f32 %v7897_v31, %v7871_v11 }
 0x536   : > { %8204 = vst [vmem:[#allocation40_spill] sm:$0xff] %v7935_v55  ;;  %8205 = vst [vmem:[#allocation45_spill] sm:$0xff] %v7937_v26  ;;  %v3920_v26 = vadd.f32 %v3886_v1, %v7855_v39  ;;  %v4079_v1 = vadd.f32 %v7877_v63, %v3921_v23  ;;  %v4081_v9 = vadd.f32 %v7883_v29, %v3923_v49 }
 0x537   : > { %v7939_v34 = vpop.f32.mrf.mxu0  ;;  %v7941_v45 = vpop.f32.mrf.mxu1  ;;  %v3926_v63 = vadd.f32 %v7889_v2, %v7867_v56  ;;  %v4083_v2 = vadd.f32 %v7891_v53, %v3925_v10  ;;  %v3930_v53 = vadd.f32 %v7905_v59, %v7875_v40 }
 0x538   : > { %8206 = vst [vmem:[#allocation20_spill] sm:$0xff] %v7939_v34  ;;  %8207 = vst [vmem:[#allocation22_spill] sm:$0xff] %v7941_v45  ;;  %v4078_v21 = vadd.f32 %v4044_v5, %v3920_v26  ;;  %v4086_v26 = vadd.f32 %v7903_v57, %v3928_v15  ;;  %v8217_v57 = vld [vmem:[#allocation37_spill] sm:$0xff] }
 0x539   : > { %v7943_v35 = vpop.f32.mrf.mxu1  ;;  %v4540_v44 = vpop.f32.mrf.mxu0 }
 0x53a   : > { %8208 = vst [vmem:[#allocation24_spill] sm:$0xff] %v7943_v35  ;;  %v4077_v35 = vadd.f32 %v4042_v32, %v3919_v42 }
 0x53b   : > { %v4542_v22 = vpop.f32.mrf.mxu0  ;;  %v4698_v48 = vpop.f32.mrf.mxu1 }
 0x53c   : > { %v4235_v6 = vadd.f32 %v4200_v54, %v4077_v35 }
 0x53d   : > { %v4546_v24 = vpop.f32.mrf.mxu0  ;;  %v4700_v28 = vpop.f32.mrf.mxu1 }
 0x53f   : > { %v4548_v17 = vpop.f32.mrf.mxu0  ;;  %v7945_v52 = vpop.f32.mrf.mxu1 }
 0x540   : > { %8209 = vst [vmem:[#allocation19_spill] sm:$0xff] %v7945_v52  ;;  %v3922_v52 = vadd.f32 %v3892_v18, %v7859_v60  ;;  %v4405_v60 = vadd.f32 %v4370_v51, %v4235_v6  ;;  %v4237_v18 = vadd.f32 %v4206_v4, %v4079_v1  ;;  %v4084_v4 = vadd.f32 %v7895_v37, %v3926_v63  ;;  %v8215_v6 = vld [vmem:[#allocation32_spill] sm:$0xff] }
 0x541   : > { %v4552_v36 = vpop.f32.mrf.mxu0  ;;  %v7948_v55 = vpop.f32.mrf.mxu1 }
 0x542   : > { %8210 = vst [vmem:[#allocation21_spill] sm:$0xff] %v7948_v55  ;;  %v4080_v5 = vadd.f32 %v7879_v30, %v3922_v52  ;;  %v3927_v30 = vadd.f32 %v7893_v3, %v7869_v20  ;;  %v4239_v52 = vadd.f32 %v4212_v7, %v4081_v9  ;;  %v4407_v56 = vadd.f32 %v7911_v62, %v4237_v18  ;;  %v8219_v18 = vld [vmem:[#allocation39_spill] sm:$0xff] }
 0x543   : > { %v7951_v34 = vpop.f32.mrf.mxu0  ;;  %v7953_v45 = vpop.f32.mrf.mxu1  ;;  %v3929_v3 = vadd.f32 %v7901_v47, %v7873_v41  ;;  %v4241_v62 = vadd.f32 %v7919_v27, %v4083_v2  ;;  %v4244_v9 = vadd.f32 %v8219_v18, %v4086_v26  ;;  %v8228_v18 = vld [vmem:[#allocation24_spill] sm:$0xff] }
 0x544   : > { %8211 = vst [vmem:[#allocation26_spill] sm:$0xff] %v7953_v45  ;;  %v4236_v45 = vadd.f32 %v4202_v16, %v4078_v21  ;;  %v4238_v33 = vadd.f32 %v4208_v25, %v4080_v5  ;;  %v4575_v16 = vadd.f32 %v4540_v44, %v4405_v60  ;;  %v4082_v21 = vadd.f32 %v7887_v14, %v3924_v38  ;;  %v8213_v44 = vld [vmem:[#allocation38_spill] sm:$0xff] }
 0x545   : > { %v7956_v12 = vpop.f32.mrf.mxu0  ;;  %v7958_v13 = vpop.f32.mrf.mxu1  ;;  %v4577_v11 = vadd.f32 %v4546_v24, %v4407_v56  ;;  %v4085_v31 = vadd.f32 %v7899_v8, %v3927_v30  ;;  %v4409_v37 = vadd.f32 %v7917_v19, %v4239_v52  ;;  %v8214_v8 = vld [vmem:[#allocation34_spill] sm:$0xff]  ;;  %v4087_v27 = vadd.f32 %v8215_v6, %v3929_v3  ;;  %v8221_v52 = vld [vmem:[#allocation33_spill] sm:$0xff] }
 0x546   : > { %v4406_v58 = vadd.f32 %v4372_v61, %v4236_v45  ;;  %v4240_v14 = vadd.f32 %v7915_v46, %v4082_v21  ;;  %v4408_v25 = vadd.f32 %v7913_v43, %v4238_v33  ;;  %v4733_v7 = vadd.f32 %v4698_v48, %v4575_v16  ;;  %v8212_v43 = vld [vmem:[#allocation29_spill] sm:$0xff]  ;;  %v5082_v19 = vpop.permute.xlu1 %5081  ;;  %v8222_v56 = vld [vmem:[#allocation42_spill] sm:$0xff] }
 0x547   : > { %v7962_v55 = vpop.f32.mrf.mxu0  ;;  %v7964_v39 = vpop.f32.mrf.mxu1  ;;  %v4243_v48 = vadd.f32 %v8214_v8, %v4085_v31  ;;  %v4579_v24 = vadd.f32 %v4552_v36, %v4409_v37  ;;  %v8216_v49 = vld [vmem:[#allocation19_spill] sm:$0xff]  ;;  %v8224_v37 = vld [vmem:[#allocation40_spill] sm:$0xff] }
 0x548   : > { %v4576_v50 = vadd.f32 %v4542_v22, %v4406_v58  ;;  %v4578_v41 = vadd.f32 %v4548_v17, %v4408_v25  ;;  %v4410_v35 = vadd.f32 %v8212_v43, %v4240_v14  ;;  %v4242_v22 = vadd.f32 %v8213_v44, %v4084_v4  ;;  %v8218_v17 = vld [vmem:[#allocation41_spill] sm:$0xff] }
 0x549   : > { %v7969_v32 = vpop.f32.mrf.mxu0  ;;  %v7971_v0 = vpop.f32.mrf.mxu1  ;;  %v4735_v1 = vadd.f32 %v8216_v49, %v4577_v11  ;;  %v4411_v60 = vadd.f32 %v8218_v17, %v4241_v62  ;;  %v8220_v36 = vld [vmem:[#allocation21_spill] sm:$0xff]  ;;  %v4245_v62 = vadd.f32 %v8224_v37, %v4087_v27  ;;  %v8227_v49 = vld [vmem:[#allocation22_spill] sm:$0xff] }
 0x54a   : > { %v4734_v45 = vadd.f32 %v4700_v28, %v4576_v50  ;;  %v4088_v28 = vadd.f32 %v8217_v57, %v3930_v53  ;;  %v4580_v10 = vadd.f32 %v7951_v34, %v4410_v35  ;;  %v4736_v33 = vadd.f32 %v8220_v36, %v4578_v41  ;;  %v5092_v6 = vpop.permute.xlu1 %5091 }
 0x54b   : > { %v7979_v23 = vpop.f32.mrf.mxu0  ;;  %v7981_v54 = vpop.f32.mrf.mxu1  ;;  %v4412_v15 = vadd.f32 %v8221_v52, %v4242_v22  ;;  %v4413_v50 = vadd.f32 %v8222_v56, %v4243_v48  ;;  %v8223_v2 = vld [vmem:[#allocation26_spill] sm:$0xff]  ;;  %v4581_v14 = vadd.f32 %v7956_v12, %v4411_v60  ;;  %v8226_v22 = vld [vmem:[#allocation20_spill] sm:$0xff] }
 0x54c   : > { %v4737_v4 = vadd.f32 %v8223_v2, %v4579_v24  ;;  %v4246_v8 = vadd.f32 %v8226_v22, %v4088_v28 }
 0x54d   : > { %v7986_v29 = vpop.f32.mrf.mxu0  ;;  %v7988_v51 = vpop.f32.mrf.mxu1  ;;  %v4582_v41 = vadd.f32 %v7962_v55, %v4412_v15  ;;  %v4739_v48 = vadd.f32 %v7964_v39, %v4581_v14  ;;  %v4583_v24 = vadd.f32 %v7969_v32, %v4413_v50 }
 0x54f   : > { %v7996_v61 = vpop.f32.mrf.mxu0  ;;  %v7998_v20 = vpop.f32.mrf.mxu1 }
 0x551   : > { %v8008_v46 = vpop.f32.mrf.mxu1  ;;  %v4856_v42 = vpop.f32.mrf.mxu0 }
 0x552   : > { %v4891_v47 = vadd.f32 %v4856_v42, %v4733_v7  ;;  %v5087_v7 = vpop.permute.xlu0 %5086  ;;  %v8225_v42 = vld [vmem:[#allocation45_spill] sm:$0xff] }
 0x553   : > { %v4858_v40 = vpop.f32.mrf.mxu0  ;;  %v5026_v59 = vpop.f32.mrf.mxu1  ;;  %v4414_v26 = vadd.f32 %v8225_v42, %v4244_v9  ;;  %v4416_v9 = vadd.f32 %v8228_v18, %v4246_v8 }
 0x554   : > { %v4892_v38 = vadd.f32 %v4858_v40, %v4734_v45  ;;  %v5061_v5 = vadd.f32 %v5026_v59, %v4891_v47  ;;  %v4738_v45 = vadd.f32 %v7958_v13, %v4580_v10  ;;  %v4741_v10 = vadd.f32 %v7981_v54, %v4583_v24 }
 0x555   : > { %v4862_v63 = vpop.f32.mrf.mxu0  ;;  %v5028_v58 = vpop.f32.mrf.mxu1  ;;  %v4586_v15 = vadd.f32 %v7996_v61, %v4416_v9 }
 0x556   : > { %v5109_v16 = vadd.f32 %v5082_v19, %v5061_v5  ;;  %v4893_v21 = vadd.f32 %v4862_v63, %v4735_v1  ;;  %v5062_v30 = vadd.f32 %v5028_v58, %v4892_v38  ;;  %v4415_v1 = vadd.f32 %v8227_v49, %v4245_v62 }
 0x557   : > { %v4864_v3 = vpop.f32.mrf.mxu0  ;;  %v5032_v25 = vpop.f32.mrf.mxu1  ;;  %v4740_v38 = vadd.f32 %v7971_v0, %v4582_v41  ;;  %v4584_v5 = vadd.f32 %v7979_v23, %v4414_v26 }
 0x558   : > { %v5595_v11 = vmul.f32 -1.442695, %v5109_v16  ;;  %v5110_v34 = vadd.f32 %v5082_v19, %v5062_v30  ;;  %v4894_v31 = vadd.f32 %v4864_v3, %v4736_v33  ;;  %v5063_v53 = vadd.f32 %v5032_v25, %v4893_v21  ;;  %v5097_v16 = vpop.permute.xlu0 %5096 }
 0x559   : > { %v4868_v47 = vpop.f32.mrf.mxu0  ;;  %v5034_v43 = vpop.f32.mrf.mxu1  ;;  %v4585_v63 = vadd.f32 %v7986_v29, %v4415_v1  ;;  %v4742_v52 = vadd.f32 %v7988_v51, %v4584_v5  ;;  %v4744_v51 = vadd.f32 %v8008_v46, %v4586_v15 }
 0x55a   : > { %5645 = vpow2.f32 %v5595_v11  ;;  %v5596_v35 = vmul.f32 -1.442695, %v5110_v34  ;;  %v5111_v12 = vadd.f32 %v5087_v7, %v5063_v53  ;;  %v4895_v44 = vadd.f32 %v4868_v47, %v4737_v4 }
 0x55b   : > { %v5064_v40 = vadd.f32 %v5034_v43, %v4894_v31  ;;  %v4870_v59 = vpop.f32.mrf.mxu0  ;;  %v5038_v19 = vpop.f32.mrf.mxu1  ;;  %v4743_v29 = vadd.f32 %v7998_v20, %v4585_v63 }
 0x55c   : > { %5647 = vpow2.f32 %v5596_v35  ;;  %v5597_v13 = vmul.f32 -1.442695, %v5111_v12  ;;  %v4896_v27 = vadd.f32 %v4870_v59, %v4738_v45  ;;  %v5065_v55 = vadd.f32 %v5038_v19, %v4895_v44  ;;  %v5107_v46 = vpop.permute.xlu0 %5106 }
 0x55d   : > { %v5112_v57 = vadd.f32 %v5087_v7, %v5064_v40  ;;  %v4874_v28 = vpop.f32.mrf.mxu0  ;;  %v5040_v17 = vpop.f32.mrf.mxu1 }
 0x55e   : > { %5649 = vpow2.f32 %v5597_v13  ;;  %v5113_v39 = vadd.f32 %v5092_v6, %v5065_v55  ;;  %v4897_v32 = vadd.f32 %v4874_v28, %v4739_v48  ;;  %v5066_v60 = vadd.f32 %v5040_v17, %v4896_v27  ;;  %v5102_v7 = vpop.permute.xlu1 %5101 }
 0x55f   : > { %v5598_v58 = vmul.f32 -1.442695, %v5112_v57  ;;  %v4876_v36 = vpop.f32.mrf.mxu0  ;;  %v5044_v33 = vpop.f32.mrf.mxu1 }
 0x560   : > { %v5599_v0 = vmul.f32 -1.442695, %v5113_v39  ;;  %v5114_v21 = vadd.f32 %v5092_v6, %v5066_v60  ;;  %v4898_v23 = vadd.f32 %v4876_v36, %v4740_v38  ;;  %v5067_v30 = vadd.f32 %v5044_v33, %v4897_v32 }
 0x561   : > { %5651 = vpow2.f32 %v5598_v58  ;;  %v4880_v56 = vpop.f32.mrf.mxu0  ;;  %v5046_v50 = vpop.f32.mrf.mxu1 }
 0x562   : > { %5653 = vpow2.f32 %v5599_v0  ;;  %v5600_v2 = vmul.f32 -1.442695, %v5114_v21  ;;  %v5115_v54 = vadd.f32 %v5097_v16, %v5067_v30  ;;  %v4899_v4 = vadd.f32 %v4880_v56, %v4741_v10 }
 0x563   : > { %v5068_v14 = vadd.f32 %v5046_v50, %v4898_v23  ;;  %v4882_v3 = vpop.f32.mrf.mxu0  ;;  %v5050_v25 = vpop.f32.mrf.mxu1 }
 0x564   : > { %5655 = vpow2.f32 %v5600_v2  ;;  %v5601_v11 = vmul.f32 -1.442695, %v5115_v54  ;;  %v4900_v34 = vadd.f32 %v4882_v3, %v4742_v52  ;;  %v5069_v31 = vadd.f32 %v5050_v25, %v4899_v4 }
 0x565   : > { %v5116_v61 = vadd.f32 %v5097_v16, %v5068_v14  ;;  %v4886_v53 = vpop.f32.mrf.mxu0  ;;  %v5052_v37 = vpop.f32.mrf.mxu1 }
 0x566   : > { %5657 = vpow2.f32 %v5601_v11  ;;  %v5117_v62 = vadd.f32 %v5102_v7, %v5069_v31  ;;  %v4901_v42 = vadd.f32 %v4886_v53, %v4743_v29  ;;  %v5070_v26 = vadd.f32 %v5052_v37, %v4900_v34 }
 0x567   : > { %v5646_v45 = vpop.eup %5645  ;;  %v5602_v41 = vmul.f32 -1.442695, %v5116_v61  ;;  %v4888_v20 = vpop.f32.mrf.mxu0 }
 0x568   : > { %v5056_v47 = vpop.f32.mrf.mxu1  ;;  %v5157_v43 = vadd.f32 1.0, %v5646_v45  ;;  %v5603_v35 = vmul.f32 -1.442695, %v5117_v62  ;;  %v5118_v12 = vadd.f32 %v5102_v7, %v5070_v26  ;;  %v4902_v44 = vadd.f32 %v4888_v20, %v4744_v51 }
 0x569   : > { %v5648_v22 = vpop.eup %5647  ;;  %5659 = vpow2.f32 %v5602_v41  ;;  %v5071_v8 = vadd.f32 %v5056_v47, %v4901_v42 }
 0x56a   : > { %v5058_v48 = vpop.f32.mrf.mxu1  ;;  %5661 = vrcp.f32 %v5157_v43  ;;  %v5158_v24 = vadd.f32 1.0, %v5648_v22  ;;  %v5604_v40 = vmul.f32 -1.442695, %v5118_v12 }
 0x56b   : > { %v5072_v59 = vadd.f32 %v5058_v48, %v4902_v44  ;;  %v5650_v19 = vpop.eup %5649  ;;  %5663 = vpow2.f32 %v5603_v35  ;;  %v5119_v6 = vadd.f32 %v5107_v46, %v5071_v8 }
 0x56c   : > { %5665 = vrcp.f32 %v5158_v24  ;;  %v5159_v13 = vadd.f32 1.0, %v5650_v19 }
 0x56d   : > { %v5120_v27 = vadd.f32 %v5107_v46, %v5072_v59  ;;  %5667 = vpow2.f32 %v5604_v40  ;;  %v5605_v55 = vmul.f32 -1.442695, %v5119_v6 }
 0x56e   : > { %v5652_v49 = vpop.eup %5651  ;;  %5669 = vrcp.f32 %v5159_v13 }
 0x56f   : > { %v5606_v1 = vmul.f32 -1.442695, %v5120_v27  ;;  %v5654_v38 = vpop.eup %5653  ;;  %v5160_v5 = vadd.f32 1.0, %v5652_v49  ;;  %5671 = vpow2.f32 %v5605_v55 }
 0x570   : > { %v5161_v57 = vadd.f32 1.0, %v5654_v38 }
 0x571   : > { %5673 = vpow2.f32 %v5606_v1  ;;  %v5656_v28 = vpop.eup %5655 }
 0x572   : > { %5675 = vrcp.f32 %v5160_v5  ;;  %v5162_v17 = vadd.f32 1.0, %v5656_v28 }
 0x573   : > { %5677 = vrcp.f32 %v5161_v57  ;;  %v5658_v39 = vpop.eup %5657 }
 0x574   : > { %5679 = vrcp.f32 %v5162_v17  ;;  %v5163_v32 = vadd.f32 1.0, %v5658_v39 }
 0x576   : > { %v5660_v60 = vpop.eup %5659  ;;  %5681 = vrcp.f32 %v5163_v32 }
 0x577   : > { %v5662_v18 = vpop.eup %5661  ;;  %v5164_v9 = vadd.f32 1.0, %v5660_v60 }
 0x578   : > { %v5664_v10 = vpop.eup %5663  ;;  %5193 = vst [vmem:[%s8046_s23] sm:$0xff] %v5662_v18 }
 0x579   : > { %v5666_v63 = vpop.eup %5665  ;;  %5683 = vrcp.f32 %v5164_v9  ;;  %v5165_v58 = vadd.f32 1.0, %v5664_v10 }
 0x57a   : > { %v5668_v36 = vpop.eup %5667  ;;  %5194 = vst [vmem:[%s8046_s23 + $0x8] sm:$0xff] %v5666_v63 }
 0x57b   : > { %v5670_v33 = vpop.eup %5669  ;;  %5685 = vrcp.f32 %v5165_v58  ;;  %v5166_v16 = vadd.f32 1.0, %v5668_v36 }
 0x57c   : > { %v5672_v0 = vpop.eup %5671  ;;  %5195 = vst [vmem:[%s8046_s23 + $0x10] sm:$0xff] %v5670_v33 }
 0x57d   : > { %5687 = vrcp.f32 %v5166_v16  ;;  %v5167_v23 = vadd.f32 1.0, %v5672_v0 }
 0x57e   : > { %v5674_v21 = vpop.eup %5673 }
 0x57f   : > { %v5676_v30 = vpop.eup %5675  ;;  %v5168_v52 = vadd.f32 1.0, %v5674_v21  ;;  %5689 = vrcp.f32 %v5167_v23 }
 0x580   : > { %v5678_v15 = vpop.eup %5677  ;;  %5196 = vst [vmem:[%s8046_s23 + $0x18] sm:$0xff] %v5676_v30 }
 0x581   : > { %5197 = vst [vmem:[%s8046_s23 + $0x20] sm:$0xff] %v5678_v15  ;;  %5691 = vrcp.f32 %v5168_v52  ;;  %v5680_v56 = vpop.eup %5679 }
 0x582   : > { %5198 = vst [vmem:[%s8046_s23 + $0x28] sm:$0xff] %v5680_v56 }
 0x583   : > { %v5682_v50 = vpop.eup %5681 }
 0x584   : > { %5199 = vst [vmem:[%s8046_s23 + $0x30] sm:$0xff] %v5682_v50 }
 0x586   : > { %v5684_v2 = vpop.eup %5683 }
 0x587   : > { %5200 = vst [vmem:[%s8046_s23 + $0x38] sm:$0xff] %v5684_v2 }
 0x588   : > { %v5686_v54 = vpop.eup %5685 }
 0x589   : > { %5201 = vst [vmem:[%s8046_s23 + $0x40] sm:$0xff] %v5686_v54 }
 0x58a   : > { %v5688_v4 = vpop.eup %5687 }
 0x58b   : > { %5202 = vst [vmem:[%s8046_s23 + $0x48] sm:$0xff] %v5688_v4 }
 0x58c   : > { %v5690_v29 = vpop.eup %5689 }
 0x58d   : > { %5203 = vst [vmem:[%s8046_s23 + $0x50] sm:$0xff] %v5690_v29 }
 0x58e   : > { %v5692_v14 = vpop.eup %5691 }
 0x58f   : > { %5204 = vst [vmem:[%s8046_s23 + $0x58] sm:$0xff] %v5692_v14 }
 0x590 PF: > { %s16_s21 = sadd.s32 1, %s5699_s21  }
 0x591   : > { %p13_p4 = scmp.ge.s32.totalorder %s16_s21, 4  }
 0x593   :  { %15 = sbr.rel (!%p13_p4) target bundleno = 1 (0x1), region = 102 }

</bundles_post_ra>
